<compile_context>
chip_gen: v6e
topology: v6e:2x2x1
jax: 0.10.0
libtpu: 0.0.40
codegen_flags: <defaults>
</compile_context>

<pallas_src>
import math
from functools import partial

import numpy as np
import jax
import jax.numpy as jnp
from jax import lax
from jax.experimental import pallas as pl
from jax.experimental.pallas import tpu as pltpu

# ---------------- hyper-parameters (small, consistent with the module) ----------------
D_MODEL = 32
N_LAYER = 2
D_INTERMEDIATE = 64
D_STATE = 16
D_CONV = 4
EXPAND = 2
D_INNER = EXPAND * D_MODEL                       # 64
DT_RANK = math.ceil(D_MODEL / 16)                # 2
MULTIPLE_OF = 128
H_MLP = ((D_INTERMEDIATE + MULTIPLE_OF - 1) // MULTIPLE_OF) * MULTIPLE_OF  # 128
EPS = 1e-5
BATCH = 2
SEQLEN = 8


# ---------------- in-kernel helpers ----------------
def _layer_norm(x, w, b, eps):
    mean = jnp.mean(x, axis=-1, keepdims=True)
    xc = x - mean
    var = jnp.mean(xc * xc, axis=-1, keepdims=True)
    return xc * lax.rsqrt(var + eps) * w + b


def _silu(x):
    return x * jax.nn.sigmoid(x)


# ---------------- fully fused kernel: all layers + final LN, whole batch ----------------
def _mixer_model_kernel(x_ref,
                        ln1w_ref, ln1b_ref, w_in_ref, convw_ref, convb_ref,
                        w_xproj_ref, dtb_ref, alogT_ref, dpar_ref, wout_ref,
                        ln2w_ref, ln2b_ref, w_fc1_ref, w_fc2_ref,
                        normfw_ref, normfb_ref,
                        out_ref,
                        *, eps, batch, n_layer, seqlen, d_conv,
                        d_inner, d_state, h_mlp):
    # row index over the sequence (sublane) axis, built once for the conv mask
    row = lax.broadcasted_iota(jnp.int32, (seqlen, d_inner), 0)

    for b in range(batch):                                   # batch folded into the body
        hs = x_ref[b]                                        # (L, D)
        res = None                                           # layer 0: no residual add
        for i in range(n_layer):
            # ---- fused add + LayerNorm #1 (prenorm) ----
            res1 = hs if res is None else hs + res
            normed = _layer_norm(res1, ln1w_ref[i], ln1b_ref[i], eps)

            # ---- Mamba1 in_proj, fused [x | z] -> (L, 2*d_inner) ----
            xz = jnp.dot(normed, w_in_ref[i], preferred_element_type=jnp.float32)
            x_in = xz[:, :d_inner]                           # (L, d_inner)
            z = xz[:, d_inner:]                              # (L, d_inner)

            # ---- causal depthwise Conv1d via sublane roll + mask (XLU; no tiny MXU ops)
            convw = convw_ref[i]                             # (d_conv, d_inner)
            acc = x_in * convw[d_conv - 1]                   # tap with zero shift
            for k in range(d_conv - 1):
                s = d_conv - 1 - k                           # shift amount (1..d_conv-1)
                shifted = pltpu.roll(x_in, shift=s, axis=0)  # rows move down by s
                shifted = jnp.where(row >= s, shifted, 0.0)  # zero the wrapped rows
                acc = acc + shifted * convw[k]
            x_act = _silu(acc + convb_ref[i])                # (L, d_inner)

            # ---- fused x_proj: [dt (dt_rank folded) | B | C] -> (L, d_inner + 2*d_state)
            proj = jnp.dot(x_act, w_xproj_ref[i], preferred_element_type=jnp.float32)
            dt = jax.nn.softplus(proj[:, :d_inner] + dtb_ref[i])        # (L, d_inner)
            Bm = proj[:, d_inner:d_inner + d_state]                     # (L, d_state)
            Cm = proj[:, d_inner + d_state:]                            # (L, d_state)

            # ---- selective scan: d_inner on lanes, exp hoisted out of the serial loop
            A_T = -jnp.exp(alogT_ref[i])                                # (d_state, d_inner)
            dA = jnp.exp(dt[:, None, :] * A_T[None, :, :])              # (L, d_state, d_inner)
            dtx = dt * x_act                                            # (L, d_inner)
            BmT = Bm.T                                                  # (d_state, L)
            CmT = Cm.T                                                  # (d_state, L)
            state = jnp.zeros((d_state, d_inner), jnp.float32)
            y_rows = []
            for l in range(seqlen):
                dBu_l = dtx[l:l + 1, :] * BmT[:, l:l + 1]               # (d_state, d_inner)
                state = dA[l] * state + dBu_l                           # serial chain: 2 VALU ops
                y_rows.append(jnp.sum(state * CmT[:, l:l + 1],
                                      axis=0, keepdims=True))           # (1, d_inner)
            y = jnp.concatenate(y_rows, axis=0)                         # (L, d_inner), lane-dense
            y = y + x_act * dpar_ref[i]                                 # skip (D) term
            y = y * _silu(z)                                            # output gate
            mix_out = jnp.dot(y, wout_ref[i], preferred_element_type=jnp.float32)  # (L, D)

            # ---- fused add + LayerNorm #2 (prenorm) then GatedMLP (fused fc1) ----
            res2 = mix_out + res1
            normed2 = _layer_norm(res2, ln2w_ref[i], ln2b_ref[i], eps)
            h12 = jnp.dot(normed2, w_fc1_ref[i], preferred_element_type=jnp.float32)  # (L, 2H)
            h = h12[:, :h_mlp] * _silu(h12[:, h_mlp:])
            hs = jnp.dot(h, w_fc2_ref[i], preferred_element_type=jnp.float32)         # (L, D)
            res = res2

        # ---- final fused add + LayerNorm ----
        out_ref[b] = _layer_norm(hs + res, normfw_ref[0], normfb_ref[0], eps)


# ---------------- wrapper: weight packing + single pallas_call ----------------
_PACKED_ORDER = ["ln1_w", "ln1_b", "w_in", "conv_w", "conv_b",
                 "w_xproj", "dt_b", "A_logT", "D", "w_out",
                 "ln2_w", "ln2_b", "w_fc1", "w_fc2", "norm_f_w", "norm_f_b"]


def _pack_params(params):
    """Stack per-layer weights along a leading layer axis and concatenate projections."""
    layers = params["layers"]
    cat = jnp.concatenate
    return dict(
        ln1_w=jnp.stack([p["ln1_w"][0] for p in layers]),                        # (NL, D)
        ln1_b=jnp.stack([p["ln1_b"][0] for p in layers]),
        w_in=jnp.stack([cat([p["wx"], p["wz"]], axis=1) for p in layers]),       # (NL, D, 2*DI)
        conv_w=jnp.stack([p["conv_w"] for p in layers]),                         # (NL, K, DI)
        conv_b=jnp.stack([p["conv_b"][0] for p in layers]),                      # (NL, DI)
        w_xproj=jnp.stack([cat([p["wdt"] @ p["dt_w"], p["wB"], p["wC"]], axis=1)
                           for p in layers]),                                    # (NL, DI, DI+2*DS)
        dt_b=jnp.stack([p["dt_b"][0] for p in layers]),                          # (NL, DI)
        A_logT=jnp.stack([p["A_log"].T for p in layers]),                        # (NL, DS, DI)
        D=jnp.stack([p["D"][0] for p in layers]),                                # (NL, DI)
        w_out=jnp.stack([p["wout"] for p in layers]),                            # (NL, DI, D)
        ln2_w=jnp.stack([p["ln2_w"][0] for p in layers]),
        ln2_b=jnp.stack([p["ln2_b"][0] for p in layers]),
        w_fc1=jnp.stack([cat([p["w1y"], p["w1g"]], axis=1) for p in layers]),    # (NL, D, 2*H)
        w_fc2=jnp.stack([p["w2"] for p in layers]),                              # (NL, H, D)
        norm_f_w=params["norm_f_w"],                                             # (1, D)
        norm_f_b=params["norm_f_b"],
    )


@jax.jit
def mixer_model_forward(x, packed):
    B, L, D = x.shape
    kernel = partial(_mixer_model_kernel, eps=EPS, batch=B, n_layer=N_LAYER,
                     seqlen=L, d_conv=D_CONV, d_inner=D_INNER,
                     d_state=D_STATE, h_mlp=H_MLP)
    # No grid / no BlockSpecs: every operand is a full-array VMEM ref (total ~250 KiB,
    # far under the scoped-VMEM limit on v5e/v6e/v7x).
    return pl.pallas_call(
        kernel,
        out_shape=jax.ShapeDtypeStruct((B, L, D), jnp.float32),
    )(x, *[packed[k] for k in _PACKED_ORDER])


# ---------------- deterministic synthetic parameter init ----------------
def init_params(key):
    def normal(k, shape, std=0.05):
        return (std * jax.random.normal(k, shape)).astype(jnp.float32)

    keys = jax.random.split(key, N_LAYER)
    layers = []
    for i in range(N_LAYER):
        ks = jax.random.split(keys[i], 18)
        layers.append(dict(
            ln1_w=jnp.ones((1, D_MODEL), jnp.float32) + normal(ks[0], (1, D_MODEL), 0.02),
            ln1_b=normal(ks[1], (1, D_MODEL), 0.02),
            wx=normal(ks[2], (D_MODEL, D_INNER)),            # in_proj (x half), (in,out)
            wz=normal(ks[3], (D_MODEL, D_INNER)),            # in_proj (z half)
            conv_w=normal(ks[4], (D_CONV, D_INNER), 0.2),    # depthwise conv taps
            conv_b=normal(ks[5], (1, D_INNER), 0.1),
            wdt=normal(ks[6], (D_INNER, DT_RANK)),           # x_proj -> dt (low rank)
            wB=normal(ks[7], (D_INNER, D_STATE)),            # x_proj -> B
            wC=normal(ks[8], (D_INNER, D_STATE)),            # x_proj -> C
            dt_w=normal(ks[9], (DT_RANK, D_INNER), 0.1),
            dt_b=normal(ks[10], (1, D_INNER), 0.1) - 2.0,    # small dt after softplus
            A_log=jnp.log(jnp.broadcast_to(
                jnp.arange(1, D_STATE + 1, dtype=jnp.float32), (D_INNER, D_STATE))),
            D=jnp.ones((1, D_INNER), jnp.float32),
            wout=normal(ks[11], (D_INNER, D_MODEL)) / math.sqrt(2 * N_LAYER),
            ln2_w=jnp.ones((1, D_MODEL), jnp.float32) + normal(ks[12], (1, D_MODEL), 0.02),
            ln2_b=normal(ks[13], (1, D_MODEL), 0.02),
            w1y=normal(ks[14], (D_MODEL, H_MLP)),            # fc1 first half (y)
            w1g=normal(ks[15], (D_MODEL, H_MLP)),            # fc1 second half (gate)
            w2=normal(ks[16], (H_MLP, D_MODEL)) / math.sqrt(2 * N_LAYER),
        ))
    return dict(layers=layers,
                norm_f_w=jnp.ones((1, D_MODEL), jnp.float32),
                norm_f_b=jnp.zeros((1, D_MODEL), jnp.float32))


# ---------------- pure-JAX reference (for validation) ----------------
def reference_forward(x, params, eps=EPS):
    def ln(v, w, b):
        m = jnp.mean(v, axis=-1, keepdims=True)
        c = v - m
        var = jnp.mean(c * c, axis=-1, keepdims=True)
        return c / jnp.sqrt(var + eps) * w + b

    with jax.default_matmul_precision("highest"):
        B, L, D = x.shape
        hs, res = x, jnp.zeros_like(x)
        for p in params["layers"]:
            res1 = hs + res
            n1 = ln(res1, p["ln1_w"][0], p["ln1_b"][0])
            xin = n1 @ p["wx"]
            z = n1 @ p["wz"]
            xp = jnp.pad(xin, ((0, 0), (D_CONV - 1, 0), (0, 0)))
            xc = sum(xp[:, k:k + L, :] * p["conv_w"][k][None, None, :]
                     for k in range(D_CONV)) + p["conv_b"][0]
            x_act = xc * jax.nn.sigmoid(xc)
            dt = jax.nn.softplus(x_act @ p["wdt"] @ p["dt_w"] + p["dt_b"][0])
            Bm = x_act @ p["wB"]
            Cm = x_act @ p["wC"]
            A = -jnp.exp(p["A_log"])
            dA = jnp.exp(dt[..., None] * A)                     # (B,L,d_inner,d_state)
            dBu = (dt * x_act)[..., None] * Bm[:, :, None, :]
            state = jnp.zeros((B, D_INNER, D_STATE), jnp.float32)
            ys = []
            for l in range(L):
                state = dA[:, l] * state + dBu[:, l]
                ys.append(jnp.sum(state * Cm[:, l][:, None, :], axis=-1))
            y = jnp.stack(ys, axis=1)
            y = y + x_act * p["D"][0]
            y = y * (z * jax.nn.sigmoid(z))
            mix = y @ p["wout"]
            res2 = mix + res1
            n2 = ln(res2, p["ln2_w"][0], p["ln2_b"][0])
            yy = n2 @ p["w1y"]
            gg = n2 @ p["w1g"]
            hs = (yy * (gg * jax.nn.sigmoid(gg))) @ p["w2"]
            res = res2
        return ln(hs + res, params["norm_f_w"][0], params["norm_f_b"][0])


if __name__ == "__main__":
    key = jax.random.PRNGKey(0)
    pkey, xkey = jax.random.split(key)
    params = init_params(pkey)
    x = jax.random.normal(xkey, (BATCH, SEQLEN, D_MODEL), dtype=jnp.float32)

    packed = _pack_params(params)
    out = mixer_model_forward(x, packed)
    out = jax.block_until_ready(out)

    ref = reference_forward(x, params)
    assert out.shape == (BATCH, SEQLEN, D_MODEL)
    np.testing.assert_allclose(np.asarray(out), np.asarray(ref), atol=2e-3, rtol=2e-2)
    print("KERNEL_OK")
</pallas_src>

<mosaic_0001>
module attributes {stable_mosaic.version = 11 : i64} {
  func.func @_mixer_model_kernel(%arg0: memref<2x8x32xf32, #tpu.memory_space<vmem>>, %arg1: memref<2x32xf32, #tpu.memory_space<vmem>>, %arg2: memref<2x32xf32, #tpu.memory_space<vmem>>, %arg3: memref<2x32x128xf32, #tpu.memory_space<vmem>>, %arg4: memref<2x4x64xf32, #tpu.memory_space<vmem>>, %arg5: memref<2x64xf32, #tpu.memory_space<vmem>>, %arg6: memref<2x64x96xf32, #tpu.memory_space<vmem>>, %arg7: memref<2x64xf32, #tpu.memory_space<vmem>>, %arg8: memref<2x16x64xf32, #tpu.memory_space<vmem>>, %arg9: memref<2x64xf32, #tpu.memory_space<vmem>>, %arg10: memref<2x64x32xf32, #tpu.memory_space<vmem>>, %arg11: memref<2x32xf32, #tpu.memory_space<vmem>>, %arg12: memref<2x32xf32, #tpu.memory_space<vmem>>, %arg13: memref<2x32x256xf32, #tpu.memory_space<vmem>>, %arg14: memref<2x128x32xf32, #tpu.memory_space<vmem>>, %arg15: memref<1x32xf32, #tpu.memory_space<vmem>>, %arg16: memref<1x32xf32, #tpu.memory_space<vmem>>, %arg17: memref<2x8x32xf32, #tpu.memory_space<vmem>>) attributes {dimension_semantics = [], scalar_prefetch = 0 : i64, scratch_operands = 0 : i64, tpu.core_type = #tpu.core_type<tc>} {
    %0 = tpu.iota {dimensions = array<i32: 0>} : vector<8x64xi32>
    %c0 = arith.constant 0 : index
    %c0_0 = arith.constant 0 : index
    %c0_1 = arith.constant 0 : index
    %1 = vector.load %arg0[%c0, %c0_0, %c0_1] : memref<2x8x32xf32, #tpu.memory_space<vmem>>, vector<1x8x32xf32>
    %2 = vector.shape_cast %1 : vector<1x8x32xf32> to vector<8x32xf32>
    %c0_2 = arith.constant 0 : index
    %c0_3 = arith.constant 0 : index
    %3 = vector.load %arg1[%c0_2, %c0_3] : memref<2x32xf32, #tpu.memory_space<vmem>>, vector<1x32xf32>
    %4 = vector.shape_cast %3 : vector<1x32xf32> to vector<32xf32>
    %c0_4 = arith.constant 0 : index
    %c0_5 = arith.constant 0 : index
    %5 = vector.load %arg2[%c0_4, %c0_5] : memref<2x32xf32, #tpu.memory_space<vmem>>, vector<1x32xf32>
    %6 = vector.shape_cast %5 : vector<1x32xf32> to vector<32xf32>
    %cst = arith.constant dense<0.000000e+00> : vector<8xf32>
    %7 = vector.multi_reduction <add>, %2, %cst [1] : vector<8x32xf32> to vector<8xf32>
    %8 = vector.shape_cast %7 : vector<8xf32> to vector<8x1xf32>
    %cst_6 = arith.constant 3.200000e+01 : f32
    %9 = vector.broadcast %cst_6 : f32 to vector<8x1xf32>
    %10 = arith.divf %8, %9 : vector<8x1xf32>
    %11 = vector.broadcast %10 : vector<8x1xf32> to vector<8x32xf32>
    %12 = arith.subf %2, %11 : vector<8x32xf32>
    %13 = arith.mulf %12, %12 : vector<8x32xf32>
    %cst_7 = arith.constant dense<0.000000e+00> : vector<8xf32>
    %14 = vector.multi_reduction <add>, %13, %cst_7 [1] : vector<8x32xf32> to vector<8xf32>
    %15 = vector.shape_cast %14 : vector<8xf32> to vector<8x1xf32>
    %cst_8 = arith.constant 3.200000e+01 : f32
    %16 = vector.broadcast %cst_8 : f32 to vector<8x1xf32>
    %17 = arith.divf %15, %16 : vector<8x1xf32>
    %cst_9 = arith.constant 9.99999974E-6 : f32
    %18 = vector.broadcast %cst_9 : f32 to vector<8x1xf32>
    %19 = arith.addf %17, %18 : vector<8x1xf32>
    %20 = math.rsqrt %19 : vector<8x1xf32>
    %21 = vector.broadcast %20 : vector<8x1xf32> to vector<8x32xf32>
    %22 = arith.mulf %12, %21 : vector<8x32xf32>
    %23 = vector.shape_cast %4 : vector<32xf32> to vector<1x32xf32>
    %24 = vector.broadcast %23 : vector<1x32xf32> to vector<8x32xf32>
    %25 = arith.mulf %22, %24 : vector<8x32xf32>
    %26 = vector.shape_cast %6 : vector<32xf32> to vector<1x32xf32>
    %27 = vector.broadcast %26 : vector<1x32xf32> to vector<8x32xf32>
    %28 = arith.addf %25, %27 : vector<8x32xf32>
    %c0_10 = arith.constant 0 : index
    %c0_11 = arith.constant 0 : index
    %c0_12 = arith.constant 0 : index
    %29 = vector.load %arg3[%c0_10, %c0_11, %c0_12] : memref<2x32x128xf32, #tpu.memory_space<vmem>>, vector<1x32x128xf32>
    %30 = vector.shape_cast %29 : vector<1x32x128xf32> to vector<32x128xf32>
    %cst_13 = arith.constant dense<0.000000e+00> : vector<8x128xf32>
    %31 = tpu.matmul %28, %30, %cst_13 {dimension_numbers = #tpu.dot_dimension_numbers<[1], [0], [0], [1], [0, 0, 1, 1], [], []>} : vector<8x32xf32>, vector<32x128xf32>, vector<8x128xf32> -> vector<8x128xf32>
    %32 = vector.extract_strided_slice %31 {offsets = [0, 0], sizes = [8, 64], strides = [1, 1]} : vector<8x128xf32> to vector<8x64xf32>
    %33 = vector.extract_strided_slice %31 {offsets = [0, 64], sizes = [8, 64], strides = [1, 1]} : vector<8x128xf32> to vector<8x64xf32>
    %c0_14 = arith.constant 0 : index
    %c0_15 = arith.constant 0 : index
    %c0_16 = arith.constant 0 : index
    %34 = vector.load %arg4[%c0_14, %c0_15, %c0_16] : memref<2x4x64xf32, #tpu.memory_space<vmem>>, vector<1x4x64xf32>
    %35 = vector.shape_cast %34 : vector<1x4x64xf32> to vector<4x64xf32>
    %36 = vector.extract_strided_slice %35 {offsets = [3, 0], sizes = [1, 64], strides = [1, 1]} : vector<4x64xf32> to vector<1x64xf32>
    %37 = vector.shape_cast %36 : vector<1x64xf32> to vector<64xf32>
    %38 = vector.shape_cast %37 : vector<64xf32> to vector<1x64xf32>
    %39 = vector.broadcast %38 : vector<1x64xf32> to vector<8x64xf32>
    %40 = arith.mulf %32, %39 : vector<8x64xf32>
    %c3_i32 = arith.constant 3 : i32
    %41 = tpu.dynamic_rotate %32 by %c3_i32 dim 0 : vector<8x64xf32>, i32 -> vector<8x64xf32>
    %c3_i32_17 = arith.constant 3 : i32
    %42 = vector.broadcast %c3_i32_17 : i32 to vector<8x64xi32>
    %43 = arith.cmpi sge, %0, %42 : vector<8x64xi32>
    %cst_18 = arith.constant 0.000000e+00 : f32
    %44 = vector.broadcast %cst_18 : f32 to vector<8x64xf32>
    %45 = arith.select %43, %41, %44 : vector<8x64xi1>, vector<8x64xf32>
    %46 = vector.extract_strided_slice %35 {offsets = [0, 0], sizes = [1, 64], strides = [1, 1]} : vector<4x64xf32> to vector<1x64xf32>
    %47 = vector.shape_cast %46 : vector<1x64xf32> to vector<64xf32>
    %48 = vector.shape_cast %47 : vector<64xf32> to vector<1x64xf32>
    %49 = vector.broadcast %48 : vector<1x64xf32> to vector<8x64xf32>
    %50 = arith.mulf %45, %49 : vector<8x64xf32>
    %51 = arith.addf %40, %50 : vector<8x64xf32>
    %c2_i32 = arith.constant 2 : i32
    %52 = tpu.dynamic_rotate %32 by %c2_i32 dim 0 : vector<8x64xf32>, i32 -> vector<8x64xf32>
    %c2_i32_19 = arith.constant 2 : i32
    %53 = vector.broadcast %c2_i32_19 : i32 to vector<8x64xi32>
    %54 = arith.cmpi sge, %0, %53 : vector<8x64xi32>
    %cst_20 = arith.constant 0.000000e+00 : f32
    %55 = vector.broadcast %cst_20 : f32 to vector<8x64xf32>
    %56 = arith.select %54, %52, %55 : vector<8x64xi1>, vector<8x64xf32>
    %57 = vector.extract_strided_slice %35 {offsets = [1, 0], sizes = [1, 64], strides = [1, 1]} : vector<4x64xf32> to vector<1x64xf32>
    %58 = vector.shape_cast %57 : vector<1x64xf32> to vector<64xf32>
    %59 = vector.shape_cast %58 : vector<64xf32> to vector<1x64xf32>
    %60 = vector.broadcast %59 : vector<1x64xf32> to vector<8x64xf32>
    %61 = arith.mulf %56, %60 : vector<8x64xf32>
    %62 = arith.addf %51, %61 : vector<8x64xf32>
    %c1_i32 = arith.constant 1 : i32
    %63 = tpu.dynamic_rotate %32 by %c1_i32 dim 0 : vector<8x64xf32>, i32 -> vector<8x64xf32>
    %c1_i32_21 = arith.constant 1 : i32
    %64 = vector.broadcast %c1_i32_21 : i32 to vector<8x64xi32>
    %65 = arith.cmpi sge, %0, %64 : vector<8x64xi32>
    %cst_22 = arith.constant 0.000000e+00 : f32
    %66 = vector.broadcast %cst_22 : f32 to vector<8x64xf32>
    %67 = arith.select %65, %63, %66 : vector<8x64xi1>, vector<8x64xf32>
    %68 = vector.extract_strided_slice %35 {offsets = [2, 0], sizes = [1, 64], strides = [1, 1]} : vector<4x64xf32> to vector<1x64xf32>
    %69 = vector.shape_cast %68 : vector<1x64xf32> to vector<64xf32>
    %70 = vector.shape_cast %69 : vector<64xf32> to vector<1x64xf32>
    %71 = vector.broadcast %70 : vector<1x64xf32> to vector<8x64xf32>
    %72 = arith.mulf %67, %71 : vector<8x64xf32>
    %73 = arith.addf %62, %72 : vector<8x64xf32>
    %c0_23 = arith.constant 0 : index
    %c0_24 = arith.constant 0 : index
    %74 = vector.load %arg5[%c0_23, %c0_24] : memref<2x64xf32, #tpu.memory_space<vmem>>, vector<1x64xf32>
    %75 = vector.shape_cast %74 : vector<1x64xf32> to vector<64xf32>
    %76 = vector.shape_cast %75 : vector<64xf32> to vector<1x64xf32>
    %77 = vector.broadcast %76 : vector<1x64xf32> to vector<8x64xf32>
    %78 = arith.addf %73, %77 : vector<8x64xf32>
    %79 = arith.negf %78 : vector<8x64xf32>
    %80 = math.exp %79 : vector<8x64xf32>
    %cst_25 = arith.constant 1.000000e+00 : f32
    %81 = vector.broadcast %cst_25 : f32 to vector<8x64xf32>
    %82 = arith.addf %81, %80 : vector<8x64xf32>
    %83 = arith.divf %81, %82 : vector<8x64xf32>
    %84 = arith.mulf %78, %83 : vector<8x64xf32>
    %c0_26 = arith.constant 0 : index
    %c0_27 = arith.constant 0 : index
    %c0_28 = arith.constant 0 : index
    %85 = vector.load %arg6[%c0_26, %c0_27, %c0_28] : memref<2x64x96xf32, #tpu.memory_space<vmem>>, vector<1x64x96xf32>
    %86 = vector.shape_cast %85 : vector<1x64x96xf32> to vector<64x96xf32>
    %cst_29 = arith.constant dense<0.000000e+00> : vector<8x96xf32>
    %87 = tpu.matmul %84, %86, %cst_29 {dimension_numbers = #tpu.dot_dimension_numbers<[1], [0], [0], [1], [0, 0, 1, 1], [], []>} : vector<8x64xf32>, vector<64x96xf32>, vector<8x96xf32> -> vector<8x96xf32>
    %88 = vector.extract_strided_slice %87 {offsets = [0, 0], sizes = [8, 64], strides = [1, 1]} : vector<8x96xf32> to vector<8x64xf32>
    %c0_30 = arith.constant 0 : index
    %c0_31 = arith.constant 0 : index
    %89 = vector.load %arg7[%c0_30, %c0_31] : memref<2x64xf32, #tpu.memory_space<vmem>>, vector<1x64xf32>
    %90 = vector.shape_cast %89 : vector<1x64xf32> to vector<64xf32>
    %91 = vector.shape_cast %90 : vector<64xf32> to vector<1x64xf32>
    %92 = vector.broadcast %91 : vector<1x64xf32> to vector<8x64xf32>
    %93 = arith.addf %88, %92 : vector<8x64xf32>
    %cst_32 = arith.constant 0.000000e+00 : f32
    %94 = vector.broadcast %cst_32 : f32 to vector<8x64xf32>
    %95 = arith.maximumf %93, %94 : vector<8x64xf32>
    %96 = vector.broadcast %cst_32 : f32 to vector<8x64xf32>
    %97 = arith.subf %93, %96 : vector<8x64xf32>
    %98 = arith.cmpf one, %97, %97 : vector<8x64xf32>
    %99 = vector.broadcast %cst_32 : f32 to vector<8x64xf32>
    %100 = arith.addf %93, %99 : vector<8x64xf32>
    %101 = math.absf %97 : vector<8x64xf32>
    %cst_33 = arith.constant 0.000000e+00 : f32
    %102 = vector.broadcast %cst_33 : f32 to vector<8x64xf32>
    %103 = arith.subf %102, %101 : vector<8x64xf32>
    %104 = math.exp %103 : vector<8x64xf32>
    %105 = math.log1p %104 : vector<8x64xf32>
    %106 = arith.addf %95, %105 : vector<8x64xf32>
    %107 = arith.select %98, %100, %106 : vector<8x64xi1>, vector<8x64xf32>
    %108 = vector.extract_strided_slice %87 {offsets = [0, 64], sizes = [8, 16], strides = [1, 1]} : vector<8x96xf32> to vector<8x16xf32>
    %109 = vector.extract_strided_slice %87 {offsets = [0, 80], sizes = [8, 16], strides = [1, 1]} : vector<8x96xf32> to vector<8x16xf32>
    %c0_34 = arith.constant 0 : index
    %c0_35 = arith.constant 0 : index
    %c0_36 = arith.constant 0 : index
    %110 = vector.load %arg8[%c0_34, %c0_35, %c0_36] : memref<2x16x64xf32, #tpu.memory_space<vmem>>, vector<1x16x64xf32>
    %111 = vector.shape_cast %110 : vector<1x16x64xf32> to vector<16x64xf32>
    %112 = math.exp %111 : vector<16x64xf32>
    %cst_37 = arith.constant 0.000000e+00 : f32
    %113 = vector.broadcast %cst_37 : f32 to vector<16x64xf32>
    %114 = arith.subf %113, %112 : vector<16x64xf32>
    %115 = vector.shape_cast %107 : vector<8x64xf32> to vector<8x1x64xf32>
    %116 = vector.shape_cast %114 : vector<16x64xf32> to vector<1x16x64xf32>
    %117 = vector.broadcast %115 : vector<8x1x64xf32> to vector<8x16x64xf32>
    %118 = vector.broadcast %116 : vector<1x16x64xf32> to vector<8x16x64xf32>
    %119 = arith.mulf %117, %118 : vector<8x16x64xf32>
    %120 = math.exp %119 : vector<8x16x64xf32>
    %121 = arith.mulf %107, %84 : vector<8x64xf32>
    %122 = tpu.transpose %108, [1, 0] : vector<8x16xf32> -> vector<16x8xf32>
    %123 = tpu.transpose %109, [1, 0] : vector<8x16xf32> -> vector<16x8xf32>
    %cst_38 = arith.constant 0.000000e+00 : f32
    %124 = vector.broadcast %cst_38 : f32 to vector<16x64xf32>
    %125 = vector.extract_strided_slice %121 {offsets = [0, 0], sizes = [1, 64], strides = [1, 1]} : vector<8x64xf32> to vector<1x64xf32>
    %126 = vector.extract_strided_slice %122 {offsets = [0, 0], sizes = [16, 1], strides = [1, 1]} : vector<16x8xf32> to vector<16x1xf32>
    %127 = vector.broadcast %125 : vector<1x64xf32> to vector<16x64xf32>
    %128 = vector.broadcast %126 : vector<16x1xf32> to vector<16x64xf32>
    %129 = arith.mulf %127, %128 : vector<16x64xf32>
    %130 = vector.extract_strided_slice %120 {offsets = [0, 0, 0], sizes = [1, 16, 64], strides = [1, 1, 1]} : vector<8x16x64xf32> to vector<1x16x64xf32>
    %131 = vector.shape_cast %130 : vector<1x16x64xf32> to vector<16x64xf32>
    %132 = arith.mulf %131, %124 : vector<16x64xf32>
    %133 = arith.addf %132, %129 : vector<16x64xf32>
    %134 = vector.extract_strided_slice %123 {offsets = [0, 0], sizes = [16, 1], strides = [1, 1]} : vector<16x8xf32> to vector<16x1xf32>
    %135 = vector.broadcast %134 : vector<16x1xf32> to vector<16x64xf32>
    %136 = arith.mulf %133, %135 : vector<16x64xf32>
    %cst_39 = arith.constant dense<0.000000e+00> : vector<64xf32>
    %137 = vector.multi_reduction <add>, %136, %cst_39 [0] : vector<16x64xf32> to vector<64xf32>
    %138 = vector.shape_cast %137 : vector<64xf32> to vector<1x64xf32>
    %139 = vector.extract_strided_slice %121 {offsets = [1, 0], sizes = [1, 64], strides = [1, 1]} : vector<8x64xf32> to vector<1x64xf32>
    %140 = vector.extract_strided_slice %122 {offsets = [0, 1], sizes = [16, 1], strides = [1, 1]} : vector<16x8xf32> to vector<16x1xf32>
    %141 = vector.broadcast %139 : vector<1x64xf32> to vector<16x64xf32>
    %142 = vector.broadcast %140 : vector<16x1xf32> to vector<16x64xf32>
    %143 = arith.mulf %141, %142 : vector<16x64xf32>
    %144 = vector.extract_strided_slice %120 {offsets = [1, 0, 0], sizes = [1, 16, 64], strides = [1, 1, 1]} : vector<8x16x64xf32> to vector<1x16x64xf32>
    %145 = vector.shape_cast %144 : vector<1x16x64xf32> to vector<16x64xf32>
    %146 = arith.mulf %145, %133 : vector<16x64xf32>
    %147 = arith.addf %146, %143 : vector<16x64xf32>
    %148 = vector.extract_strided_slice %123 {offsets = [0, 1], sizes = [16, 1], strides = [1, 1]} : vector<16x8xf32> to vector<16x1xf32>
    %149 = vector.broadcast %148 : vector<16x1xf32> to vector<16x64xf32>
    %150 = arith.mulf %147, %149 : vector<16x64xf32>
    %cst_40 = arith.constant dense<0.000000e+00> : vector<64xf32>
    %151 = vector.multi_reduction <add>, %150, %cst_40 [0] : vector<16x64xf32> to vector<64xf32>
    %152 = vector.shape_cast %151 : vector<64xf32> to vector<1x64xf32>
    %153 = vector.extract_strided_slice %121 {offsets = [2, 0], sizes = [1, 64], strides = [1, 1]} : vector<8x64xf32> to vector<1x64xf32>
    %154 = vector.extract_strided_slice %122 {offsets = [0, 2], sizes = [16, 1], strides = [1, 1]} : vector<16x8xf32> to vector<16x1xf32>
    %155 = vector.broadcast %153 : vector<1x64xf32> to vector<16x64xf32>
    %156 = vector.broadcast %154 : vector<16x1xf32> to vector<16x64xf32>
    %157 = arith.mulf %155, %156 : vector<16x64xf32>
    %158 = vector.extract_strided_slice %120 {offsets = [2, 0, 0], sizes = [1, 16, 64], strides = [1, 1, 1]} : vector<8x16x64xf32> to vector<1x16x64xf32>
    %159 = vector.shape_cast %158 : vector<1x16x64xf32> to vector<16x64xf32>
    %160 = arith.mulf %159, %147 : vector<16x64xf32>
    %161 = arith.addf %160, %157 : vector<16x64xf32>
    %162 = vector.extract_strided_slice %123 {offsets = [0, 2], sizes = [16, 1], strides = [1, 1]} : vector<16x8xf32> to vector<16x1xf32>
    %163 = vector.broadcast %162 : vector<16x1xf32> to vector<16x64xf32>
    %164 = arith.mulf %161, %163 : vector<16x64xf32>
    %cst_41 = arith.constant dense<0.000000e+00> : vector<64xf32>
    %165 = vector.multi_reduction <add>, %164, %cst_41 [0] : vector<16x64xf32> to vector<64xf32>
    %166 = vector.shape_cast %165 : vector<64xf32> to vector<1x64xf32>
    %167 = vector.extract_strided_slice %121 {offsets = [3, 0], sizes = [1, 64], strides = [1, 1]} : vector<8x64xf32> to vector<1x64xf32>
    %168 = vector.extract_strided_slice %122 {offsets = [0, 3], sizes = [16, 1], strides = [1, 1]} : vector<16x8xf32> to vector<16x1xf32>
    %169 = vector.broadcast %167 : vector<1x64xf32> to vector<16x64xf32>
    %170 = vector.broadcast %168 : vector<16x1xf32> to vector<16x64xf32>
    %171 = arith.mulf %169, %170 : vector<16x64xf32>
    %172 = vector.extract_strided_slice %120 {offsets = [3, 0, 0], sizes = [1, 16, 64], strides = [1, 1, 1]} : vector<8x16x64xf32> to vector<1x16x64xf32>
    %173 = vector.shape_cast %172 : vector<1x16x64xf32> to vector<16x64xf32>
    %174 = arith.mulf %173, %161 : vector<16x64xf32>
    %175 = arith.addf %174, %171 : vector<16x64xf32>
    %176 = vector.extract_strided_slice %123 {offsets = [0, 3], sizes = [16, 1], strides = [1, 1]} : vector<16x8xf32> to vector<16x1xf32>
    %177 = vector.broadcast %176 : vector<16x1xf32> to vector<16x64xf32>
    %178 = arith.mulf %175, %177 : vector<16x64xf32>
    %cst_42 = arith.constant dense<0.000000e+00> : vector<64xf32>
    %179 = vector.multi_reduction <add>, %178, %cst_42 [0] : vector<16x64xf32> to vector<64xf32>
    %180 = vector.shape_cast %179 : vector<64xf32> to vector<1x64xf32>
    %181 = vector.extract_strided_slice %121 {offsets = [4, 0], sizes = [1, 64], strides = [1, 1]} : vector<8x64xf32> to vector<1x64xf32>
    %182 = vector.extract_strided_slice %122 {offsets = [0, 4], sizes = [16, 1], strides = [1, 1]} : vector<16x8xf32> to vector<16x1xf32>
    %183 = vector.broadcast %181 : vector<1x64xf32> to vector<16x64xf32>
    %184 = vector.broadcast %182 : vector<16x1xf32> to vector<16x64xf32>
    %185 = arith.mulf %183, %184 : vector<16x64xf32>
    %186 = vector.extract_strided_slice %120 {offsets = [4, 0, 0], sizes = [1, 16, 64], strides = [1, 1, 1]} : vector<8x16x64xf32> to vector<1x16x64xf32>
    %187 = vector.shape_cast %186 : vector<1x16x64xf32> to vector<16x64xf32>
    %188 = arith.mulf %187, %175 : vector<16x64xf32>
    %189 = arith.addf %188, %185 : vector<16x64xf32>
    %190 = vector.extract_strided_slice %123 {offsets = [0, 4], sizes = [16, 1], strides = [1, 1]} : vector<16x8xf32> to vector<16x1xf32>
    %191 = vector.broadcast %190 : vector<16x1xf32> to vector<16x64xf32>
    %192 = arith.mulf %189, %191 : vector<16x64xf32>
    %cst_43 = arith.constant dense<0.000000e+00> : vector<64xf32>
    %193 = vector.multi_reduction <add>, %192, %cst_43 [0] : vector<16x64xf32> to vector<64xf32>
    %194 = vector.shape_cast %193 : vector<64xf32> to vector<1x64xf32>
    %195 = vector.extract_strided_slice %121 {offsets = [5, 0], sizes = [1, 64], strides = [1, 1]} : vector<8x64xf32> to vector<1x64xf32>
    %196 = vector.extract_strided_slice %122 {offsets = [0, 5], sizes = [16, 1], strides = [1, 1]} : vector<16x8xf32> to vector<16x1xf32>
    %197 = vector.broadcast %195 : vector<1x64xf32> to vector<16x64xf32>
    %198 = vector.broadcast %196 : vector<16x1xf32> to vector<16x64xf32>
    %199 = arith.mulf %197, %198 : vector<16x64xf32>
    %200 = vector.extract_strided_slice %120 {offsets = [5, 0, 0], sizes = [1, 16, 64], strides = [1, 1, 1]} : vector<8x16x64xf32> to vector<1x16x64xf32>
    %201 = vector.shape_cast %200 : vector<1x16x64xf32> to vector<16x64xf32>
    %202 = arith.mulf %201, %189 : vector<16x64xf32>
    %203 = arith.addf %202, %199 : vector<16x64xf32>
    %204 = vector.extract_strided_slice %123 {offsets = [0, 5], sizes = [16, 1], strides = [1, 1]} : vector<16x8xf32> to vector<16x1xf32>
    %205 = vector.broadcast %204 : vector<16x1xf32> to vector<16x64xf32>
    %206 = arith.mulf %203, %205 : vector<16x64xf32>
    %cst_44 = arith.constant dense<0.000000e+00> : vector<64xf32>
    %207 = vector.multi_reduction <add>, %206, %cst_44 [0] : vector<16x64xf32> to vector<64xf32>
    %208 = vector.shape_cast %207 : vector<64xf32> to vector<1x64xf32>
    %209 = vector.extract_strided_slice %121 {offsets = [6, 0], sizes = [1, 64], strides = [1, 1]} : vector<8x64xf32> to vector<1x64xf32>
    %210 = vector.extract_strided_slice %122 {offsets = [0, 6], sizes = [16, 1], strides = [1, 1]} : vector<16x8xf32> to vector<16x1xf32>
    %211 = vector.broadcast %209 : vector<1x64xf32> to vector<16x64xf32>
    %212 = vector.broadcast %210 : vector<16x1xf32> to vector<16x64xf32>
    %213 = arith.mulf %211, %212 : vector<16x64xf32>
    %214 = vector.extract_strided_slice %120 {offsets = [6, 0, 0], sizes = [1, 16, 64], strides = [1, 1, 1]} : vector<8x16x64xf32> to vector<1x16x64xf32>
    %215 = vector.shape_cast %214 : vector<1x16x64xf32> to vector<16x64xf32>
    %216 = arith.mulf %215, %203 : vector<16x64xf32>
    %217 = arith.addf %216, %213 : vector<16x64xf32>
    %218 = vector.extract_strided_slice %123 {offsets = [0, 6], sizes = [16, 1], strides = [1, 1]} : vector<16x8xf32> to vector<16x1xf32>
    %219 = vector.broadcast %218 : vector<16x1xf32> to vector<16x64xf32>
    %220 = arith.mulf %217, %219 : vector<16x64xf32>
    %cst_45 = arith.constant dense<0.000000e+00> : vector<64xf32>
    %221 = vector.multi_reduction <add>, %220, %cst_45 [0] : vector<16x64xf32> to vector<64xf32>
    %222 = vector.shape_cast %221 : vector<64xf32> to vector<1x64xf32>
    %223 = vector.extract_strided_slice %121 {offsets = [7, 0], sizes = [1, 64], strides = [1, 1]} : vector<8x64xf32> to vector<1x64xf32>
    %224 = vector.extract_strided_slice %122 {offsets = [0, 7], sizes = [16, 1], strides = [1, 1]} : vector<16x8xf32> to vector<16x1xf32>
    %225 = vector.broadcast %223 : vector<1x64xf32> to vector<16x64xf32>
    %226 = vector.broadcast %224 : vector<16x1xf32> to vector<16x64xf32>
    %227 = arith.mulf %225, %226 : vector<16x64xf32>
    %228 = vector.extract_strided_slice %120 {offsets = [7, 0, 0], sizes = [1, 16, 64], strides = [1, 1, 1]} : vector<8x16x64xf32> to vector<1x16x64xf32>
    %229 = vector.shape_cast %228 : vector<1x16x64xf32> to vector<16x64xf32>
    %230 = arith.mulf %229, %217 : vector<16x64xf32>
    %231 = arith.addf %230, %227 : vector<16x64xf32>
    %232 = vector.extract_strided_slice %123 {offsets = [0, 7], sizes = [16, 1], strides = [1, 1]} : vector<16x8xf32> to vector<16x1xf32>
    %233 = vector.broadcast %232 : vector<16x1xf32> to vector<16x64xf32>
    %234 = arith.mulf %231, %233 : vector<16x64xf32>
    %cst_46 = arith.constant dense<0.000000e+00> : vector<64xf32>
    %235 = vector.multi_reduction <add>, %234, %cst_46 [0] : vector<16x64xf32> to vector<64xf32>
    %236 = vector.shape_cast %235 : vector<64xf32> to vector<1x64xf32>
    %237 = tpu.concatenate %138, %152, %166, %180, %194, %208, %222, %236 in 0 : vector<1x64xf32>, vector<1x64xf32>, vector<1x64xf32>, vector<1x64xf32>, vector<1x64xf32>, vector<1x64xf32>, vector<1x64xf32>, vector<1x64xf32> -> vector<8x64xf32>
    %c0_47 = arith.constant 0 : index
    %c0_48 = arith.constant 0 : index
    %238 = vector.load %arg9[%c0_47, %c0_48] : memref<2x64xf32, #tpu.memory_space<vmem>>, vector<1x64xf32>
    %239 = vector.shape_cast %238 : vector<1x64xf32> to vector<64xf32>
    %240 = vector.shape_cast %239 : vector<64xf32> to vector<1x64xf32>
    %241 = vector.broadcast %240 : vector<1x64xf32> to vector<8x64xf32>
    %242 = arith.mulf %84, %241 : vector<8x64xf32>
    %243 = arith.addf %237, %242 : vector<8x64xf32>
    %244 = arith.negf %33 : vector<8x64xf32>
    %245 = math.exp %244 : vector<8x64xf32>
    %cst_49 = arith.constant 1.000000e+00 : f32
    %246 = vector.broadcast %cst_49 : f32 to vector<8x64xf32>
    %247 = arith.addf %246, %245 : vector<8x64xf32>
    %248 = arith.divf %246, %247 : vector<8x64xf32>
    %249 = arith.mulf %33, %248 : vector<8x64xf32>
    %250 = arith.mulf %243, %249 : vector<8x64xf32>
    %c0_50 = arith.constant 0 : index
    %c0_51 = arith.constant 0 : index
    %c0_52 = arith.constant 0 : index
    %251 = vector.load %arg10[%c0_50, %c0_51, %c0_52] : memref<2x64x32xf32, #tpu.memory_space<vmem>>, vector<1x64x32xf32>
    %252 = vector.shape_cast %251 : vector<1x64x32xf32> to vector<64x32xf32>
    %cst_53 = arith.constant dense<0.000000e+00> : vector<8x32xf32>
    %253 = tpu.matmul %250, %252, %cst_53 {dimension_numbers = #tpu.dot_dimension_numbers<[1], [0], [0], [1], [0, 0, 1, 1], [], []>} : vector<8x64xf32>, vector<64x32xf32>, vector<8x32xf32> -> vector<8x32xf32>
    %254 = arith.addf %253, %2 : vector<8x32xf32>
    %c0_54 = arith.constant 0 : index
    %c0_55 = arith.constant 0 : index
    %255 = vector.load %arg11[%c0_54, %c0_55] : memref<2x32xf32, #tpu.memory_space<vmem>>, vector<1x32xf32>
    %256 = vector.shape_cast %255 : vector<1x32xf32> to vector<32xf32>
    %c0_56 = arith.constant 0 : index
    %c0_57 = arith.constant 0 : index
    %257 = vector.load %arg12[%c0_56, %c0_57] : memref<2x32xf32, #tpu.memory_space<vmem>>, vector<1x32xf32>
    %258 = vector.shape_cast %257 : vector<1x32xf32> to vector<32xf32>
    %cst_58 = arith.constant dense<0.000000e+00> : vector<8xf32>
    %259 = vector.multi_reduction <add>, %254, %cst_58 [1] : vector<8x32xf32> to vector<8xf32>
    %260 = vector.shape_cast %259 : vector<8xf32> to vector<8x1xf32>
    %cst_59 = arith.constant 3.200000e+01 : f32
    %261 = vector.broadcast %cst_59 : f32 to vector<8x1xf32>
    %262 = arith.divf %260, %261 : vector<8x1xf32>
    %263 = vector.broadcast %262 : vector<8x1xf32> to vector<8x32xf32>
    %264 = arith.subf %254, %263 : vector<8x32xf32>
    %265 = arith.mulf %264, %264 : vector<8x32xf32>
    %cst_60 = arith.constant dense<0.000000e+00> : vector<8xf32>
    %266 = vector.multi_reduction <add>, %265, %cst_60 [1] : vector<8x32xf32> to vector<8xf32>
    %267 = vector.shape_cast %266 : vector<8xf32> to vector<8x1xf32>
    %cst_61 = arith.constant 3.200000e+01 : f32
    %268 = vector.broadcast %cst_61 : f32 to vector<8x1xf32>
    %269 = arith.divf %267, %268 : vector<8x1xf32>
    %cst_62 = arith.constant 9.99999974E-6 : f32
    %270 = vector.broadcast %cst_62 : f32 to vector<8x1xf32>
    %271 = arith.addf %269, %270 : vector<8x1xf32>
    %272 = math.rsqrt %271 : vector<8x1xf32>
    %273 = vector.broadcast %272 : vector<8x1xf32> to vector<8x32xf32>
    %274 = arith.mulf %264, %273 : vector<8x32xf32>
    %275 = vector.shape_cast %256 : vector<32xf32> to vector<1x32xf32>
    %276 = vector.broadcast %275 : vector<1x32xf32> to vector<8x32xf32>
    %277 = arith.mulf %274, %276 : vector<8x32xf32>
    %278 = vector.shape_cast %258 : vector<32xf32> to vector<1x32xf32>
    %279 = vector.broadcast %278 : vector<1x32xf32> to vector<8x32xf32>
    %280 = arith.addf %277, %279 : vector<8x32xf32>
    %c0_63 = arith.constant 0 : index
    %c0_64 = arith.constant 0 : index
    %c0_65 = arith.constant 0 : index
    %281 = vector.load %arg13[%c0_63, %c0_64, %c0_65] : memref<2x32x256xf32, #tpu.memory_space<vmem>>, vector<1x32x256xf32>
    %282 = vector.shape_cast %281 : vector<1x32x256xf32> to vector<32x256xf32>
    %cst_66 = arith.constant dense<0.000000e+00> : vector<8x256xf32>
    %283 = tpu.matmul %280, %282, %cst_66 {dimension_numbers = #tpu.dot_dimension_numbers<[1], [0], [0], [1], [0, 0, 1, 1], [], []>} : vector<8x32xf32>, vector<32x256xf32>, vector<8x256xf32> -> vector<8x256xf32>
    %284 = vector.extract_strided_slice %283 {offsets = [0, 0], sizes = [8, 128], strides = [1, 1]} : vector<8x256xf32> to vector<8x128xf32>
    %285 = vector.extract_strided_slice %283 {offsets = [0, 128], sizes = [8, 128], strides = [1, 1]} : vector<8x256xf32> to vector<8x128xf32>
    %286 = arith.negf %285 : vector<8x128xf32>
    %287 = math.exp %286 : vector<8x128xf32>
    %cst_67 = arith.constant 1.000000e+00 : f32
    %288 = vector.broadcast %cst_67 : f32 to vector<8x128xf32>
    %289 = arith.addf %288, %287 : vector<8x128xf32>
    %290 = arith.divf %288, %289 : vector<8x128xf32>
    %291 = arith.mulf %285, %290 : vector<8x128xf32>
    %292 = arith.mulf %284, %291 : vector<8x128xf32>
    %c0_68 = arith.constant 0 : index
    %c0_69 = arith.constant 0 : index
    %c0_70 = arith.constant 0 : index
    %293 = vector.load %arg14[%c0_68, %c0_69, %c0_70] : memref<2x128x32xf32, #tpu.memory_space<vmem>>, vector<1x128x32xf32>
    %294 = vector.shape_cast %293 : vector<1x128x32xf32> to vector<128x32xf32>
    %cst_71 = arith.constant dense<0.000000e+00> : vector<8x32xf32>
    %295 = tpu.matmul %292, %294, %cst_71 {dimension_numbers = #tpu.dot_dimension_numbers<[1], [0], [0], [1], [0, 0, 1, 1], [], []>} : vector<8x128xf32>, vector<128x32xf32>, vector<8x32xf32> -> vector<8x32xf32>
    %296 = arith.addf %295, %254 : vector<8x32xf32>
    %c1 = arith.constant 1 : index
    %c0_72 = arith.constant 0 : index
    %297 = vector.load %arg1[%c1, %c0_72] : memref<2x32xf32, #tpu.memory_space<vmem>>, vector<1x32xf32>
    %298 = vector.shape_cast %297 : vector<1x32xf32> to vector<32xf32>
    %c1_73 = arith.constant 1 : index
    %c0_74 = arith.constant 0 : index
    %299 = vector.load %arg2[%c1_73, %c0_74] : memref<2x32xf32, #tpu.memory_space<vmem>>, vector<1x32xf32>
    %300 = vector.shape_cast %299 : vector<1x32xf32> to vector<32xf32>
    %cst_75 = arith.constant dense<0.000000e+00> : vector<8xf32>
    %301 = vector.multi_reduction <add>, %296, %cst_75 [1] : vector<8x32xf32> to vector<8xf32>
    %302 = vector.shape_cast %301 : vector<8xf32> to vector<8x1xf32>
    %cst_76 = arith.constant 3.200000e+01 : f32
    %303 = vector.broadcast %cst_76 : f32 to vector<8x1xf32>
    %304 = arith.divf %302, %303 : vector<8x1xf32>
    %305 = vector.broadcast %304 : vector<8x1xf32> to vector<8x32xf32>
    %306 = arith.subf %296, %305 : vector<8x32xf32>
    %307 = arith.mulf %306, %306 : vector<8x32xf32>
    %cst_77 = arith.constant dense<0.000000e+00> : vector<8xf32>
    %308 = vector.multi_reduction <add>, %307, %cst_77 [1] : vector<8x32xf32> to vector<8xf32>
    %309 = vector.shape_cast %308 : vector<8xf32> to vector<8x1xf32>
    %cst_78 = arith.constant 3.200000e+01 : f32
    %310 = vector.broadcast %cst_78 : f32 to vector<8x1xf32>
    %311 = arith.divf %309, %310 : vector<8x1xf32>
    %cst_79 = arith.constant 9.99999974E-6 : f32
    %312 = vector.broadcast %cst_79 : f32 to vector<8x1xf32>
    %313 = arith.addf %311, %312 : vector<8x1xf32>
    %314 = math.rsqrt %313 : vector<8x1xf32>
    %315 = vector.broadcast %314 : vector<8x1xf32> to vector<8x32xf32>
    %316 = arith.mulf %306, %315 : vector<8x32xf32>
    %317 = vector.shape_cast %298 : vector<32xf32> to vector<1x32xf32>
    %318 = vector.broadcast %317 : vector<1x32xf32> to vector<8x32xf32>
    %319 = arith.mulf %316, %318 : vector<8x32xf32>
    %320 = vector.shape_cast %300 : vector<32xf32> to vector<1x32xf32>
    %321 = vector.broadcast %320 : vector<1x32xf32> to vector<8x32xf32>
    %322 = arith.addf %319, %321 : vector<8x32xf32>
    %c1_80 = arith.constant 1 : index
    %c0_81 = arith.constant 0 : index
    %c0_82 = arith.constant 0 : index
    %323 = vector.load %arg3[%c1_80, %c0_81, %c0_82] : memref<2x32x128xf32, #tpu.memory_space<vmem>>, vector<1x32x128xf32>
    %324 = vector.shape_cast %323 : vector<1x32x128xf32> to vector<32x128xf32>
    %cst_83 = arith.constant dense<0.000000e+00> : vector<8x128xf32>
    %325 = tpu.matmul %322, %324, %cst_83 {dimension_numbers = #tpu.dot_dimension_numbers<[1], [0], [0], [1], [0, 0, 1, 1], [], []>} : vector<8x32xf32>, vector<32x128xf32>, vector<8x128xf32> -> vector<8x128xf32>
    %326 = vector.extract_strided_slice %325 {offsets = [0, 0], sizes = [8, 64], strides = [1, 1]} : vector<8x128xf32> to vector<8x64xf32>
    %327 = vector.extract_strided_slice %325 {offsets = [0, 64], sizes = [8, 64], strides = [1, 1]} : vector<8x128xf32> to vector<8x64xf32>
    %c1_84 = arith.constant 1 : index
    %c0_85 = arith.constant 0 : index
    %c0_86 = arith.constant 0 : index
    %328 = vector.load %arg4[%c1_84, %c0_85, %c0_86] : memref<2x4x64xf32, #tpu.memory_space<vmem>>, vector<1x4x64xf32>
    %329 = vector.shape_cast %328 : vector<1x4x64xf32> to vector<4x64xf32>
    %330 = vector.extract_strided_slice %329 {offsets = [3, 0], sizes = [1, 64], strides = [1, 1]} : vector<4x64xf32> to vector<1x64xf32>
    %331 = vector.shape_cast %330 : vector<1x64xf32> to vector<64xf32>
    %332 = vector.shape_cast %331 : vector<64xf32> to vector<1x64xf32>
    %333 = vector.broadcast %332 : vector<1x64xf32> to vector<8x64xf32>
    %334 = arith.mulf %326, %333 : vector<8x64xf32>
    %c3_i32_87 = arith.constant 3 : i32
    %335 = tpu.dynamic_rotate %326 by %c3_i32_87 dim 0 : vector<8x64xf32>, i32 -> vector<8x64xf32>
    %c3_i32_88 = arith.constant 3 : i32
    %336 = vector.broadcast %c3_i32_88 : i32 to vector<8x64xi32>
    %337 = arith.cmpi sge, %0, %336 : vector<8x64xi32>
    %cst_89 = arith.constant 0.000000e+00 : f32
    %338 = vector.broadcast %cst_89 : f32 to vector<8x64xf32>
    %339 = arith.select %337, %335, %338 : vector<8x64xi1>, vector<8x64xf32>
    %340 = vector.extract_strided_slice %329 {offsets = [0, 0], sizes = [1, 64], strides = [1, 1]} : vector<4x64xf32> to vector<1x64xf32>
    %341 = vector.shape_cast %340 : vector<1x64xf32> to vector<64xf32>
    %342 = vector.shape_cast %341 : vector<64xf32> to vector<1x64xf32>
    %343 = vector.broadcast %342 : vector<1x64xf32> to vector<8x64xf32>
    %344 = arith.mulf %339, %343 : vector<8x64xf32>
    %345 = arith.addf %334, %344 : vector<8x64xf32>
    %c2_i32_90 = arith.constant 2 : i32
    %346 = tpu.dynamic_rotate %326 by %c2_i32_90 dim 0 : vector<8x64xf32>, i32 -> vector<8x64xf32>
    %c2_i32_91 = arith.constant 2 : i32
    %347 = vector.broadcast %c2_i32_91 : i32 to vector<8x64xi32>
    %348 = arith.cmpi sge, %0, %347 : vector<8x64xi32>
    %cst_92 = arith.constant 0.000000e+00 : f32
    %349 = vector.broadcast %cst_92 : f32 to vector<8x64xf32>
    %350 = arith.select %348, %346, %349 : vector<8x64xi1>, vector<8x64xf32>
    %351 = vector.extract_strided_slice %329 {offsets = [1, 0], sizes = [1, 64], strides = [1, 1]} : vector<4x64xf32> to vector<1x64xf32>
    %352 = vector.shape_cast %351 : vector<1x64xf32> to vector<64xf32>
    %353 = vector.shape_cast %352 : vector<64xf32> to vector<1x64xf32>
    %354 = vector.broadcast %353 : vector<1x64xf32> to vector<8x64xf32>
    %355 = arith.mulf %350, %354 : vector<8x64xf32>
    %356 = arith.addf %345, %355 : vector<8x64xf32>
    %c1_i32_93 = arith.constant 1 : i32
    %357 = tpu.dynamic_rotate %326 by %c1_i32_93 dim 0 : vector<8x64xf32>, i32 -> vector<8x64xf32>
    %c1_i32_94 = arith.constant 1 : i32
    %358 = vector.broadcast %c1_i32_94 : i32 to vector<8x64xi32>
    %359 = arith.cmpi sge, %0, %358 : vector<8x64xi32>
    %cst_95 = arith.constant 0.000000e+00 : f32
    %360 = vector.broadcast %cst_95 : f32 to vector<8x64xf32>
    %361 = arith.select %359, %357, %360 : vector<8x64xi1>, vector<8x64xf32>
    %362 = vector.extract_strided_slice %329 {offsets = [2, 0], sizes = [1, 64], strides = [1, 1]} : vector<4x64xf32> to vector<1x64xf32>
    %363 = vector.shape_cast %362 : vector<1x64xf32> to vector<64xf32>
    %364 = vector.shape_cast %363 : vector<64xf32> to vector<1x64xf32>
    %365 = vector.broadcast %364 : vector<1x64xf32> to vector<8x64xf32>
    %366 = arith.mulf %361, %365 : vector<8x64xf32>
    %367 = arith.addf %356, %366 : vector<8x64xf32>
    %c1_96 = arith.constant 1 : index
    %c0_97 = arith.constant 0 : index
    %368 = vector.load %arg5[%c1_96, %c0_97] : memref<2x64xf32, #tpu.memory_space<vmem>>, vector<1x64xf32>
    %369 = vector.shape_cast %368 : vector<1x64xf32> to vector<64xf32>
    %370 = vector.shape_cast %369 : vector<64xf32> to vector<1x64xf32>
    %371 = vector.broadcast %370 : vector<1x64xf32> to vector<8x64xf32>
    %372 = arith.addf %367, %371 : vector<8x64xf32>
    %373 = arith.negf %372 : vector<8x64xf32>
    %374 = math.exp %373 : vector<8x64xf32>
    %cst_98 = arith.constant 1.000000e+00 : f32
    %375 = vector.broadcast %cst_98 : f32 to vector<8x64xf32>
    %376 = arith.addf %375, %374 : vector<8x64xf32>
    %377 = arith.divf %375, %376 : vector<8x64xf32>
    %378 = arith.mulf %372, %377 : vector<8x64xf32>
    %c1_99 = arith.constant 1 : index
    %c0_100 = arith.constant 0 : index
    %c0_101 = arith.constant 0 : index
    %379 = vector.load %arg6[%c1_99, %c0_100, %c0_101] : memref<2x64x96xf32, #tpu.memory_space<vmem>>, vector<1x64x96xf32>
    %380 = vector.shape_cast %379 : vector<1x64x96xf32> to vector<64x96xf32>
    %cst_102 = arith.constant dense<0.000000e+00> : vector<8x96xf32>
    %381 = tpu.matmul %378, %380, %cst_102 {dimension_numbers = #tpu.dot_dimension_numbers<[1], [0], [0], [1], [0, 0, 1, 1], [], []>} : vector<8x64xf32>, vector<64x96xf32>, vector<8x96xf32> -> vector<8x96xf32>
    %382 = vector.extract_strided_slice %381 {offsets = [0, 0], sizes = [8, 64], strides = [1, 1]} : vector<8x96xf32> to vector<8x64xf32>
    %c1_103 = arith.constant 1 : index
    %c0_104 = arith.constant 0 : index
    %383 = vector.load %arg7[%c1_103, %c0_104] : memref<2x64xf32, #tpu.memory_space<vmem>>, vector<1x64xf32>
    %384 = vector.shape_cast %383 : vector<1x64xf32> to vector<64xf32>
    %385 = vector.shape_cast %384 : vector<64xf32> to vector<1x64xf32>
    %386 = vector.broadcast %385 : vector<1x64xf32> to vector<8x64xf32>
    %387 = arith.addf %382, %386 : vector<8x64xf32>
    %cst_105 = arith.constant 0.000000e+00 : f32
    %388 = vector.broadcast %cst_105 : f32 to vector<8x64xf32>
    %389 = arith.maximumf %387, %388 : vector<8x64xf32>
    %390 = vector.broadcast %cst_105 : f32 to vector<8x64xf32>
    %391 = arith.subf %387, %390 : vector<8x64xf32>
    %392 = arith.cmpf one, %391, %391 : vector<8x64xf32>
    %393 = vector.broadcast %cst_105 : f32 to vector<8x64xf32>
    %394 = arith.addf %387, %393 : vector<8x64xf32>
    %395 = math.absf %391 : vector<8x64xf32>
    %cst_106 = arith.constant 0.000000e+00 : f32
    %396 = vector.broadcast %cst_106 : f32 to vector<8x64xf32>
    %397 = arith.subf %396, %395 : vector<8x64xf32>
    %398 = math.exp %397 : vector<8x64xf32>
    %399 = math.log1p %398 : vector<8x64xf32>
    %400 = arith.addf %389, %399 : vector<8x64xf32>
    %401 = arith.select %392, %394, %400 : vector<8x64xi1>, vector<8x64xf32>
    %402 = vector.extract_strided_slice %381 {offsets = [0, 64], sizes = [8, 16], strides = [1, 1]} : vector<8x96xf32> to vector<8x16xf32>
    %403 = vector.extract_strided_slice %381 {offsets = [0, 80], sizes = [8, 16], strides = [1, 1]} : vector<8x96xf32> to vector<8x16xf32>
    %c1_107 = arith.constant 1 : index
    %c0_108 = arith.constant 0 : index
    %c0_109 = arith.constant 0 : index
    %404 = vector.load %arg8[%c1_107, %c0_108, %c0_109] : memref<2x16x64xf32, #tpu.memory_space<vmem>>, vector<1x16x64xf32>
    %405 = vector.shape_cast %404 : vector<1x16x64xf32> to vector<16x64xf32>
    %406 = math.exp %405 : vector<16x64xf32>
    %cst_110 = arith.constant 0.000000e+00 : f32
    %407 = vector.broadcast %cst_110 : f32 to vector<16x64xf32>
    %408 = arith.subf %407, %406 : vector<16x64xf32>
    %409 = vector.shape_cast %401 : vector<8x64xf32> to vector<8x1x64xf32>
    %410 = vector.shape_cast %408 : vector<16x64xf32> to vector<1x16x64xf32>
    %411 = vector.broadcast %409 : vector<8x1x64xf32> to vector<8x16x64xf32>
    %412 = vector.broadcast %410 : vector<1x16x64xf32> to vector<8x16x64xf32>
    %413 = arith.mulf %411, %412 : vector<8x16x64xf32>
    %414 = math.exp %413 : vector<8x16x64xf32>
    %415 = arith.mulf %401, %378 : vector<8x64xf32>
    %416 = tpu.transpose %402, [1, 0] : vector<8x16xf32> -> vector<16x8xf32>
    %417 = tpu.transpose %403, [1, 0] : vector<8x16xf32> -> vector<16x8xf32>
    %cst_111 = arith.constant 0.000000e+00 : f32
    %418 = vector.broadcast %cst_111 : f32 to vector<16x64xf32>
    %419 = vector.extract_strided_slice %415 {offsets = [0, 0], sizes = [1, 64], strides = [1, 1]} : vector<8x64xf32> to vector<1x64xf32>
    %420 = vector.extract_strided_slice %416 {offsets = [0, 0], sizes = [16, 1], strides = [1, 1]} : vector<16x8xf32> to vector<16x1xf32>
    %421 = vector.broadcast %419 : vector<1x64xf32> to vector<16x64xf32>
    %422 = vector.broadcast %420 : vector<16x1xf32> to vector<16x64xf32>
    %423 = arith.mulf %421, %422 : vector<16x64xf32>
    %424 = vector.extract_strided_slice %414 {offsets = [0, 0, 0], sizes = [1, 16, 64], strides = [1, 1, 1]} : vector<8x16x64xf32> to vector<1x16x64xf32>
    %425 = vector.shape_cast %424 : vector<1x16x64xf32> to vector<16x64xf32>
    %426 = arith.mulf %425, %418 : vector<16x64xf32>
    %427 = arith.addf %426, %423 : vector<16x64xf32>
    %428 = vector.extract_strided_slice %417 {offsets = [0, 0], sizes = [16, 1], strides = [1, 1]} : vector<16x8xf32> to vector<16x1xf32>
    %429 = vector.broadcast %428 : vector<16x1xf32> to vector<16x64xf32>
    %430 = arith.mulf %427, %429 : vector<16x64xf32>
    %cst_112 = arith.constant dense<0.000000e+00> : vector<64xf32>
    %431 = vector.multi_reduction <add>, %430, %cst_112 [0] : vector<16x64xf32> to vector<64xf32>
    %432 = vector.shape_cast %431 : vector<64xf32> to vector<1x64xf32>
    %433 = vector.extract_strided_slice %415 {offsets = [1, 0], sizes = [1, 64], strides = [1, 1]} : vector<8x64xf32> to vector<1x64xf32>
    %434 = vector.extract_strided_slice %416 {offsets = [0, 1], sizes = [16, 1], strides = [1, 1]} : vector<16x8xf32> to vector<16x1xf32>
    %435 = vector.broadcast %433 : vector<1x64xf32> to vector<16x64xf32>
    %436 = vector.broadcast %434 : vector<16x1xf32> to vector<16x64xf32>
    %437 = arith.mulf %435, %436 : vector<16x64xf32>
    %438 = vector.extract_strided_slice %414 {offsets = [1, 0, 0], sizes = [1, 16, 64], strides = [1, 1, 1]} : vector<8x16x64xf32> to vector<1x16x64xf32>
    %439 = vector.shape_cast %438 : vector<1x16x64xf32> to vector<16x64xf32>
    %440 = arith.mulf %439, %427 : vector<16x64xf32>
    %441 = arith.addf %440, %437 : vector<16x64xf32>
    %442 = vector.extract_strided_slice %417 {offsets = [0, 1], sizes = [16, 1], strides = [1, 1]} : vector<16x8xf32> to vector<16x1xf32>
    %443 = vector.broadcast %442 : vector<16x1xf32> to vector<16x64xf32>
    %444 = arith.mulf %441, %443 : vector<16x64xf32>
    %cst_113 = arith.constant dense<0.000000e+00> : vector<64xf32>
    %445 = vector.multi_reduction <add>, %444, %cst_113 [0] : vector<16x64xf32> to vector<64xf32>
    %446 = vector.shape_cast %445 : vector<64xf32> to vector<1x64xf32>
    %447 = vector.extract_strided_slice %415 {offsets = [2, 0], sizes = [1, 64], strides = [1, 1]} : vector<8x64xf32> to vector<1x64xf32>
    %448 = vector.extract_strided_slice %416 {offsets = [0, 2], sizes = [16, 1], strides = [1, 1]} : vector<16x8xf32> to vector<16x1xf32>
    %449 = vector.broadcast %447 : vector<1x64xf32> to vector<16x64xf32>
    %450 = vector.broadcast %448 : vector<16x1xf32> to vector<16x64xf32>
    %451 = arith.mulf %449, %450 : vector<16x64xf32>
    %452 = vector.extract_strided_slice %414 {offsets = [2, 0, 0], sizes = [1, 16, 64], strides = [1, 1, 1]} : vector<8x16x64xf32> to vector<1x16x64xf32>
    %453 = vector.shape_cast %452 : vector<1x16x64xf32> to vector<16x64xf32>
    %454 = arith.mulf %453, %441 : vector<16x64xf32>
    %455 = arith.addf %454, %451 : vector<16x64xf32>
    %456 = vector.extract_strided_slice %417 {offsets = [0, 2], sizes = [16, 1], strides = [1, 1]} : vector<16x8xf32> to vector<16x1xf32>
    %457 = vector.broadcast %456 : vector<16x1xf32> to vector<16x64xf32>
    %458 = arith.mulf %455, %457 : vector<16x64xf32>
    %cst_114 = arith.constant dense<0.000000e+00> : vector<64xf32>
    %459 = vector.multi_reduction <add>, %458, %cst_114 [0] : vector<16x64xf32> to vector<64xf32>
    %460 = vector.shape_cast %459 : vector<64xf32> to vector<1x64xf32>
    %461 = vector.extract_strided_slice %415 {offsets = [3, 0], sizes = [1, 64], strides = [1, 1]} : vector<8x64xf32> to vector<1x64xf32>
    %462 = vector.extract_strided_slice %416 {offsets = [0, 3], sizes = [16, 1], strides = [1, 1]} : vector<16x8xf32> to vector<16x1xf32>
    %463 = vector.broadcast %461 : vector<1x64xf32> to vector<16x64xf32>
    %464 = vector.broadcast %462 : vector<16x1xf32> to vector<16x64xf32>
    %465 = arith.mulf %463, %464 : vector<16x64xf32>
    %466 = vector.extract_strided_slice %414 {offsets = [3, 0, 0], sizes = [1, 16, 64], strides = [1, 1, 1]} : vector<8x16x64xf32> to vector<1x16x64xf32>
    %467 = vector.shape_cast %466 : vector<1x16x64xf32> to vector<16x64xf32>
    %468 = arith.mulf %467, %455 : vector<16x64xf32>
    %469 = arith.addf %468, %465 : vector<16x64xf32>
    %470 = vector.extract_strided_slice %417 {offsets = [0, 3], sizes = [16, 1], strides = [1, 1]} : vector<16x8xf32> to vector<16x1xf32>
    %471 = vector.broadcast %470 : vector<16x1xf32> to vector<16x64xf32>
    %472 = arith.mulf %469, %471 : vector<16x64xf32>
    %cst_115 = arith.constant dense<0.000000e+00> : vector<64xf32>
    %473 = vector.multi_reduction <add>, %472, %cst_115 [0] : vector<16x64xf32> to vector<64xf32>
    %474 = vector.shape_cast %473 : vector<64xf32> to vector<1x64xf32>
    %475 = vector.extract_strided_slice %415 {offsets = [4, 0], sizes = [1, 64], strides = [1, 1]} : vector<8x64xf32> to vector<1x64xf32>
    %476 = vector.extract_strided_slice %416 {offsets = [0, 4], sizes = [16, 1], strides = [1, 1]} : vector<16x8xf32> to vector<16x1xf32>
    %477 = vector.broadcast %475 : vector<1x64xf32> to vector<16x64xf32>
    %478 = vector.broadcast %476 : vector<16x1xf32> to vector<16x64xf32>
    %479 = arith.mulf %477, %478 : vector<16x64xf32>
    %480 = vector.extract_strided_slice %414 {offsets = [4, 0, 0], sizes = [1, 16, 64], strides = [1, 1, 1]} : vector<8x16x64xf32> to vector<1x16x64xf32>
    %481 = vector.shape_cast %480 : vector<1x16x64xf32> to vector<16x64xf32>
    %482 = arith.mulf %481, %469 : vector<16x64xf32>
    %483 = arith.addf %482, %479 : vector<16x64xf32>
    %484 = vector.extract_strided_slice %417 {offsets = [0, 4], sizes = [16, 1], strides = [1, 1]} : vector<16x8xf32> to vector<16x1xf32>
    %485 = vector.broadcast %484 : vector<16x1xf32> to vector<16x64xf32>
    %486 = arith.mulf %483, %485 : vector<16x64xf32>
    %cst_116 = arith.constant dense<0.000000e+00> : vector<64xf32>
    %487 = vector.multi_reduction <add>, %486, %cst_116 [0] : vector<16x64xf32> to vector<64xf32>
    %488 = vector.shape_cast %487 : vector<64xf32> to vector<1x64xf32>
    %489 = vector.extract_strided_slice %415 {offsets = [5, 0], sizes = [1, 64], strides = [1, 1]} : vector<8x64xf32> to vector<1x64xf32>
    %490 = vector.extract_strided_slice %416 {offsets = [0, 5], sizes = [16, 1], strides = [1, 1]} : vector<16x8xf32> to vector<16x1xf32>
    %491 = vector.broadcast %489 : vector<1x64xf32> to vector<16x64xf32>
    %492 = vector.broadcast %490 : vector<16x1xf32> to vector<16x64xf32>
    %493 = arith.mulf %491, %492 : vector<16x64xf32>
    %494 = vector.extract_strided_slice %414 {offsets = [5, 0, 0], sizes = [1, 16, 64], strides = [1, 1, 1]} : vector<8x16x64xf32> to vector<1x16x64xf32>
    %495 = vector.shape_cast %494 : vector<1x16x64xf32> to vector<16x64xf32>
    %496 = arith.mulf %495, %483 : vector<16x64xf32>
    %497 = arith.addf %496, %493 : vector<16x64xf32>
    %498 = vector.extract_strided_slice %417 {offsets = [0, 5], sizes = [16, 1], strides = [1, 1]} : vector<16x8xf32> to vector<16x1xf32>
    %499 = vector.broadcast %498 : vector<16x1xf32> to vector<16x64xf32>
    %500 = arith.mulf %497, %499 : vector<16x64xf32>
    %cst_117 = arith.constant dense<0.000000e+00> : vector<64xf32>
    %501 = vector.multi_reduction <add>, %500, %cst_117 [0] : vector<16x64xf32> to vector<64xf32>
    %502 = vector.shape_cast %501 : vector<64xf32> to vector<1x64xf32>
    %503 = vector.extract_strided_slice %415 {offsets = [6, 0], sizes = [1, 64], strides = [1, 1]} : vector<8x64xf32> to vector<1x64xf32>
    %504 = vector.extract_strided_slice %416 {offsets = [0, 6], sizes = [16, 1], strides = [1, 1]} : vector<16x8xf32> to vector<16x1xf32>
    %505 = vector.broadcast %503 : vector<1x64xf32> to vector<16x64xf32>
    %506 = vector.broadcast %504 : vector<16x1xf32> to vector<16x64xf32>
    %507 = arith.mulf %505, %506 : vector<16x64xf32>
    %508 = vector.extract_strided_slice %414 {offsets = [6, 0, 0], sizes = [1, 16, 64], strides = [1, 1, 1]} : vector<8x16x64xf32> to vector<1x16x64xf32>
    %509 = vector.shape_cast %508 : vector<1x16x64xf32> to vector<16x64xf32>
    %510 = arith.mulf %509, %497 : vector<16x64xf32>
    %511 = arith.addf %510, %507 : vector<16x64xf32>
    %512 = vector.extract_strided_slice %417 {offsets = [0, 6], sizes = [16, 1], strides = [1, 1]} : vector<16x8xf32> to vector<16x1xf32>
    %513 = vector.broadcast %512 : vector<16x1xf32> to vector<16x64xf32>
    %514 = arith.mulf %511, %513 : vector<16x64xf32>
    %cst_118 = arith.constant dense<0.000000e+00> : vector<64xf32>
    %515 = vector.multi_reduction <add>, %514, %cst_118 [0] : vector<16x64xf32> to vector<64xf32>
    %516 = vector.shape_cast %515 : vector<64xf32> to vector<1x64xf32>
    %517 = vector.extract_strided_slice %415 {offsets = [7, 0], sizes = [1, 64], strides = [1, 1]} : vector<8x64xf32> to vector<1x64xf32>
    %518 = vector.extract_strided_slice %416 {offsets = [0, 7], sizes = [16, 1], strides = [1, 1]} : vector<16x8xf32> to vector<16x1xf32>
    %519 = vector.broadcast %517 : vector<1x64xf32> to vector<16x64xf32>
    %520 = vector.broadcast %518 : vector<16x1xf32> to vector<16x64xf32>
    %521 = arith.mulf %519, %520 : vector<16x64xf32>
    %522 = vector.extract_strided_slice %414 {offsets = [7, 0, 0], sizes = [1, 16, 64], strides = [1, 1, 1]} : vector<8x16x64xf32> to vector<1x16x64xf32>
    %523 = vector.shape_cast %522 : vector<1x16x64xf32> to vector<16x64xf32>
    %524 = arith.mulf %523, %511 : vector<16x64xf32>
    %525 = arith.addf %524, %521 : vector<16x64xf32>
    %526 = vector.extract_strided_slice %417 {offsets = [0, 7], sizes = [16, 1], strides = [1, 1]} : vector<16x8xf32> to vector<16x1xf32>
    %527 = vector.broadcast %526 : vector<16x1xf32> to vector<16x64xf32>
    %528 = arith.mulf %525, %527 : vector<16x64xf32>
    %cst_119 = arith.constant dense<0.000000e+00> : vector<64xf32>
    %529 = vector.multi_reduction <add>, %528, %cst_119 [0] : vector<16x64xf32> to vector<64xf32>
    %530 = vector.shape_cast %529 : vector<64xf32> to vector<1x64xf32>
    %531 = tpu.concatenate %432, %446, %460, %474, %488, %502, %516, %530 in 0 : vector<1x64xf32>, vector<1x64xf32>, vector<1x64xf32>, vector<1x64xf32>, vector<1x64xf32>, vector<1x64xf32>, vector<1x64xf32>, vector<1x64xf32> -> vector<8x64xf32>
    %c1_120 = arith.constant 1 : index
    %c0_121 = arith.constant 0 : index
    %532 = vector.load %arg9[%c1_120, %c0_121] : memref<2x64xf32, #tpu.memory_space<vmem>>, vector<1x64xf32>
    %533 = vector.shape_cast %532 : vector<1x64xf32> to vector<64xf32>
    %534 = vector.shape_cast %533 : vector<64xf32> to vector<1x64xf32>
    %535 = vector.broadcast %534 : vector<1x64xf32> to vector<8x64xf32>
    %536 = arith.mulf %378, %535 : vector<8x64xf32>
    %537 = arith.addf %531, %536 : vector<8x64xf32>
    %538 = arith.negf %327 : vector<8x64xf32>
    %539 = math.exp %538 : vector<8x64xf32>
    %cst_122 = arith.constant 1.000000e+00 : f32
    %540 = vector.broadcast %cst_122 : f32 to vector<8x64xf32>
    %541 = arith.addf %540, %539 : vector<8x64xf32>
    %542 = arith.divf %540, %541 : vector<8x64xf32>
    %543 = arith.mulf %327, %542 : vector<8x64xf32>
    %544 = arith.mulf %537, %543 : vector<8x64xf32>
    %c1_123 = arith.constant 1 : index
    %c0_124 = arith.constant 0 : index
    %c0_125 = arith.constant 0 : index
    %545 = vector.load %arg10[%c1_123, %c0_124, %c0_125] : memref<2x64x32xf32, #tpu.memory_space<vmem>>, vector<1x64x32xf32>
    %546 = vector.shape_cast %545 : vector<1x64x32xf32> to vector<64x32xf32>
    %cst_126 = arith.constant dense<0.000000e+00> : vector<8x32xf32>
    %547 = tpu.matmul %544, %546, %cst_126 {dimension_numbers = #tpu.dot_dimension_numbers<[1], [0], [0], [1], [0, 0, 1, 1], [], []>} : vector<8x64xf32>, vector<64x32xf32>, vector<8x32xf32> -> vector<8x32xf32>
    %548 = arith.addf %547, %296 : vector<8x32xf32>
    %c1_127 = arith.constant 1 : index
    %c0_128 = arith.constant 0 : index
    %549 = vector.load %arg11[%c1_127, %c0_128] : memref<2x32xf32, #tpu.memory_space<vmem>>, vector<1x32xf32>
    %550 = vector.shape_cast %549 : vector<1x32xf32> to vector<32xf32>
    %c1_129 = arith.constant 1 : index
    %c0_130 = arith.constant 0 : index
    %551 = vector.load %arg12[%c1_129, %c0_130] : memref<2x32xf32, #tpu.memory_space<vmem>>, vector<1x32xf32>
    %552 = vector.shape_cast %551 : vector<1x32xf32> to vector<32xf32>
    %cst_131 = arith.constant dense<0.000000e+00> : vector<8xf32>
    %553 = vector.multi_reduction <add>, %548, %cst_131 [1] : vector<8x32xf32> to vector<8xf32>
    %554 = vector.shape_cast %553 : vector<8xf32> to vector<8x1xf32>
    %cst_132 = arith.constant 3.200000e+01 : f32
    %555 = vector.broadcast %cst_132 : f32 to vector<8x1xf32>
    %556 = arith.divf %554, %555 : vector<8x1xf32>
    %557 = vector.broadcast %556 : vector<8x1xf32> to vector<8x32xf32>
    %558 = arith.subf %548, %557 : vector<8x32xf32>
    %559 = arith.mulf %558, %558 : vector<8x32xf32>
    %cst_133 = arith.constant dense<0.000000e+00> : vector<8xf32>
    %560 = vector.multi_reduction <add>, %559, %cst_133 [1] : vector<8x32xf32> to vector<8xf32>
    %561 = vector.shape_cast %560 : vector<8xf32> to vector<8x1xf32>
    %cst_134 = arith.constant 3.200000e+01 : f32
    %562 = vector.broadcast %cst_134 : f32 to vector<8x1xf32>
    %563 = arith.divf %561, %562 : vector<8x1xf32>
    %cst_135 = arith.constant 9.99999974E-6 : f32
    %564 = vector.broadcast %cst_135 : f32 to vector<8x1xf32>
    %565 = arith.addf %563, %564 : vector<8x1xf32>
    %566 = math.rsqrt %565 : vector<8x1xf32>
    %567 = vector.broadcast %566 : vector<8x1xf32> to vector<8x32xf32>
    %568 = arith.mulf %558, %567 : vector<8x32xf32>
    %569 = vector.shape_cast %550 : vector<32xf32> to vector<1x32xf32>
    %570 = vector.broadcast %569 : vector<1x32xf32> to vector<8x32xf32>
    %571 = arith.mulf %568, %570 : vector<8x32xf32>
    %572 = vector.shape_cast %552 : vector<32xf32> to vector<1x32xf32>
    %573 = vector.broadcast %572 : vector<1x32xf32> to vector<8x32xf32>
    %574 = arith.addf %571, %573 : vector<8x32xf32>
    %c1_136 = arith.constant 1 : index
    %c0_137 = arith.constant 0 : index
    %c0_138 = arith.constant 0 : index
    %575 = vector.load %arg13[%c1_136, %c0_137, %c0_138] : memref<2x32x256xf32, #tpu.memory_space<vmem>>, vector<1x32x256xf32>
    %576 = vector.shape_cast %575 : vector<1x32x256xf32> to vector<32x256xf32>
    %cst_139 = arith.constant dense<0.000000e+00> : vector<8x256xf32>
    %577 = tpu.matmul %574, %576, %cst_139 {dimension_numbers = #tpu.dot_dimension_numbers<[1], [0], [0], [1], [0, 0, 1, 1], [], []>} : vector<8x32xf32>, vector<32x256xf32>, vector<8x256xf32> -> vector<8x256xf32>
    %578 = vector.extract_strided_slice %577 {offsets = [0, 0], sizes = [8, 128], strides = [1, 1]} : vector<8x256xf32> to vector<8x128xf32>
    %579 = vector.extract_strided_slice %577 {offsets = [0, 128], sizes = [8, 128], strides = [1, 1]} : vector<8x256xf32> to vector<8x128xf32>
    %580 = arith.negf %579 : vector<8x128xf32>
    %581 = math.exp %580 : vector<8x128xf32>
    %cst_140 = arith.constant 1.000000e+00 : f32
    %582 = vector.broadcast %cst_140 : f32 to vector<8x128xf32>
    %583 = arith.addf %582, %581 : vector<8x128xf32>
    %584 = arith.divf %582, %583 : vector<8x128xf32>
    %585 = arith.mulf %579, %584 : vector<8x128xf32>
    %586 = arith.mulf %578, %585 : vector<8x128xf32>
    %c1_141 = arith.constant 1 : index
    %c0_142 = arith.constant 0 : index
    %c0_143 = arith.constant 0 : index
    %587 = vector.load %arg14[%c1_141, %c0_142, %c0_143] : memref<2x128x32xf32, #tpu.memory_space<vmem>>, vector<1x128x32xf32>
    %588 = vector.shape_cast %587 : vector<1x128x32xf32> to vector<128x32xf32>
    %cst_144 = arith.constant dense<0.000000e+00> : vector<8x32xf32>
    %589 = tpu.matmul %586, %588, %cst_144 {dimension_numbers = #tpu.dot_dimension_numbers<[1], [0], [0], [1], [0, 0, 1, 1], [], []>} : vector<8x128xf32>, vector<128x32xf32>, vector<8x32xf32> -> vector<8x32xf32>
    %590 = arith.addf %589, %548 : vector<8x32xf32>
    %c0_145 = arith.constant 0 : index
    %c0_146 = arith.constant 0 : index
    %591 = vector.load %arg15[%c0_145, %c0_146] : memref<1x32xf32, #tpu.memory_space<vmem>>, vector<1x32xf32>
    %592 = vector.shape_cast %591 : vector<1x32xf32> to vector<32xf32>
    %c0_147 = arith.constant 0 : index
    %c0_148 = arith.constant 0 : index
    %593 = vector.load %arg16[%c0_147, %c0_148] : memref<1x32xf32, #tpu.memory_space<vmem>>, vector<1x32xf32>
    %594 = vector.shape_cast %593 : vector<1x32xf32> to vector<32xf32>
    %cst_149 = arith.constant dense<0.000000e+00> : vector<8xf32>
    %595 = vector.multi_reduction <add>, %590, %cst_149 [1] : vector<8x32xf32> to vector<8xf32>
    %596 = vector.shape_cast %595 : vector<8xf32> to vector<8x1xf32>
    %cst_150 = arith.constant 3.200000e+01 : f32
    %597 = vector.broadcast %cst_150 : f32 to vector<8x1xf32>
    %598 = arith.divf %596, %597 : vector<8x1xf32>
    %599 = vector.broadcast %598 : vector<8x1xf32> to vector<8x32xf32>
    %600 = arith.subf %590, %599 : vector<8x32xf32>
    %601 = arith.mulf %600, %600 : vector<8x32xf32>
    %cst_151 = arith.constant dense<0.000000e+00> : vector<8xf32>
    %602 = vector.multi_reduction <add>, %601, %cst_151 [1] : vector<8x32xf32> to vector<8xf32>
    %603 = vector.shape_cast %602 : vector<8xf32> to vector<8x1xf32>
    %cst_152 = arith.constant 3.200000e+01 : f32
    %604 = vector.broadcast %cst_152 : f32 to vector<8x1xf32>
    %605 = arith.divf %603, %604 : vector<8x1xf32>
    %cst_153 = arith.constant 9.99999974E-6 : f32
    %606 = vector.broadcast %cst_153 : f32 to vector<8x1xf32>
    %607 = arith.addf %605, %606 : vector<8x1xf32>
    %608 = math.rsqrt %607 : vector<8x1xf32>
    %609 = vector.broadcast %608 : vector<8x1xf32> to vector<8x32xf32>
    %610 = arith.mulf %600, %609 : vector<8x32xf32>
    %611 = vector.shape_cast %592 : vector<32xf32> to vector<1x32xf32>
    %612 = vector.broadcast %611 : vector<1x32xf32> to vector<8x32xf32>
    %613 = arith.mulf %610, %612 : vector<8x32xf32>
    %614 = vector.shape_cast %594 : vector<32xf32> to vector<1x32xf32>
    %615 = vector.broadcast %614 : vector<1x32xf32> to vector<8x32xf32>
    %616 = arith.addf %613, %615 : vector<8x32xf32>
    %c0_154 = arith.constant 0 : index
    %c0_155 = arith.constant 0 : index
    %c0_156 = arith.constant 0 : index
    %617 = vector.load %arg17[%c0_154, %c0_155, %c0_156] : memref<2x8x32xf32, #tpu.memory_space<vmem>>, vector<1x8x32xf32>
    %618 = vector.shape_cast %617 : vector<1x8x32xf32> to vector<8x32xf32>
    %619 = vector.shape_cast %616 : vector<8x32xf32> to vector<1x8x32xf32>
    tpu.vector_store %arg17[%c0_154, %c0_155, %c0_156], %619 {strides = array<i32>} : memref<2x8x32xf32, #tpu.memory_space<vmem>>, vector<1x8x32xf32>,
    %c1_157 = arith.constant 1 : index
    %c0_158 = arith.constant 0 : index
    %c0_159 = arith.constant 0 : index
    %620 = vector.load %arg0[%c1_157, %c0_158, %c0_159] : memref<2x8x32xf32, #tpu.memory_space<vmem>>, vector<1x8x32xf32>
    %621 = vector.shape_cast %620 : vector<1x8x32xf32> to vector<8x32xf32>
    %c0_160 = arith.constant 0 : index
    %c0_161 = arith.constant 0 : index
    %622 = vector.load %arg1[%c0_160, %c0_161] : memref<2x32xf32, #tpu.memory_space<vmem>>, vector<1x32xf32>
    %623 = vector.shape_cast %622 : vector<1x32xf32> to vector<32xf32>
    %c0_162 = arith.constant 0 : index
    %c0_163 = arith.constant 0 : index
    %624 = vector.load %arg2[%c0_162, %c0_163] : memref<2x32xf32, #tpu.memory_space<vmem>>, vector<1x32xf32>
    %625 = vector.shape_cast %624 : vector<1x32xf32> to vector<32xf32>
    %cst_164 = arith.constant dense<0.000000e+00> : vector<8xf32>
    %626 = vector.multi_reduction <add>, %621, %cst_164 [1] : vector<8x32xf32> to vector<8xf32>
    %627 = vector.shape_cast %626 : vector<8xf32> to vector<8x1xf32>
    %cst_165 = arith.constant 3.200000e+01 : f32
    %628 = vector.broadcast %cst_165 : f32 to vector<8x1xf32>
    %629 = arith.divf %627, %628 : vector<8x1xf32>
    %630 = vector.broadcast %629 : vector<8x1xf32> to vector<8x32xf32>
    %631 = arith.subf %621, %630 : vector<8x32xf32>
    %632 = arith.mulf %631, %631 : vector<8x32xf32>
    %cst_166 = arith.constant dense<0.000000e+00> : vector<8xf32>
    %633 = vector.multi_reduction <add>, %632, %cst_166 [1] : vector<8x32xf32> to vector<8xf32>
    %634 = vector.shape_cast %633 : vector<8xf32> to vector<8x1xf32>
    %cst_167 = arith.constant 3.200000e+01 : f32
    %635 = vector.broadcast %cst_167 : f32 to vector<8x1xf32>
    %636 = arith.divf %634, %635 : vector<8x1xf32>
    %cst_168 = arith.constant 9.99999974E-6 : f32
    %637 = vector.broadcast %cst_168 : f32 to vector<8x1xf32>
    %638 = arith.addf %636, %637 : vector<8x1xf32>
    %639 = math.rsqrt %638 : vector<8x1xf32>
    %640 = vector.broadcast %639 : vector<8x1xf32> to vector<8x32xf32>
    %641 = arith.mulf %631, %640 : vector<8x32xf32>
    %642 = vector.shape_cast %623 : vector<32xf32> to vector<1x32xf32>
    %643 = vector.broadcast %642 : vector<1x32xf32> to vector<8x32xf32>
    %644 = arith.mulf %641, %643 : vector<8x32xf32>
    %645 = vector.shape_cast %625 : vector<32xf32> to vector<1x32xf32>
    %646 = vector.broadcast %645 : vector<1x32xf32> to vector<8x32xf32>
    %647 = arith.addf %644, %646 : vector<8x32xf32>
    %c0_169 = arith.constant 0 : index
    %c0_170 = arith.constant 0 : index
    %c0_171 = arith.constant 0 : index
    %648 = vector.load %arg3[%c0_169, %c0_170, %c0_171] : memref<2x32x128xf32, #tpu.memory_space<vmem>>, vector<1x32x128xf32>
    %649 = vector.shape_cast %648 : vector<1x32x128xf32> to vector<32x128xf32>
    %cst_172 = arith.constant dense<0.000000e+00> : vector<8x128xf32>
    %650 = tpu.matmul %647, %649, %cst_172 {dimension_numbers = #tpu.dot_dimension_numbers<[1], [0], [0], [1], [0, 0, 1, 1], [], []>} : vector<8x32xf32>, vector<32x128xf32>, vector<8x128xf32> -> vector<8x128xf32>
    %651 = vector.extract_strided_slice %650 {offsets = [0, 0], sizes = [8, 64], strides = [1, 1]} : vector<8x128xf32> to vector<8x64xf32>
    %652 = vector.extract_strided_slice %650 {offsets = [0, 64], sizes = [8, 64], strides = [1, 1]} : vector<8x128xf32> to vector<8x64xf32>
    %c0_173 = arith.constant 0 : index
    %c0_174 = arith.constant 0 : index
    %c0_175 = arith.constant 0 : index
    %653 = vector.load %arg4[%c0_173, %c0_174, %c0_175] : memref<2x4x64xf32, #tpu.memory_space<vmem>>, vector<1x4x64xf32>
    %654 = vector.shape_cast %653 : vector<1x4x64xf32> to vector<4x64xf32>
    %655 = vector.extract_strided_slice %654 {offsets = [3, 0], sizes = [1, 64], strides = [1, 1]} : vector<4x64xf32> to vector<1x64xf32>
    %656 = vector.shape_cast %655 : vector<1x64xf32> to vector<64xf32>
    %657 = vector.shape_cast %656 : vector<64xf32> to vector<1x64xf32>
    %658 = vector.broadcast %657 : vector<1x64xf32> to vector<8x64xf32>
    %659 = arith.mulf %651, %658 : vector<8x64xf32>
    %c3_i32_176 = arith.constant 3 : i32
    %660 = tpu.dynamic_rotate %651 by %c3_i32_176 dim 0 : vector<8x64xf32>, i32 -> vector<8x64xf32>
    %c3_i32_177 = arith.constant 3 : i32
    %661 = vector.broadcast %c3_i32_177 : i32 to vector<8x64xi32>
    %662 = arith.cmpi sge, %0, %661 : vector<8x64xi32>
    %cst_178 = arith.constant 0.000000e+00 : f32
    %663 = vector.broadcast %cst_178 : f32 to vector<8x64xf32>
    %664 = arith.select %662, %660, %663 : vector<8x64xi1>, vector<8x64xf32>
    %665 = vector.extract_strided_slice %654 {offsets = [0, 0], sizes = [1, 64], strides = [1, 1]} : vector<4x64xf32> to vector<1x64xf32>
    %666 = vector.shape_cast %665 : vector<1x64xf32> to vector<64xf32>
    %667 = vector.shape_cast %666 : vector<64xf32> to vector<1x64xf32>
    %668 = vector.broadcast %667 : vector<1x64xf32> to vector<8x64xf32>
    %669 = arith.mulf %664, %668 : vector<8x64xf32>
    %670 = arith.addf %659, %669 : vector<8x64xf32>
    %c2_i32_179 = arith.constant 2 : i32
    %671 = tpu.dynamic_rotate %651 by %c2_i32_179 dim 0 : vector<8x64xf32>, i32 -> vector<8x64xf32>
    %c2_i32_180 = arith.constant 2 : i32
    %672 = vector.broadcast %c2_i32_180 : i32 to vector<8x64xi32>
    %673 = arith.cmpi sge, %0, %672 : vector<8x64xi32>
    %cst_181 = arith.constant 0.000000e+00 : f32
    %674 = vector.broadcast %cst_181 : f32 to vector<8x64xf32>
    %675 = arith.select %673, %671, %674 : vector<8x64xi1>, vector<8x64xf32>
    %676 = vector.extract_strided_slice %654 {offsets = [1, 0], sizes = [1, 64], strides = [1, 1]} : vector<4x64xf32> to vector<1x64xf32>
    %677 = vector.shape_cast %676 : vector<1x64xf32> to vector<64xf32>
    %678 = vector.shape_cast %677 : vector<64xf32> to vector<1x64xf32>
    %679 = vector.broadcast %678 : vector<1x64xf32> to vector<8x64xf32>
    %680 = arith.mulf %675, %679 : vector<8x64xf32>
    %681 = arith.addf %670, %680 : vector<8x64xf32>
    %c1_i32_182 = arith.constant 1 : i32
    %682 = tpu.dynamic_rotate %651 by %c1_i32_182 dim 0 : vector<8x64xf32>, i32 -> vector<8x64xf32>
    %c1_i32_183 = arith.constant 1 : i32
    %683 = vector.broadcast %c1_i32_183 : i32 to vector<8x64xi32>
    %684 = arith.cmpi sge, %0, %683 : vector<8x64xi32>
    %cst_184 = arith.constant 0.000000e+00 : f32
    %685 = vector.broadcast %cst_184 : f32 to vector<8x64xf32>
    %686 = arith.select %684, %682, %685 : vector<8x64xi1>, vector<8x64xf32>
    %687 = vector.extract_strided_slice %654 {offsets = [2, 0], sizes = [1, 64], strides = [1, 1]} : vector<4x64xf32> to vector<1x64xf32>
    %688 = vector.shape_cast %687 : vector<1x64xf32> to vector<64xf32>
    %689 = vector.shape_cast %688 : vector<64xf32> to vector<1x64xf32>
    %690 = vector.broadcast %689 : vector<1x64xf32> to vector<8x64xf32>
    %691 = arith.mulf %686, %690 : vector<8x64xf32>
    %692 = arith.addf %681, %691 : vector<8x64xf32>
    %c0_185 = arith.constant 0 : index
    %c0_186 = arith.constant 0 : index
    %693 = vector.load %arg5[%c0_185, %c0_186] : memref<2x64xf32, #tpu.memory_space<vmem>>, vector<1x64xf32>
    %694 = vector.shape_cast %693 : vector<1x64xf32> to vector<64xf32>
    %695 = vector.shape_cast %694 : vector<64xf32> to vector<1x64xf32>
    %696 = vector.broadcast %695 : vector<1x64xf32> to vector<8x64xf32>
    %697 = arith.addf %692, %696 : vector<8x64xf32>
    %698 = arith.negf %697 : vector<8x64xf32>
    %699 = math.exp %698 : vector<8x64xf32>
    %cst_187 = arith.constant 1.000000e+00 : f32
    %700 = vector.broadcast %cst_187 : f32 to vector<8x64xf32>
    %701 = arith.addf %700, %699 : vector<8x64xf32>
    %702 = arith.divf %700, %701 : vector<8x64xf32>
    %703 = arith.mulf %697, %702 : vector<8x64xf32>
    %c0_188 = arith.constant 0 : index
    %c0_189 = arith.constant 0 : index
    %c0_190 = arith.constant 0 : index
    %704 = vector.load %arg6[%c0_188, %c0_189, %c0_190] : memref<2x64x96xf32, #tpu.memory_space<vmem>>, vector<1x64x96xf32>
    %705 = vector.shape_cast %704 : vector<1x64x96xf32> to vector<64x96xf32>
    %cst_191 = arith.constant dense<0.000000e+00> : vector<8x96xf32>
    %706 = tpu.matmul %703, %705, %cst_191 {dimension_numbers = #tpu.dot_dimension_numbers<[1], [0], [0], [1], [0, 0, 1, 1], [], []>} : vector<8x64xf32>, vector<64x96xf32>, vector<8x96xf32> -> vector<8x96xf32>
    %707 = vector.extract_strided_slice %706 {offsets = [0, 0], sizes = [8, 64], strides = [1, 1]} : vector<8x96xf32> to vector<8x64xf32>
    %c0_192 = arith.constant 0 : index
    %c0_193 = arith.constant 0 : index
    %708 = vector.load %arg7[%c0_192, %c0_193] : memref<2x64xf32, #tpu.memory_space<vmem>>, vector<1x64xf32>
    %709 = vector.shape_cast %708 : vector<1x64xf32> to vector<64xf32>
    %710 = vector.shape_cast %709 : vector<64xf32> to vector<1x64xf32>
    %711 = vector.broadcast %710 : vector<1x64xf32> to vector<8x64xf32>
    %712 = arith.addf %707, %711 : vector<8x64xf32>
    %cst_194 = arith.constant 0.000000e+00 : f32
    %713 = vector.broadcast %cst_194 : f32 to vector<8x64xf32>
    %714 = arith.maximumf %712, %713 : vector<8x64xf32>
    %715 = vector.broadcast %cst_194 : f32 to vector<8x64xf32>
    %716 = arith.subf %712, %715 : vector<8x64xf32>
    %717 = arith.cmpf one, %716, %716 : vector<8x64xf32>
    %718 = vector.broadcast %cst_194 : f32 to vector<8x64xf32>
    %719 = arith.addf %712, %718 : vector<8x64xf32>
    %720 = math.absf %716 : vector<8x64xf32>
    %cst_195 = arith.constant 0.000000e+00 : f32
    %721 = vector.broadcast %cst_195 : f32 to vector<8x64xf32>
    %722 = arith.subf %721, %720 : vector<8x64xf32>
    %723 = math.exp %722 : vector<8x64xf32>
    %724 = math.log1p %723 : vector<8x64xf32>
    %725 = arith.addf %714, %724 : vector<8x64xf32>
    %726 = arith.select %717, %719, %725 : vector<8x64xi1>, vector<8x64xf32>
    %727 = vector.extract_strided_slice %706 {offsets = [0, 64], sizes = [8, 16], strides = [1, 1]} : vector<8x96xf32> to vector<8x16xf32>
    %728 = vector.extract_strided_slice %706 {offsets = [0, 80], sizes = [8, 16], strides = [1, 1]} : vector<8x96xf32> to vector<8x16xf32>
    %c0_196 = arith.constant 0 : index
    %c0_197 = arith.constant 0 : index
    %c0_198 = arith.constant 0 : index
    %729 = vector.load %arg8[%c0_196, %c0_197, %c0_198] : memref<2x16x64xf32, #tpu.memory_space<vmem>>, vector<1x16x64xf32>
    %730 = vector.shape_cast %729 : vector<1x16x64xf32> to vector<16x64xf32>
    %731 = math.exp %730 : vector<16x64xf32>
    %cst_199 = arith.constant 0.000000e+00 : f32
    %732 = vector.broadcast %cst_199 : f32 to vector<16x64xf32>
    %733 = arith.subf %732, %731 : vector<16x64xf32>
    %734 = vector.shape_cast %726 : vector<8x64xf32> to vector<8x1x64xf32>
    %735 = vector.shape_cast %733 : vector<16x64xf32> to vector<1x16x64xf32>
    %736 = vector.broadcast %734 : vector<8x1x64xf32> to vector<8x16x64xf32>
    %737 = vector.broadcast %735 : vector<1x16x64xf32> to vector<8x16x64xf32>
    %738 = arith.mulf %736, %737 : vector<8x16x64xf32>
    %739 = math.exp %738 : vector<8x16x64xf32>
    %740 = arith.mulf %726, %703 : vector<8x64xf32>
    %741 = tpu.transpose %727, [1, 0] : vector<8x16xf32> -> vector<16x8xf32>
    %742 = tpu.transpose %728, [1, 0] : vector<8x16xf32> -> vector<16x8xf32>
    %cst_200 = arith.constant 0.000000e+00 : f32
    %743 = vector.broadcast %cst_200 : f32 to vector<16x64xf32>
    %744 = vector.extract_strided_slice %740 {offsets = [0, 0], sizes = [1, 64], strides = [1, 1]} : vector<8x64xf32> to vector<1x64xf32>
    %745 = vector.extract_strided_slice %741 {offsets = [0, 0], sizes = [16, 1], strides = [1, 1]} : vector<16x8xf32> to vector<16x1xf32>
    %746 = vector.broadcast %744 : vector<1x64xf32> to vector<16x64xf32>
    %747 = vector.broadcast %745 : vector<16x1xf32> to vector<16x64xf32>
    %748 = arith.mulf %746, %747 : vector<16x64xf32>
    %749 = vector.extract_strided_slice %739 {offsets = [0, 0, 0], sizes = [1, 16, 64], strides = [1, 1, 1]} : vector<8x16x64xf32> to vector<1x16x64xf32>
    %750 = vector.shape_cast %749 : vector<1x16x64xf32> to vector<16x64xf32>
    %751 = arith.mulf %750, %743 : vector<16x64xf32>
    %752 = arith.addf %751, %748 : vector<16x64xf32>
    %753 = vector.extract_strided_slice %742 {offsets = [0, 0], sizes = [16, 1], strides = [1, 1]} : vector<16x8xf32> to vector<16x1xf32>
    %754 = vector.broadcast %753 : vector<16x1xf32> to vector<16x64xf32>
    %755 = arith.mulf %752, %754 : vector<16x64xf32>
    %cst_201 = arith.constant dense<0.000000e+00> : vector<64xf32>
    %756 = vector.multi_reduction <add>, %755, %cst_201 [0] : vector<16x64xf32> to vector<64xf32>
    %757 = vector.shape_cast %756 : vector<64xf32> to vector<1x64xf32>
    %758 = vector.extract_strided_slice %740 {offsets = [1, 0], sizes = [1, 64], strides = [1, 1]} : vector<8x64xf32> to vector<1x64xf32>
    %759 = vector.extract_strided_slice %741 {offsets = [0, 1], sizes = [16, 1], strides = [1, 1]} : vector<16x8xf32> to vector<16x1xf32>
    %760 = vector.broadcast %758 : vector<1x64xf32> to vector<16x64xf32>
    %761 = vector.broadcast %759 : vector<16x1xf32> to vector<16x64xf32>
    %762 = arith.mulf %760, %761 : vector<16x64xf32>
    %763 = vector.extract_strided_slice %739 {offsets = [1, 0, 0], sizes = [1, 16, 64], strides = [1, 1, 1]} : vector<8x16x64xf32> to vector<1x16x64xf32>
    %764 = vector.shape_cast %763 : vector<1x16x64xf32> to vector<16x64xf32>
    %765 = arith.mulf %764, %752 : vector<16x64xf32>
    %766 = arith.addf %765, %762 : vector<16x64xf32>
    %767 = vector.extract_strided_slice %742 {offsets = [0, 1], sizes = [16, 1], strides = [1, 1]} : vector<16x8xf32> to vector<16x1xf32>
    %768 = vector.broadcast %767 : vector<16x1xf32> to vector<16x64xf32>
    %769 = arith.mulf %766, %768 : vector<16x64xf32>
    %cst_202 = arith.constant dense<0.000000e+00> : vector<64xf32>
    %770 = vector.multi_reduction <add>, %769, %cst_202 [0] : vector<16x64xf32> to vector<64xf32>
    %771 = vector.shape_cast %770 : vector<64xf32> to vector<1x64xf32>
    %772 = vector.extract_strided_slice %740 {offsets = [2, 0], sizes = [1, 64], strides = [1, 1]} : vector<8x64xf32> to vector<1x64xf32>
    %773 = vector.extract_strided_slice %741 {offsets = [0, 2], sizes = [16, 1], strides = [1, 1]} : vector<16x8xf32> to vector<16x1xf32>
    %774 = vector.broadcast %772 : vector<1x64xf32> to vector<16x64xf32>
    %775 = vector.broadcast %773 : vector<16x1xf32> to vector<16x64xf32>
    %776 = arith.mulf %774, %775 : vector<16x64xf32>
    %777 = vector.extract_strided_slice %739 {offsets = [2, 0, 0], sizes = [1, 16, 64], strides = [1, 1, 1]} : vector<8x16x64xf32> to vector<1x16x64xf32>
    %778 = vector.shape_cast %777 : vector<1x16x64xf32> to vector<16x64xf32>
    %779 = arith.mulf %778, %766 : vector<16x64xf32>
    %780 = arith.addf %779, %776 : vector<16x64xf32>
    %781 = vector.extract_strided_slice %742 {offsets = [0, 2], sizes = [16, 1], strides = [1, 1]} : vector<16x8xf32> to vector<16x1xf32>
    %782 = vector.broadcast %781 : vector<16x1xf32> to vector<16x64xf32>
    %783 = arith.mulf %780, %782 : vector<16x64xf32>
    %cst_203 = arith.constant dense<0.000000e+00> : vector<64xf32>
    %784 = vector.multi_reduction <add>, %783, %cst_203 [0] : vector<16x64xf32> to vector<64xf32>
    %785 = vector.shape_cast %784 : vector<64xf32> to vector<1x64xf32>
    %786 = vector.extract_strided_slice %740 {offsets = [3, 0], sizes = [1, 64], strides = [1, 1]} : vector<8x64xf32> to vector<1x64xf32>
    %787 = vector.extract_strided_slice %741 {offsets = [0, 3], sizes = [16, 1], strides = [1, 1]} : vector<16x8xf32> to vector<16x1xf32>
    %788 = vector.broadcast %786 : vector<1x64xf32> to vector<16x64xf32>
    %789 = vector.broadcast %787 : vector<16x1xf32> to vector<16x64xf32>
    %790 = arith.mulf %788, %789 : vector<16x64xf32>
    %791 = vector.extract_strided_slice %739 {offsets = [3, 0, 0], sizes = [1, 16, 64], strides = [1, 1, 1]} : vector<8x16x64xf32> to vector<1x16x64xf32>
    %792 = vector.shape_cast %791 : vector<1x16x64xf32> to vector<16x64xf32>
    %793 = arith.mulf %792, %780 : vector<16x64xf32>
    %794 = arith.addf %793, %790 : vector<16x64xf32>
    %795 = vector.extract_strided_slice %742 {offsets = [0, 3], sizes = [16, 1], strides = [1, 1]} : vector<16x8xf32> to vector<16x1xf32>
    %796 = vector.broadcast %795 : vector<16x1xf32> to vector<16x64xf32>
    %797 = arith.mulf %794, %796 : vector<16x64xf32>
    %cst_204 = arith.constant dense<0.000000e+00> : vector<64xf32>
    %798 = vector.multi_reduction <add>, %797, %cst_204 [0] : vector<16x64xf32> to vector<64xf32>
    %799 = vector.shape_cast %798 : vector<64xf32> to vector<1x64xf32>
    %800 = vector.extract_strided_slice %740 {offsets = [4, 0], sizes = [1, 64], strides = [1, 1]} : vector<8x64xf32> to vector<1x64xf32>
    %801 = vector.extract_strided_slice %741 {offsets = [0, 4], sizes = [16, 1], strides = [1, 1]} : vector<16x8xf32> to vector<16x1xf32>
    %802 = vector.broadcast %800 : vector<1x64xf32> to vector<16x64xf32>
    %803 = vector.broadcast %801 : vector<16x1xf32> to vector<16x64xf32>
    %804 = arith.mulf %802, %803 : vector<16x64xf32>
    %805 = vector.extract_strided_slice %739 {offsets = [4, 0, 0], sizes = [1, 16, 64], strides = [1, 1, 1]} : vector<8x16x64xf32> to vector<1x16x64xf32>
    %806 = vector.shape_cast %805 : vector<1x16x64xf32> to vector<16x64xf32>
    %807 = arith.mulf %806, %794 : vector<16x64xf32>
    %808 = arith.addf %807, %804 : vector<16x64xf32>
    %809 = vector.extract_strided_slice %742 {offsets = [0, 4], sizes = [16, 1], strides = [1, 1]} : vector<16x8xf32> to vector<16x1xf32>
    %810 = vector.broadcast %809 : vector<16x1xf32> to vector<16x64xf32>
    %811 = arith.mulf %808, %810 : vector<16x64xf32>
    %cst_205 = arith.constant dense<0.000000e+00> : vector<64xf32>
    %812 = vector.multi_reduction <add>, %811, %cst_205 [0] : vector<16x64xf32> to vector<64xf32>
    %813 = vector.shape_cast %812 : vector<64xf32> to vector<1x64xf32>
    %814 = vector.extract_strided_slice %740 {offsets = [5, 0], sizes = [1, 64], strides = [1, 1]} : vector<8x64xf32> to vector<1x64xf32>
    %815 = vector.extract_strided_slice %741 {offsets = [0, 5], sizes = [16, 1], strides = [1, 1]} : vector<16x8xf32> to vector<16x1xf32>
    %816 = vector.broadcast %814 : vector<1x64xf32> to vector<16x64xf32>
    %817 = vector.broadcast %815 : vector<16x1xf32> to vector<16x64xf32>
    %818 = arith.mulf %816, %817 : vector<16x64xf32>
    %819 = vector.extract_strided_slice %739 {offsets = [5, 0, 0], sizes = [1, 16, 64], strides = [1, 1, 1]} : vector<8x16x64xf32> to vector<1x16x64xf32>
    %820 = vector.shape_cast %819 : vector<1x16x64xf32> to vector<16x64xf32>
    %821 = arith.mulf %820, %808 : vector<16x64xf32>
    %822 = arith.addf %821, %818 : vector<16x64xf32>
    %823 = vector.extract_strided_slice %742 {offsets = [0, 5], sizes = [16, 1], strides = [1, 1]} : vector<16x8xf32> to vector<16x1xf32>
    %824 = vector.broadcast %823 : vector<16x1xf32> to vector<16x64xf32>
    %825 = arith.mulf %822, %824 : vector<16x64xf32>
    %cst_206 = arith.constant dense<0.000000e+00> : vector<64xf32>
    %826 = vector.multi_reduction <add>, %825, %cst_206 [0] : vector<16x64xf32> to vector<64xf32>
    %827 = vector.shape_cast %826 : vector<64xf32> to vector<1x64xf32>
    %828 = vector.extract_strided_slice %740 {offsets = [6, 0], sizes = [1, 64], strides = [1, 1]} : vector<8x64xf32> to vector<1x64xf32>
    %829 = vector.extract_strided_slice %741 {offsets = [0, 6], sizes = [16, 1], strides = [1, 1]} : vector<16x8xf32> to vector<16x1xf32>
    %830 = vector.broadcast %828 : vector<1x64xf32> to vector<16x64xf32>
    %831 = vector.broadcast %829 : vector<16x1xf32> to vector<16x64xf32>
    %832 = arith.mulf %830, %831 : vector<16x64xf32>
    %833 = vector.extract_strided_slice %739 {offsets = [6, 0, 0], sizes = [1, 16, 64], strides = [1, 1, 1]} : vector<8x16x64xf32> to vector<1x16x64xf32>
    %834 = vector.shape_cast %833 : vector<1x16x64xf32> to vector<16x64xf32>
    %835 = arith.mulf %834, %822 : vector<16x64xf32>
    %836 = arith.addf %835, %832 : vector<16x64xf32>
    %837 = vector.extract_strided_slice %742 {offsets = [0, 6], sizes = [16, 1], strides = [1, 1]} : vector<16x8xf32> to vector<16x1xf32>
    %838 = vector.broadcast %837 : vector<16x1xf32> to vector<16x64xf32>
    %839 = arith.mulf %836, %838 : vector<16x64xf32>
    %cst_207 = arith.constant dense<0.000000e+00> : vector<64xf32>
    %840 = vector.multi_reduction <add>, %839, %cst_207 [0] : vector<16x64xf32> to vector<64xf32>
    %841 = vector.shape_cast %840 : vector<64xf32> to vector<1x64xf32>
    %842 = vector.extract_strided_slice %740 {offsets = [7, 0], sizes = [1, 64], strides = [1, 1]} : vector<8x64xf32> to vector<1x64xf32>
    %843 = vector.extract_strided_slice %741 {offsets = [0, 7], sizes = [16, 1], strides = [1, 1]} : vector<16x8xf32> to vector<16x1xf32>
    %844 = vector.broadcast %842 : vector<1x64xf32> to vector<16x64xf32>
    %845 = vector.broadcast %843 : vector<16x1xf32> to vector<16x64xf32>
    %846 = arith.mulf %844, %845 : vector<16x64xf32>
    %847 = vector.extract_strided_slice %739 {offsets = [7, 0, 0], sizes = [1, 16, 64], strides = [1, 1, 1]} : vector<8x16x64xf32> to vector<1x16x64xf32>
    %848 = vector.shape_cast %847 : vector<1x16x64xf32> to vector<16x64xf32>
    %849 = arith.mulf %848, %836 : vector<16x64xf32>
    %850 = arith.addf %849, %846 : vector<16x64xf32>
    %851 = vector.extract_strided_slice %742 {offsets = [0, 7], sizes = [16, 1], strides = [1, 1]} : vector<16x8xf32> to vector<16x1xf32>
    %852 = vector.broadcast %851 : vector<16x1xf32> to vector<16x64xf32>
    %853 = arith.mulf %850, %852 : vector<16x64xf32>
    %cst_208 = arith.constant dense<0.000000e+00> : vector<64xf32>
    %854 = vector.multi_reduction <add>, %853, %cst_208 [0] : vector<16x64xf32> to vector<64xf32>
    %855 = vector.shape_cast %854 : vector<64xf32> to vector<1x64xf32>
    %856 = tpu.concatenate %757, %771, %785, %799, %813, %827, %841, %855 in 0 : vector<1x64xf32>, vector<1x64xf32>, vector<1x64xf32>, vector<1x64xf32>, vector<1x64xf32>, vector<1x64xf32>, vector<1x64xf32>, vector<1x64xf32> -> vector<8x64xf32>
    %c0_209 = arith.constant 0 : index
    %c0_210 = arith.constant 0 : index
    %857 = vector.load %arg9[%c0_209, %c0_210] : memref<2x64xf32, #tpu.memory_space<vmem>>, vector<1x64xf32>
    %858 = vector.shape_cast %857 : vector<1x64xf32> to vector<64xf32>
    %859 = vector.shape_cast %858 : vector<64xf32> to vector<1x64xf32>
    %860 = vector.broadcast %859 : vector<1x64xf32> to vector<8x64xf32>
    %861 = arith.mulf %703, %860 : vector<8x64xf32>
    %862 = arith.addf %856, %861 : vector<8x64xf32>
    %863 = arith.negf %652 : vector<8x64xf32>
    %864 = math.exp %863 : vector<8x64xf32>
    %cst_211 = arith.constant 1.000000e+00 : f32
    %865 = vector.broadcast %cst_211 : f32 to vector<8x64xf32>
    %866 = arith.addf %865, %864 : vector<8x64xf32>
    %867 = arith.divf %865, %866 : vector<8x64xf32>
    %868 = arith.mulf %652, %867 : vector<8x64xf32>
    %869 = arith.mulf %862, %868 : vector<8x64xf32>
    %c0_212 = arith.constant 0 : index
    %c0_213 = arith.constant 0 : index
    %c0_214 = arith.constant 0 : index
    %870 = vector.load %arg10[%c0_212, %c0_213, %c0_214] : memref<2x64x32xf32, #tpu.memory_space<vmem>>, vector<1x64x32xf32>
    %871 = vector.shape_cast %870 : vector<1x64x32xf32> to vector<64x32xf32>
    %cst_215 = arith.constant dense<0.000000e+00> : vector<8x32xf32>
    %872 = tpu.matmul %869, %871, %cst_215 {dimension_numbers = #tpu.dot_dimension_numbers<[1], [0], [0], [1], [0, 0, 1, 1], [], []>} : vector<8x64xf32>, vector<64x32xf32>, vector<8x32xf32> -> vector<8x32xf32>
    %873 = arith.addf %872, %621 : vector<8x32xf32>
    %c0_216 = arith.constant 0 : index
    %c0_217 = arith.constant 0 : index
    %874 = vector.load %arg11[%c0_216, %c0_217] : memref<2x32xf32, #tpu.memory_space<vmem>>, vector<1x32xf32>
    %875 = vector.shape_cast %874 : vector<1x32xf32> to vector<32xf32>
    %c0_218 = arith.constant 0 : index
    %c0_219 = arith.constant 0 : index
    %876 = vector.load %arg12[%c0_218, %c0_219] : memref<2x32xf32, #tpu.memory_space<vmem>>, vector<1x32xf32>
    %877 = vector.shape_cast %876 : vector<1x32xf32> to vector<32xf32>
    %cst_220 = arith.constant dense<0.000000e+00> : vector<8xf32>
    %878 = vector.multi_reduction <add>, %873, %cst_220 [1] : vector<8x32xf32> to vector<8xf32>
    %879 = vector.shape_cast %878 : vector<8xf32> to vector<8x1xf32>
    %cst_221 = arith.constant 3.200000e+01 : f32
    %880 = vector.broadcast %cst_221 : f32 to vector<8x1xf32>
    %881 = arith.divf %879, %880 : vector<8x1xf32>
    %882 = vector.broadcast %881 : vector<8x1xf32> to vector<8x32xf32>
    %883 = arith.subf %873, %882 : vector<8x32xf32>
    %884 = arith.mulf %883, %883 : vector<8x32xf32>
    %cst_222 = arith.constant dense<0.000000e+00> : vector<8xf32>
    %885 = vector.multi_reduction <add>, %884, %cst_222 [1] : vector<8x32xf32> to vector<8xf32>
    %886 = vector.shape_cast %885 : vector<8xf32> to vector<8x1xf32>
    %cst_223 = arith.constant 3.200000e+01 : f32
    %887 = vector.broadcast %cst_223 : f32 to vector<8x1xf32>
    %888 = arith.divf %886, %887 : vector<8x1xf32>
    %cst_224 = arith.constant 9.99999974E-6 : f32
    %889 = vector.broadcast %cst_224 : f32 to vector<8x1xf32>
    %890 = arith.addf %888, %889 : vector<8x1xf32>
    %891 = math.rsqrt %890 : vector<8x1xf32>
    %892 = vector.broadcast %891 : vector<8x1xf32> to vector<8x32xf32>
    %893 = arith.mulf %883, %892 : vector<8x32xf32>
    %894 = vector.shape_cast %875 : vector<32xf32> to vector<1x32xf32>
    %895 = vector.broadcast %894 : vector<1x32xf32> to vector<8x32xf32>
    %896 = arith.mulf %893, %895 : vector<8x32xf32>
    %897 = vector.shape_cast %877 : vector<32xf32> to vector<1x32xf32>
    %898 = vector.broadcast %897 : vector<1x32xf32> to vector<8x32xf32>
    %899 = arith.addf %896, %898 : vector<8x32xf32>
    %c0_225 = arith.constant 0 : index
    %c0_226 = arith.constant 0 : index
    %c0_227 = arith.constant 0 : index
    %900 = vector.load %arg13[%c0_225, %c0_226, %c0_227] : memref<2x32x256xf32, #tpu.memory_space<vmem>>, vector<1x32x256xf32>
    %901 = vector.shape_cast %900 : vector<1x32x256xf32> to vector<32x256xf32>
    %cst_228 = arith.constant dense<0.000000e+00> : vector<8x256xf32>
    %902 = tpu.matmul %899, %901, %cst_228 {dimension_numbers = #tpu.dot_dimension_numbers<[1], [0], [0], [1], [0, 0, 1, 1], [], []>} : vector<8x32xf32>, vector<32x256xf32>, vector<8x256xf32> -> vector<8x256xf32>
    %903 = vector.extract_strided_slice %902 {offsets = [0, 0], sizes = [8, 128], strides = [1, 1]} : vector<8x256xf32> to vector<8x128xf32>
    %904 = vector.extract_strided_slice %902 {offsets = [0, 128], sizes = [8, 128], strides = [1, 1]} : vector<8x256xf32> to vector<8x128xf32>
    %905 = arith.negf %904 : vector<8x128xf32>
    %906 = math.exp %905 : vector<8x128xf32>
    %cst_229 = arith.constant 1.000000e+00 : f32
    %907 = vector.broadcast %cst_229 : f32 to vector<8x128xf32>
    %908 = arith.addf %907, %906 : vector<8x128xf32>
    %909 = arith.divf %907, %908 : vector<8x128xf32>
    %910 = arith.mulf %904, %909 : vector<8x128xf32>
    %911 = arith.mulf %903, %910 : vector<8x128xf32>
    %c0_230 = arith.constant 0 : index
    %c0_231 = arith.constant 0 : index
    %c0_232 = arith.constant 0 : index
    %912 = vector.load %arg14[%c0_230, %c0_231, %c0_232] : memref<2x128x32xf32, #tpu.memory_space<vmem>>, vector<1x128x32xf32>
    %913 = vector.shape_cast %912 : vector<1x128x32xf32> to vector<128x32xf32>
    %cst_233 = arith.constant dense<0.000000e+00> : vector<8x32xf32>
    %914 = tpu.matmul %911, %913, %cst_233 {dimension_numbers = #tpu.dot_dimension_numbers<[1], [0], [0], [1], [0, 0, 1, 1], [], []>} : vector<8x128xf32>, vector<128x32xf32>, vector<8x32xf32> -> vector<8x32xf32>
    %915 = arith.addf %914, %873 : vector<8x32xf32>
    %c1_234 = arith.constant 1 : index
    %c0_235 = arith.constant 0 : index
    %916 = vector.load %arg1[%c1_234, %c0_235] : memref<2x32xf32, #tpu.memory_space<vmem>>, vector<1x32xf32>
    %917 = vector.shape_cast %916 : vector<1x32xf32> to vector<32xf32>
    %c1_236 = arith.constant 1 : index
    %c0_237 = arith.constant 0 : index
    %918 = vector.load %arg2[%c1_236, %c0_237] : memref<2x32xf32, #tpu.memory_space<vmem>>, vector<1x32xf32>
    %919 = vector.shape_cast %918 : vector<1x32xf32> to vector<32xf32>
    %cst_238 = arith.constant dense<0.000000e+00> : vector<8xf32>
    %920 = vector.multi_reduction <add>, %915, %cst_238 [1] : vector<8x32xf32> to vector<8xf32>
    %921 = vector.shape_cast %920 : vector<8xf32> to vector<8x1xf32>
    %cst_239 = arith.constant 3.200000e+01 : f32
    %922 = vector.broadcast %cst_239 : f32 to vector<8x1xf32>
    %923 = arith.divf %921, %922 : vector<8x1xf32>
    %924 = vector.broadcast %923 : vector<8x1xf32> to vector<8x32xf32>
    %925 = arith.subf %915, %924 : vector<8x32xf32>
    %926 = arith.mulf %925, %925 : vector<8x32xf32>
    %cst_240 = arith.constant dense<0.000000e+00> : vector<8xf32>
    %927 = vector.multi_reduction <add>, %926, %cst_240 [1] : vector<8x32xf32> to vector<8xf32>
    %928 = vector.shape_cast %927 : vector<8xf32> to vector<8x1xf32>
    %cst_241 = arith.constant 3.200000e+01 : f32
    %929 = vector.broadcast %cst_241 : f32 to vector<8x1xf32>
    %930 = arith.divf %928, %929 : vector<8x1xf32>
    %cst_242 = arith.constant 9.99999974E-6 : f32
    %931 = vector.broadcast %cst_242 : f32 to vector<8x1xf32>
    %932 = arith.addf %930, %931 : vector<8x1xf32>
    %933 = math.rsqrt %932 : vector<8x1xf32>
    %934 = vector.broadcast %933 : vector<8x1xf32> to vector<8x32xf32>
    %935 = arith.mulf %925, %934 : vector<8x32xf32>
    %936 = vector.shape_cast %917 : vector<32xf32> to vector<1x32xf32>
    %937 = vector.broadcast %936 : vector<1x32xf32> to vector<8x32xf32>
    %938 = arith.mulf %935, %937 : vector<8x32xf32>
    %939 = vector.shape_cast %919 : vector<32xf32> to vector<1x32xf32>
    %940 = vector.broadcast %939 : vector<1x32xf32> to vector<8x32xf32>
    %941 = arith.addf %938, %940 : vector<8x32xf32>
    %c1_243 = arith.constant 1 : index
    %c0_244 = arith.constant 0 : index
    %c0_245 = arith.constant 0 : index
    %942 = vector.load %arg3[%c1_243, %c0_244, %c0_245] : memref<2x32x128xf32, #tpu.memory_space<vmem>>, vector<1x32x128xf32>
    %943 = vector.shape_cast %942 : vector<1x32x128xf32> to vector<32x128xf32>
    %cst_246 = arith.constant dense<0.000000e+00> : vector<8x128xf32>
    %944 = tpu.matmul %941, %943, %cst_246 {dimension_numbers = #tpu.dot_dimension_numbers<[1], [0], [0], [1], [0, 0, 1, 1], [], []>} : vector<8x32xf32>, vector<32x128xf32>, vector<8x128xf32> -> vector<8x128xf32>
    %945 = vector.extract_strided_slice %944 {offsets = [0, 0], sizes = [8, 64], strides = [1, 1]} : vector<8x128xf32> to vector<8x64xf32>
    %946 = vector.extract_strided_slice %944 {offsets = [0, 64], sizes = [8, 64], strides = [1, 1]} : vector<8x128xf32> to vector<8x64xf32>
    %c1_247 = arith.constant 1 : index
    %c0_248 = arith.constant 0 : index
    %c0_249 = arith.constant 0 : index
    %947 = vector.load %arg4[%c1_247, %c0_248, %c0_249] : memref<2x4x64xf32, #tpu.memory_space<vmem>>, vector<1x4x64xf32>
    %948 = vector.shape_cast %947 : vector<1x4x64xf32> to vector<4x64xf32>
    %949 = vector.extract_strided_slice %948 {offsets = [3, 0], sizes = [1, 64], strides = [1, 1]} : vector<4x64xf32> to vector<1x64xf32>
    %950 = vector.shape_cast %949 : vector<1x64xf32> to vector<64xf32>
    %951 = vector.shape_cast %950 : vector<64xf32> to vector<1x64xf32>
    %952 = vector.broadcast %951 : vector<1x64xf32> to vector<8x64xf32>
    %953 = arith.mulf %945, %952 : vector<8x64xf32>
    %c3_i32_250 = arith.constant 3 : i32
    %954 = tpu.dynamic_rotate %945 by %c3_i32_250 dim 0 : vector<8x64xf32>, i32 -> vector<8x64xf32>
    %c3_i32_251 = arith.constant 3 : i32
    %955 = vector.broadcast %c3_i32_251 : i32 to vector<8x64xi32>
    %956 = arith.cmpi sge, %0, %955 : vector<8x64xi32>
    %cst_252 = arith.constant 0.000000e+00 : f32
    %957 = vector.broadcast %cst_252 : f32 to vector<8x64xf32>
    %958 = arith.select %956, %954, %957 : vector<8x64xi1>, vector<8x64xf32>
    %959 = vector.extract_strided_slice %948 {offsets = [0, 0], sizes = [1, 64], strides = [1, 1]} : vector<4x64xf32> to vector<1x64xf32>
    %960 = vector.shape_cast %959 : vector<1x64xf32> to vector<64xf32>
    %961 = vector.shape_cast %960 : vector<64xf32> to vector<1x64xf32>
    %962 = vector.broadcast %961 : vector<1x64xf32> to vector<8x64xf32>
    %963 = arith.mulf %958, %962 : vector<8x64xf32>
    %964 = arith.addf %953, %963 : vector<8x64xf32>
    %c2_i32_253 = arith.constant 2 : i32
    %965 = tpu.dynamic_rotate %945 by %c2_i32_253 dim 0 : vector<8x64xf32>, i32 -> vector<8x64xf32>
    %c2_i32_254 = arith.constant 2 : i32
    %966 = vector.broadcast %c2_i32_254 : i32 to vector<8x64xi32>
    %967 = arith.cmpi sge, %0, %966 : vector<8x64xi32>
    %cst_255 = arith.constant 0.000000e+00 : f32
    %968 = vector.broadcast %cst_255 : f32 to vector<8x64xf32>
    %969 = arith.select %967, %965, %968 : vector<8x64xi1>, vector<8x64xf32>
    %970 = vector.extract_strided_slice %948 {offsets = [1, 0], sizes = [1, 64], strides = [1, 1]} : vector<4x64xf32> to vector<1x64xf32>
    %971 = vector.shape_cast %970 : vector<1x64xf32> to vector<64xf32>
    %972 = vector.shape_cast %971 : vector<64xf32> to vector<1x64xf32>
    %973 = vector.broadcast %972 : vector<1x64xf32> to vector<8x64xf32>
    %974 = arith.mulf %969, %973 : vector<8x64xf32>
    %975 = arith.addf %964, %974 : vector<8x64xf32>
    %c1_i32_256 = arith.constant 1 : i32
    %976 = tpu.dynamic_rotate %945 by %c1_i32_256 dim 0 : vector<8x64xf32>, i32 -> vector<8x64xf32>
    %c1_i32_257 = arith.constant 1 : i32
    %977 = vector.broadcast %c1_i32_257 : i32 to vector<8x64xi32>
    %978 = arith.cmpi sge, %0, %977 : vector<8x64xi32>
    %cst_258 = arith.constant 0.000000e+00 : f32
    %979 = vector.broadcast %cst_258 : f32 to vector<8x64xf32>
    %980 = arith.select %978, %976, %979 : vector<8x64xi1>, vector<8x64xf32>
    %981 = vector.extract_strided_slice %948 {offsets = [2, 0], sizes = [1, 64], strides = [1, 1]} : vector<4x64xf32> to vector<1x64xf32>
    %982 = vector.shape_cast %981 : vector<1x64xf32> to vector<64xf32>
    %983 = vector.shape_cast %982 : vector<64xf32> to vector<1x64xf32>
    %984 = vector.broadcast %983 : vector<1x64xf32> to vector<8x64xf32>
    %985 = arith.mulf %980, %984 : vector<8x64xf32>
    %986 = arith.addf %975, %985 : vector<8x64xf32>
    %c1_259 = arith.constant 1 : index
    %c0_260 = arith.constant 0 : index
    %987 = vector.load %arg5[%c1_259, %c0_260] : memref<2x64xf32, #tpu.memory_space<vmem>>, vector<1x64xf32>
    %988 = vector.shape_cast %987 : vector<1x64xf32> to vector<64xf32>
    %989 = vector.shape_cast %988 : vector<64xf32> to vector<1x64xf32>
    %990 = vector.broadcast %989 : vector<1x64xf32> to vector<8x64xf32>
    %991 = arith.addf %986, %990 : vector<8x64xf32>
    %992 = arith.negf %991 : vector<8x64xf32>
    %993 = math.exp %992 : vector<8x64xf32>
    %cst_261 = arith.constant 1.000000e+00 : f32
    %994 = vector.broadcast %cst_261 : f32 to vector<8x64xf32>
    %995 = arith.addf %994, %993 : vector<8x64xf32>
    %996 = arith.divf %994, %995 : vector<8x64xf32>
    %997 = arith.mulf %991, %996 : vector<8x64xf32>
    %c1_262 = arith.constant 1 : index
    %c0_263 = arith.constant 0 : index
    %c0_264 = arith.constant 0 : index
    %998 = vector.load %arg6[%c1_262, %c0_263, %c0_264] : memref<2x64x96xf32, #tpu.memory_space<vmem>>, vector<1x64x96xf32>
    %999 = vector.shape_cast %998 : vector<1x64x96xf32> to vector<64x96xf32>
    %cst_265 = arith.constant dense<0.000000e+00> : vector<8x96xf32>
    %1000 = tpu.matmul %997, %999, %cst_265 {dimension_numbers = #tpu.dot_dimension_numbers<[1], [0], [0], [1], [0, 0, 1, 1], [], []>} : vector<8x64xf32>, vector<64x96xf32>, vector<8x96xf32> -> vector<8x96xf32>
    %1001 = vector.extract_strided_slice %1000 {offsets = [0, 0], sizes = [8, 64], strides = [1, 1]} : vector<8x96xf32> to vector<8x64xf32>
    %c1_266 = arith.constant 1 : index
    %c0_267 = arith.constant 0 : index
    %1002 = vector.load %arg7[%c1_266, %c0_267] : memref<2x64xf32, #tpu.memory_space<vmem>>, vector<1x64xf32>
    %1003 = vector.shape_cast %1002 : vector<1x64xf32> to vector<64xf32>
    %1004 = vector.shape_cast %1003 : vector<64xf32> to vector<1x64xf32>
    %1005 = vector.broadcast %1004 : vector<1x64xf32> to vector<8x64xf32>
    %1006 = arith.addf %1001, %1005 : vector<8x64xf32>
    %cst_268 = arith.constant 0.000000e+00 : f32
    %1007 = vector.broadcast %cst_268 : f32 to vector<8x64xf32>
    %1008 = arith.maximumf %1006, %1007 : vector<8x64xf32>
    %1009 = vector.broadcast %cst_268 : f32 to vector<8x64xf32>
    %1010 = arith.subf %1006, %1009 : vector<8x64xf32>
    %1011 = arith.cmpf one, %1010, %1010 : vector<8x64xf32>
    %1012 = vector.broadcast %cst_268 : f32 to vector<8x64xf32>
    %1013 = arith.addf %1006, %1012 : vector<8x64xf32>
    %1014 = math.absf %1010 : vector<8x64xf32>
    %cst_269 = arith.constant 0.000000e+00 : f32
    %1015 = vector.broadcast %cst_269 : f32 to vector<8x64xf32>
    %1016 = arith.subf %1015, %1014 : vector<8x64xf32>
    %1017 = math.exp %1016 : vector<8x64xf32>
    %1018 = math.log1p %1017 : vector<8x64xf32>
    %1019 = arith.addf %1008, %1018 : vector<8x64xf32>
    %1020 = arith.select %1011, %1013, %1019 : vector<8x64xi1>, vector<8x64xf32>
    %1021 = vector.extract_strided_slice %1000 {offsets = [0, 64], sizes = [8, 16], strides = [1, 1]} : vector<8x96xf32> to vector<8x16xf32>
    %1022 = vector.extract_strided_slice %1000 {offsets = [0, 80], sizes = [8, 16], strides = [1, 1]} : vector<8x96xf32> to vector<8x16xf32>
    %c1_270 = arith.constant 1 : index
    %c0_271 = arith.constant 0 : index
    %c0_272 = arith.constant 0 : index
    %1023 = vector.load %arg8[%c1_270, %c0_271, %c0_272] : memref<2x16x64xf32, #tpu.memory_space<vmem>>, vector<1x16x64xf32>
    %1024 = vector.shape_cast %1023 : vector<1x16x64xf32> to vector<16x64xf32>
    %1025 = math.exp %1024 : vector<16x64xf32>
    %cst_273 = arith.constant 0.000000e+00 : f32
    %1026 = vector.broadcast %cst_273 : f32 to vector<16x64xf32>
    %1027 = arith.subf %1026, %1025 : vector<16x64xf32>
    %1028 = vector.shape_cast %1020 : vector<8x64xf32> to vector<8x1x64xf32>
    %1029 = vector.shape_cast %1027 : vector<16x64xf32> to vector<1x16x64xf32>
    %1030 = vector.broadcast %1028 : vector<8x1x64xf32> to vector<8x16x64xf32>
    %1031 = vector.broadcast %1029 : vector<1x16x64xf32> to vector<8x16x64xf32>
    %1032 = arith.mulf %1030, %1031 : vector<8x16x64xf32>
    %1033 = math.exp %1032 : vector<8x16x64xf32>
    %1034 = arith.mulf %1020, %997 : vector<8x64xf32>
    %1035 = tpu.transpose %1021, [1, 0] : vector<8x16xf32> -> vector<16x8xf32>
    %1036 = tpu.transpose %1022, [1, 0] : vector<8x16xf32> -> vector<16x8xf32>
    %cst_274 = arith.constant 0.000000e+00 : f32
    %1037 = vector.broadcast %cst_274 : f32 to vector<16x64xf32>
    %1038 = vector.extract_strided_slice %1034 {offsets = [0, 0], sizes = [1, 64], strides = [1, 1]} : vector<8x64xf32> to vector<1x64xf32>
    %1039 = vector.extract_strided_slice %1035 {offsets = [0, 0], sizes = [16, 1], strides = [1, 1]} : vector<16x8xf32> to vector<16x1xf32>
    %1040 = vector.broadcast %1038 : vector<1x64xf32> to vector<16x64xf32>
    %1041 = vector.broadcast %1039 : vector<16x1xf32> to vector<16x64xf32>
    %1042 = arith.mulf %1040, %1041 : vector<16x64xf32>
    %1043 = vector.extract_strided_slice %1033 {offsets = [0, 0, 0], sizes = [1, 16, 64], strides = [1, 1, 1]} : vector<8x16x64xf32> to vector<1x16x64xf32>
    %1044 = vector.shape_cast %1043 : vector<1x16x64xf32> to vector<16x64xf32>
    %1045 = arith.mulf %1044, %1037 : vector<16x64xf32>
    %1046 = arith.addf %1045, %1042 : vector<16x64xf32>
    %1047 = vector.extract_strided_slice %1036 {offsets = [0, 0], sizes = [16, 1], strides = [1, 1]} : vector<16x8xf32> to vector<16x1xf32>
    %1048 = vector.broadcast %1047 : vector<16x1xf32> to vector<16x64xf32>
    %1049 = arith.mulf %1046, %1048 : vector<16x64xf32>
    %cst_275 = arith.constant dense<0.000000e+00> : vector<64xf32>
    %1050 = vector.multi_reduction <add>, %1049, %cst_275 [0] : vector<16x64xf32> to vector<64xf32>
    %1051 = vector.shape_cast %1050 : vector<64xf32> to vector<1x64xf32>
    %1052 = vector.extract_strided_slice %1034 {offsets = [1, 0], sizes = [1, 64], strides = [1, 1]} : vector<8x64xf32> to vector<1x64xf32>
    %1053 = vector.extract_strided_slice %1035 {offsets = [0, 1], sizes = [16, 1], strides = [1, 1]} : vector<16x8xf32> to vector<16x1xf32>
    %1054 = vector.broadcast %1052 : vector<1x64xf32> to vector<16x64xf32>
    %1055 = vector.broadcast %1053 : vector<16x1xf32> to vector<16x64xf32>
    %1056 = arith.mulf %1054, %1055 : vector<16x64xf32>
    %1057 = vector.extract_strided_slice %1033 {offsets = [1, 0, 0], sizes = [1, 16, 64], strides = [1, 1, 1]} : vector<8x16x64xf32> to vector<1x16x64xf32>
    %1058 = vector.shape_cast %1057 : vector<1x16x64xf32> to vector<16x64xf32>
    %1059 = arith.mulf %1058, %1046 : vector<16x64xf32>
    %1060 = arith.addf %1059, %1056 : vector<16x64xf32>
    %1061 = vector.extract_strided_slice %1036 {offsets = [0, 1], sizes = [16, 1], strides = [1, 1]} : vector<16x8xf32> to vector<16x1xf32>
    %1062 = vector.broadcast %1061 : vector<16x1xf32> to vector<16x64xf32>
    %1063 = arith.mulf %1060, %1062 : vector<16x64xf32>
    %cst_276 = arith.constant dense<0.000000e+00> : vector<64xf32>
    %1064 = vector.multi_reduction <add>, %1063, %cst_276 [0] : vector<16x64xf32> to vector<64xf32>
    %1065 = vector.shape_cast %1064 : vector<64xf32> to vector<1x64xf32>
    %1066 = vector.extract_strided_slice %1034 {offsets = [2, 0], sizes = [1, 64], strides = [1, 1]} : vector<8x64xf32> to vector<1x64xf32>
    %1067 = vector.extract_strided_slice %1035 {offsets = [0, 2], sizes = [16, 1], strides = [1, 1]} : vector<16x8xf32> to vector<16x1xf32>
    %1068 = vector.broadcast %1066 : vector<1x64xf32> to vector<16x64xf32>
    %1069 = vector.broadcast %1067 : vector<16x1xf32> to vector<16x64xf32>
    %1070 = arith.mulf %1068, %1069 : vector<16x64xf32>
    %1071 = vector.extract_strided_slice %1033 {offsets = [2, 0, 0], sizes = [1, 16, 64], strides = [1, 1, 1]} : vector<8x16x64xf32> to vector<1x16x64xf32>
    %1072 = vector.shape_cast %1071 : vector<1x16x64xf32> to vector<16x64xf32>
    %1073 = arith.mulf %1072, %1060 : vector<16x64xf32>
    %1074 = arith.addf %1073, %1070 : vector<16x64xf32>
    %1075 = vector.extract_strided_slice %1036 {offsets = [0, 2], sizes = [16, 1], strides = [1, 1]} : vector<16x8xf32> to vector<16x1xf32>
    %1076 = vector.broadcast %1075 : vector<16x1xf32> to vector<16x64xf32>
    %1077 = arith.mulf %1074, %1076 : vector<16x64xf32>
    %cst_277 = arith.constant dense<0.000000e+00> : vector<64xf32>
    %1078 = vector.multi_reduction <add>, %1077, %cst_277 [0] : vector<16x64xf32> to vector<64xf32>
    %1079 = vector.shape_cast %1078 : vector<64xf32> to vector<1x64xf32>
    %1080 = vector.extract_strided_slice %1034 {offsets = [3, 0], sizes = [1, 64], strides = [1, 1]} : vector<8x64xf32> to vector<1x64xf32>
    %1081 = vector.extract_strided_slice %1035 {offsets = [0, 3], sizes = [16, 1], strides = [1, 1]} : vector<16x8xf32> to vector<16x1xf32>
    %1082 = vector.broadcast %1080 : vector<1x64xf32> to vector<16x64xf32>
    %1083 = vector.broadcast %1081 : vector<16x1xf32> to vector<16x64xf32>
    %1084 = arith.mulf %1082, %1083 : vector<16x64xf32>
    %1085 = vector.extract_strided_slice %1033 {offsets = [3, 0, 0], sizes = [1, 16, 64], strides = [1, 1, 1]} : vector<8x16x64xf32> to vector<1x16x64xf32>
    %1086 = vector.shape_cast %1085 : vector<1x16x64xf32> to vector<16x64xf32>
    %1087 = arith.mulf %1086, %1074 : vector<16x64xf32>
    %1088 = arith.addf %1087, %1084 : vector<16x64xf32>
    %1089 = vector.extract_strided_slice %1036 {offsets = [0, 3], sizes = [16, 1], strides = [1, 1]} : vector<16x8xf32> to vector<16x1xf32>
    %1090 = vector.broadcast %1089 : vector<16x1xf32> to vector<16x64xf32>
    %1091 = arith.mulf %1088, %1090 : vector<16x64xf32>
    %cst_278 = arith.constant dense<0.000000e+00> : vector<64xf32>
    %1092 = vector.multi_reduction <add>, %1091, %cst_278 [0] : vector<16x64xf32> to vector<64xf32>
    %1093 = vector.shape_cast %1092 : vector<64xf32> to vector<1x64xf32>
    %1094 = vector.extract_strided_slice %1034 {offsets = [4, 0], sizes = [1, 64], strides = [1, 1]} : vector<8x64xf32> to vector<1x64xf32>
    %1095 = vector.extract_strided_slice %1035 {offsets = [0, 4], sizes = [16, 1], strides = [1, 1]} : vector<16x8xf32> to vector<16x1xf32>
    %1096 = vector.broadcast %1094 : vector<1x64xf32> to vector<16x64xf32>
    %1097 = vector.broadcast %1095 : vector<16x1xf32> to vector<16x64xf32>
    %1098 = arith.mulf %1096, %1097 : vector<16x64xf32>
    %1099 = vector.extract_strided_slice %1033 {offsets = [4, 0, 0], sizes = [1, 16, 64], strides = [1, 1, 1]} : vector<8x16x64xf32> to vector<1x16x64xf32>
    %1100 = vector.shape_cast %1099 : vector<1x16x64xf32> to vector<16x64xf32>
    %1101 = arith.mulf %1100, %1088 : vector<16x64xf32>
    %1102 = arith.addf %1101, %1098 : vector<16x64xf32>
    %1103 = vector.extract_strided_slice %1036 {offsets = [0, 4], sizes = [16, 1], strides = [1, 1]} : vector<16x8xf32> to vector<16x1xf32>
    %1104 = vector.broadcast %1103 : vector<16x1xf32> to vector<16x64xf32>
    %1105 = arith.mulf %1102, %1104 : vector<16x64xf32>
    %cst_279 = arith.constant dense<0.000000e+00> : vector<64xf32>
    %1106 = vector.multi_reduction <add>, %1105, %cst_279 [0] : vector<16x64xf32> to vector<64xf32>
    %1107 = vector.shape_cast %1106 : vector<64xf32> to vector<1x64xf32>
    %1108 = vector.extract_strided_slice %1034 {offsets = [5, 0], sizes = [1, 64], strides = [1, 1]} : vector<8x64xf32> to vector<1x64xf32>
    %1109 = vector.extract_strided_slice %1035 {offsets = [0, 5], sizes = [16, 1], strides = [1, 1]} : vector<16x8xf32> to vector<16x1xf32>
    %1110 = vector.broadcast %1108 : vector<1x64xf32> to vector<16x64xf32>
    %1111 = vector.broadcast %1109 : vector<16x1xf32> to vector<16x64xf32>
    %1112 = arith.mulf %1110, %1111 : vector<16x64xf32>
    %1113 = vector.extract_strided_slice %1033 {offsets = [5, 0, 0], sizes = [1, 16, 64], strides = [1, 1, 1]} : vector<8x16x64xf32> to vector<1x16x64xf32>
    %1114 = vector.shape_cast %1113 : vector<1x16x64xf32> to vector<16x64xf32>
    %1115 = arith.mulf %1114, %1102 : vector<16x64xf32>
    %1116 = arith.addf %1115, %1112 : vector<16x64xf32>
    %1117 = vector.extract_strided_slice %1036 {offsets = [0, 5], sizes = [16, 1], strides = [1, 1]} : vector<16x8xf32> to vector<16x1xf32>
    %1118 = vector.broadcast %1117 : vector<16x1xf32> to vector<16x64xf32>
    %1119 = arith.mulf %1116, %1118 : vector<16x64xf32>
    %cst_280 = arith.constant dense<0.000000e+00> : vector<64xf32>
    %1120 = vector.multi_reduction <add>, %1119, %cst_280 [0] : vector<16x64xf32> to vector<64xf32>
    %1121 = vector.shape_cast %1120 : vector<64xf32> to vector<1x64xf32>
    %1122 = vector.extract_strided_slice %1034 {offsets = [6, 0], sizes = [1, 64], strides = [1, 1]} : vector<8x64xf32> to vector<1x64xf32>
    %1123 = vector.extract_strided_slice %1035 {offsets = [0, 6], sizes = [16, 1], strides = [1, 1]} : vector<16x8xf32> to vector<16x1xf32>
    %1124 = vector.broadcast %1122 : vector<1x64xf32> to vector<16x64xf32>
    %1125 = vector.broadcast %1123 : vector<16x1xf32> to vector<16x64xf32>
    %1126 = arith.mulf %1124, %1125 : vector<16x64xf32>
    %1127 = vector.extract_strided_slice %1033 {offsets = [6, 0, 0], sizes = [1, 16, 64], strides = [1, 1, 1]} : vector<8x16x64xf32> to vector<1x16x64xf32>
    %1128 = vector.shape_cast %1127 : vector<1x16x64xf32> to vector<16x64xf32>
    %1129 = arith.mulf %1128, %1116 : vector<16x64xf32>
    %1130 = arith.addf %1129, %1126 : vector<16x64xf32>
    %1131 = vector.extract_strided_slice %1036 {offsets = [0, 6], sizes = [16, 1], strides = [1, 1]} : vector<16x8xf32> to vector<16x1xf32>
    %1132 = vector.broadcast %1131 : vector<16x1xf32> to vector<16x64xf32>
    %1133 = arith.mulf %1130, %1132 : vector<16x64xf32>
    %cst_281 = arith.constant dense<0.000000e+00> : vector<64xf32>
    %1134 = vector.multi_reduction <add>, %1133, %cst_281 [0] : vector<16x64xf32> to vector<64xf32>
    %1135 = vector.shape_cast %1134 : vector<64xf32> to vector<1x64xf32>
    %1136 = vector.extract_strided_slice %1034 {offsets = [7, 0], sizes = [1, 64], strides = [1, 1]} : vector<8x64xf32> to vector<1x64xf32>
    %1137 = vector.extract_strided_slice %1035 {offsets = [0, 7], sizes = [16, 1], strides = [1, 1]} : vector<16x8xf32> to vector<16x1xf32>
    %1138 = vector.broadcast %1136 : vector<1x64xf32> to vector<16x64xf32>
    %1139 = vector.broadcast %1137 : vector<16x1xf32> to vector<16x64xf32>
    %1140 = arith.mulf %1138, %1139 : vector<16x64xf32>
    %1141 = vector.extract_strided_slice %1033 {offsets = [7, 0, 0], sizes = [1, 16, 64], strides = [1, 1, 1]} : vector<8x16x64xf32> to vector<1x16x64xf32>
    %1142 = vector.shape_cast %1141 : vector<1x16x64xf32> to vector<16x64xf32>
    %1143 = arith.mulf %1142, %1130 : vector<16x64xf32>
    %1144 = arith.addf %1143, %1140 : vector<16x64xf32>
    %1145 = vector.extract_strided_slice %1036 {offsets = [0, 7], sizes = [16, 1], strides = [1, 1]} : vector<16x8xf32> to vector<16x1xf32>
    %1146 = vector.broadcast %1145 : vector<16x1xf32> to vector<16x64xf32>
    %1147 = arith.mulf %1144, %1146 : vector<16x64xf32>
    %cst_282 = arith.constant dense<0.000000e+00> : vector<64xf32>
    %1148 = vector.multi_reduction <add>, %1147, %cst_282 [0] : vector<16x64xf32> to vector<64xf32>
    %1149 = vector.shape_cast %1148 : vector<64xf32> to vector<1x64xf32>
    %1150 = tpu.concatenate %1051, %1065, %1079, %1093, %1107, %1121, %1135, %1149 in 0 : vector<1x64xf32>, vector<1x64xf32>, vector<1x64xf32>, vector<1x64xf32>, vector<1x64xf32>, vector<1x64xf32>, vector<1x64xf32>, vector<1x64xf32> -> vector<8x64xf32>
    %c1_283 = arith.constant 1 : index
    %c0_284 = arith.constant 0 : index
    %1151 = vector.load %arg9[%c1_283, %c0_284] : memref<2x64xf32, #tpu.memory_space<vmem>>, vector<1x64xf32>
    %1152 = vector.shape_cast %1151 : vector<1x64xf32> to vector<64xf32>
    %1153 = vector.shape_cast %1152 : vector<64xf32> to vector<1x64xf32>
    %1154 = vector.broadcast %1153 : vector<1x64xf32> to vector<8x64xf32>
    %1155 = arith.mulf %997, %1154 : vector<8x64xf32>
    %1156 = arith.addf %1150, %1155 : vector<8x64xf32>
    %1157 = arith.negf %946 : vector<8x64xf32>
    %1158 = math.exp %1157 : vector<8x64xf32>
    %cst_285 = arith.constant 1.000000e+00 : f32
    %1159 = vector.broadcast %cst_285 : f32 to vector<8x64xf32>
    %1160 = arith.addf %1159, %1158 : vector<8x64xf32>
    %1161 = arith.divf %1159, %1160 : vector<8x64xf32>
    %1162 = arith.mulf %946, %1161 : vector<8x64xf32>
    %1163 = arith.mulf %1156, %1162 : vector<8x64xf32>
    %c1_286 = arith.constant 1 : index
    %c0_287 = arith.constant 0 : index
    %c0_288 = arith.constant 0 : index
    %1164 = vector.load %arg10[%c1_286, %c0_287, %c0_288] : memref<2x64x32xf32, #tpu.memory_space<vmem>>, vector<1x64x32xf32>
    %1165 = vector.shape_cast %1164 : vector<1x64x32xf32> to vector<64x32xf32>
    %cst_289 = arith.constant dense<0.000000e+00> : vector<8x32xf32>
    %1166 = tpu.matmul %1163, %1165, %cst_289 {dimension_numbers = #tpu.dot_dimension_numbers<[1], [0], [0], [1], [0, 0, 1, 1], [], []>} : vector<8x64xf32>, vector<64x32xf32>, vector<8x32xf32> -> vector<8x32xf32>
    %1167 = arith.addf %1166, %915 : vector<8x32xf32>
    %c1_290 = arith.constant 1 : index
    %c0_291 = arith.constant 0 : index
    %1168 = vector.load %arg11[%c1_290, %c0_291] : memref<2x32xf32, #tpu.memory_space<vmem>>, vector<1x32xf32>
    %1169 = vector.shape_cast %1168 : vector<1x32xf32> to vector<32xf32>
    %c1_292 = arith.constant 1 : index
    %c0_293 = arith.constant 0 : index
    %1170 = vector.load %arg12[%c1_292, %c0_293] : memref<2x32xf32, #tpu.memory_space<vmem>>, vector<1x32xf32>
    %1171 = vector.shape_cast %1170 : vector<1x32xf32> to vector<32xf32>
    %cst_294 = arith.constant dense<0.000000e+00> : vector<8xf32>
    %1172 = vector.multi_reduction <add>, %1167, %cst_294 [1] : vector<8x32xf32> to vector<8xf32>
    %1173 = vector.shape_cast %1172 : vector<8xf32> to vector<8x1xf32>
    %cst_295 = arith.constant 3.200000e+01 : f32
    %1174 = vector.broadcast %cst_295 : f32 to vector<8x1xf32>
    %1175 = arith.divf %1173, %1174 : vector<8x1xf32>
    %1176 = vector.broadcast %1175 : vector<8x1xf32> to vector<8x32xf32>
    %1177 = arith.subf %1167, %1176 : vector<8x32xf32>
    %1178 = arith.mulf %1177, %1177 : vector<8x32xf32>
    %cst_296 = arith.constant dense<0.000000e+00> : vector<8xf32>
    %1179 = vector.multi_reduction <add>, %1178, %cst_296 [1] : vector<8x32xf32> to vector<8xf32>
    %1180 = vector.shape_cast %1179 : vector<8xf32> to vector<8x1xf32>
    %cst_297 = arith.constant 3.200000e+01 : f32
    %1181 = vector.broadcast %cst_297 : f32 to vector<8x1xf32>
    %1182 = arith.divf %1180, %1181 : vector<8x1xf32>
    %cst_298 = arith.constant 9.99999974E-6 : f32
    %1183 = vector.broadcast %cst_298 : f32 to vector<8x1xf32>
    %1184 = arith.addf %1182, %1183 : vector<8x1xf32>
    %1185 = math.rsqrt %1184 : vector<8x1xf32>
    %1186 = vector.broadcast %1185 : vector<8x1xf32> to vector<8x32xf32>
    %1187 = arith.mulf %1177, %1186 : vector<8x32xf32>
    %1188 = vector.shape_cast %1169 : vector<32xf32> to vector<1x32xf32>
    %1189 = vector.broadcast %1188 : vector<1x32xf32> to vector<8x32xf32>
    %1190 = arith.mulf %1187, %1189 : vector<8x32xf32>
    %1191 = vector.shape_cast %1171 : vector<32xf32> to vector<1x32xf32>
    %1192 = vector.broadcast %1191 : vector<1x32xf32> to vector<8x32xf32>
    %1193 = arith.addf %1190, %1192 : vector<8x32xf32>
    %c1_299 = arith.constant 1 : index
    %c0_300 = arith.constant 0 : index
    %c0_301 = arith.constant 0 : index
    %1194 = vector.load %arg13[%c1_299, %c0_300, %c0_301] : memref<2x32x256xf32, #tpu.memory_space<vmem>>, vector<1x32x256xf32>
    %1195 = vector.shape_cast %1194 : vector<1x32x256xf32> to vector<32x256xf32>
    %cst_302 = arith.constant dense<0.000000e+00> : vector<8x256xf32>
    %1196 = tpu.matmul %1193, %1195, %cst_302 {dimension_numbers = #tpu.dot_dimension_numbers<[1], [0], [0], [1], [0, 0, 1, 1], [], []>} : vector<8x32xf32>, vector<32x256xf32>, vector<8x256xf32> -> vector<8x256xf32>
    %1197 = vector.extract_strided_slice %1196 {offsets = [0, 0], sizes = [8, 128], strides = [1, 1]} : vector<8x256xf32> to vector<8x128xf32>
    %1198 = vector.extract_strided_slice %1196 {offsets = [0, 128], sizes = [8, 128], strides = [1, 1]} : vector<8x256xf32> to vector<8x128xf32>
    %1199 = arith.negf %1198 : vector<8x128xf32>
    %1200 = math.exp %1199 : vector<8x128xf32>
    %cst_303 = arith.constant 1.000000e+00 : f32
    %1201 = vector.broadcast %cst_303 : f32 to vector<8x128xf32>
    %1202 = arith.addf %1201, %1200 : vector<8x128xf32>
    %1203 = arith.divf %1201, %1202 : vector<8x128xf32>
    %1204 = arith.mulf %1198, %1203 : vector<8x128xf32>
    %1205 = arith.mulf %1197, %1204 : vector<8x128xf32>
    %c1_304 = arith.constant 1 : index
    %c0_305 = arith.constant 0 : index
    %c0_306 = arith.constant 0 : index
    %1206 = vector.load %arg14[%c1_304, %c0_305, %c0_306] : memref<2x128x32xf32, #tpu.memory_space<vmem>>, vector<1x128x32xf32>
    %1207 = vector.shape_cast %1206 : vector<1x128x32xf32> to vector<128x32xf32>
    %cst_307 = arith.constant dense<0.000000e+00> : vector<8x32xf32>
    %1208 = tpu.matmul %1205, %1207, %cst_307 {dimension_numbers = #tpu.dot_dimension_numbers<[1], [0], [0], [1], [0, 0, 1, 1], [], []>} : vector<8x128xf32>, vector<128x32xf32>, vector<8x32xf32> -> vector<8x32xf32>
    %1209 = arith.addf %1208, %1167 : vector<8x32xf32>
    %c0_308 = arith.constant 0 : index
    %c0_309 = arith.constant 0 : index
    %1210 = vector.load %arg15[%c0_308, %c0_309] : memref<1x32xf32, #tpu.memory_space<vmem>>, vector<1x32xf32>
    %1211 = vector.shape_cast %1210 : vector<1x32xf32> to vector<32xf32>
    %c0_310 = arith.constant 0 : index
    %c0_311 = arith.constant 0 : index
    %1212 = vector.load %arg16[%c0_310, %c0_311] : memref<1x32xf32, #tpu.memory_space<vmem>>, vector<1x32xf32>
    %1213 = vector.shape_cast %1212 : vector<1x32xf32> to vector<32xf32>
    %cst_312 = arith.constant dense<0.000000e+00> : vector<8xf32>
    %1214 = vector.multi_reduction <add>, %1209, %cst_312 [1] : vector<8x32xf32> to vector<8xf32>
    %1215 = vector.shape_cast %1214 : vector<8xf32> to vector<8x1xf32>
    %cst_313 = arith.constant 3.200000e+01 : f32
    %1216 = vector.broadcast %cst_313 : f32 to vector<8x1xf32>
    %1217 = arith.divf %1215, %1216 : vector<8x1xf32>
    %1218 = vector.broadcast %1217 : vector<8x1xf32> to vector<8x32xf32>
    %1219 = arith.subf %1209, %1218 : vector<8x32xf32>
    %1220 = arith.mulf %1219, %1219 : vector<8x32xf32>
    %cst_314 = arith.constant dense<0.000000e+00> : vector<8xf32>
    %1221 = vector.multi_reduction <add>, %1220, %cst_314 [1] : vector<8x32xf32> to vector<8xf32>
    %1222 = vector.shape_cast %1221 : vector<8xf32> to vector<8x1xf32>
    %cst_315 = arith.constant 3.200000e+01 : f32
    %1223 = vector.broadcast %cst_315 : f32 to vector<8x1xf32>
    %1224 = arith.divf %1222, %1223 : vector<8x1xf32>
    %cst_316 = arith.constant 9.99999974E-6 : f32
    %1225 = vector.broadcast %cst_316 : f32 to vector<8x1xf32>
    %1226 = arith.addf %1224, %1225 : vector<8x1xf32>
    %1227 = math.rsqrt %1226 : vector<8x1xf32>
    %1228 = vector.broadcast %1227 : vector<8x1xf32> to vector<8x32xf32>
    %1229 = arith.mulf %1219, %1228 : vector<8x32xf32>
    %1230 = vector.shape_cast %1211 : vector<32xf32> to vector<1x32xf32>
    %1231 = vector.broadcast %1230 : vector<1x32xf32> to vector<8x32xf32>
    %1232 = arith.mulf %1229, %1231 : vector<8x32xf32>
    %1233 = vector.shape_cast %1213 : vector<32xf32> to vector<1x32xf32>
    %1234 = vector.broadcast %1233 : vector<1x32xf32> to vector<8x32xf32>
    %1235 = arith.addf %1232, %1234 : vector<8x32xf32>
    %c1_317 = arith.constant 1 : index
    %c0_318 = arith.constant 0 : index
    %c0_319 = arith.constant 0 : index
    %1236 = vector.load %arg17[%c1_317, %c0_318, %c0_319] : memref<2x8x32xf32, #tpu.memory_space<vmem>>, vector<1x8x32xf32>
    %1237 = vector.shape_cast %1236 : vector<1x8x32xf32> to vector<8x32xf32>
    %1238 = vector.shape_cast %1235 : vector<8x32xf32> to vector<1x8x32xf32>
    tpu.vector_store %arg17[%c1_317, %c0_318, %c0_319], %1238 {strides = array<i32>} : memref<2x8x32xf32, #tpu.memory_space<vmem>>, vector<1x8x32xf32>,
    return
  }
}

</mosaic_0001>

<bundles_post_ra>
// kernel: mixer_model_forward.1
= control target key start
LH: loop header
LB: loop body
LE: loop exit
PB: predicated region body
PF: predicated region fallthrough
CT: control target
= control target key end

     0   :  { %s7407_s0 = inlined_call_operand.vmem [shape: f32[2,8,32], index: 0, kind: input, shape index: {}]   ;;  %s7408_s1 = inlined_call_operand.vmem [shape: f32[2,32], index: 1, kind: input, shape index: {}]   ;;  %s7409_s2 = inlined_call_operand.vmem [shape: f32[2,32], index: 2, kind: input, shape index: {}]   ;;  %s7410_s3 = inlined_call_operand.vmem [shape: f32[2,32,128], index: 3, kind: input, shape index: {}]   ;;  %s7411_s4 = inlined_call_operand.vmem [shape: f32[2,4,64], index: 4, kind: input, shape index: {}]   ;;  %s7412_s5 = inlined_call_operand.vmem [shape: f32[2,64], index: 5, kind: input, shape index: {}]   ;;  %s7413_s6 = inlined_call_operand.vmem [shape: f32[2,64,96], index: 6, kind: input, shape index: {}]   ;;  %s7414_s7 = inlined_call_operand.vmem [shape: f32[2,64], index: 7, kind: input, shape index: {}]   ;;  %s7415_s8 = inlined_call_operand.vmem [shape: f32[2,16,64], index: 8, kind: input, shape index: {}]   ;;  %s7416_s9 = inlined_call_operand.vmem [shape: f32[2,64], index: 9, kind: input, shape index: {}]   ;;  %s7417_s10 = inlined_call_operand.vmem [shape: f32[2,64,32], index: 10, kind: input, shape index: {}]   ;;  %s7418_s11 = inlined_call_operand.vmem [shape: f32[2,32], index: 11, kind: input, shape index: {}]   ;;  %s7419_s12 = inlined_call_operand.vmem [shape: f32[2,32], index: 12, kind: input, shape index: {}]   ;;  %s7420_s13 = inlined_call_operand.vmem [shape: f32[2,32,256], index: 13, kind: input, shape index: {}]   ;;  %s7421_s14 = inlined_call_operand.vmem [shape: f32[2,128,32], index: 14, kind: input, shape index: {}]   ;;  %s7422_s15 = inlined_call_operand.vmem [shape: f32[1,32], index: 15, kind: input, shape index: {}]   ;;  %s7423_s16 = inlined_call_operand.vmem [shape: f32[1,32], index: 16, kind: input, shape index: {}]   ;;  %s7424_s17 = inlined_call_operand.hbm [shape: f32[2,8,32], index: 17, kind: output, shape index: {}]  }
   0x1   :  { %7443 = sst [smem:[#allocation5_spill]] %s7407_s0 }
   0x2   :  { %7444 = sst [smem:[#allocation6_spill]] %s7408_s1 }
   0x3   :  { %s7445_s26 = sld [smem:[#allocation5_spill]]  ;;  %vm62_vm0 = vcmask 261120  }
   0x9   :  { %v59_v0 = vld [vmem:[%s7445_s26] sm:$0xff] }
   0xa   :  { %22 = vsyncpa [#allocation3], 0  ;;  %v63_v1 = vsel %vm62_vm0, %v59_v0, 0.0  ;;  %v90_v7 = vld [vmem:[%s7410_s3 + $0x18] sm:$0xff]  ;;  %v5507_v8 = vmov 0.0   ;;  %v89_v9 = vld [vmem:[%s7410_s3 + $0x10] sm:$0xff]  ;;  %v57_v29 = vlaneseq }
   0xb   :  { %64 = vadd.xlane.f32.xlu0 %v63_v1  ;;  %4778 = vmatprep.subr.mxu0 %v5507_v8  ;;  %vm5508_vm1 = vmmov 0   ;;  %v88_v10 = vld [vmem:[%s7410_s3 + $0x8] sm:$0xff]  ;;  %v87_v11 = vld [vmem:[%s7410_s3] sm:$0xff]  ;;  %s7446_s22 = sld [smem:[#allocation6_spill]]  ;;  %v217_v21 = vld [vmem:[%s7413_s6 + $0x38] sm:$0xff]  ;;  %vm218_vm5 = vcmask 523264  }
   0xc   :  { %4786 = vmatprep.mubr.msk.f32.mxu0 %vm5508_vm1, %v5507_v8  ;;  %4779 = vmatpush3.msra.mxu0 %v90_v7  ;;  %v4464_v18 = vld [vmem:[%s7409_s2] ss:$0 sm:$0xff]  ;;  %v216_v22 = vld [vmem:[%s7413_s6 + $0x30] sm:$0xff]  ;;  %v215_v23 = vld [vmem:[%s7413_s6 + $0x28] sm:$0xff]  ;;  %v5681_v30 = vshrl.u32 %v57_v29, 7  ;;  %s5509_s19 = smov 64  }
   0xd   :  { %4789 = vmatprep.subr.mxu1 %v5507_v8  ;;  %4780 = vmatprep.subr.mxu0 %v5507_v8  ;;  %v214_v24 = vld [vmem:[%s7413_s6 + $0x20] sm:$0xff]  ;;  %v213_v25 = vld [vmem:[%s7413_s6 + $0x18] sm:$0xff]  ;;  %v212_v26 = vld [vmem:[%s7413_s6 + $0x10] sm:$0xff]  ;;  %s5510_s1 = smov 48   ;;  %vm834_vm8 = vcmask 1040384   ;;  %vm836_vm9 = vcmask 1041408  }
   0xe   :  { %4805 = vmatprep.mubr.msk.f32.mxu1 %vm5508_vm1, %v5507_v8  ;;  %4781 = vmatpush3.msra.mxu0 %v89_v9  ;;  %v211_v27 = vld [vmem:[%s7413_s6 + $0x8] sm:$0xff]  ;;  %v210_v28 = vld [vmem:[%s7413_s6] sm:$0xff]  ;;  %v5684_v31 = vsub.s32 3, %v5681_v30  ;;  %v5690_v33 = vsub.s32 0, %v5681_v30  ;;  %v5693_v34 = vsub.s32 1, %v5681_v30  ;;  %vm171_vm2 = vcmp.ge.s32.totalorder %v5681_v30, 3 }
   0xf   :  { %4782 = vmatprep.subr.mxu0 %v5507_v8  ;;  %4790 = vmatpush3.msra.mxu1 %v217_v21  ;;  %v164_v32 = vld [vmem:[%s7411_s4] sm:$0xf]  ;;  %vm180_vm3 = vcmp.ge.s32.totalorder %v5681_v30, 2  ;;  %v5702_v38 = vsub.s32 2, %v5681_v30  ;;  %vm189_vm4 = vcmp.ge.s32.totalorder %v5681_v30, 1  ;;  %v7439_v9 = vmov 2  }
  0x10   :  { %4783 = vmatpush3.msra.mxu0 %v88_v10  ;;  %4791 = vmatprep.subr.mxu1 %v5507_v8  ;;  %v168_v35 = vrot.slane %v164_v32, %v5684_v31  ;;  %v176_v37 = vrot.slane %v164_v32, %v5690_v33  ;;  %v185_v42 = vrot.slane %v164_v32, %v5693_v34  ;;  %v4466_v54 = vld [vmem:[%s7412_s5] ss:$0 sm:$0xff]  ;;  %v7431_v10 = vmov 4  }
  0x11   :  { %4784 = vmatprep.subr.mxu0 %v5507_v8  ;;  %v4463_v16 = vld [vmem:[%s7446_s22] ss:$0 sm:$0xff]  ;;  %4792 = vmatpush3.msra.mxu1 %v216_v22  ;;  %v194_v48 = vrot.slane %v164_v32, %v5702_v38  ;;  %vm838_vm10 = vcmask 1042432   ;;  %vm840_vm11 = vcmask 1043456   ;;  %vm842_vm12 = vcmask 1044480  }
  0x12   :  { %4785 = vmatpush3.msra.mxu0 %v87_v11  ;;  %4793 = vmatprep.subr.mxu1 %v5507_v8  ;;  %vm844_vm13 = vcmask 1045504   ;;  %vm846_vm14 = vcmask 1046528  }
  0x13   :  { %4827 = vmatprep.subr.mxu0 %v5507_v8  ;;  %4794 = vmatpush3.msra.mxu1 %v215_v23 }
  0x14   :  { %4795 = vmatprep.subr.mxu1 %v5507_v8 }
  0x15   :  { %4796 = vmatpush3.msra.mxu1 %v214_v24 }
  0x16   :  { %4797 = vmatprep.subr.mxu1 %v5507_v8 }
  0x17   :  { %4798 = vmatpush3.msra.mxu1 %v213_v25 }
  0x18   :  { %4799 = vmatprep.subr.mxu1 %v5507_v8 }
  0x19   :  { %4800 = vmatpush3.msra.mxu1 %v212_v26 }
  0x1a   :  { %4801 = vmatprep.subr.mxu1 %v5507_v8 }
  0x1b   :  { %4802 = vmatpush3.msra.mxu1 %v211_v27 }
  0x1c   :  { %4803 = vmatprep.subr.mxu1 %v5507_v8 }
  0x1d   :  { %4804 = vmatpush3.msra.mxu1 %v210_v28 }
  0x1e   :  { %4808 = vmatprep.subr.mxu1 %v5507_v8 }
  0x94   :  { %v65_v2 = vpop.xlane.xlu0 %64 }
  0x95   :  { %v67_v3 = vmul.f32 0.03125, %v65_v2  ;;  %v7441_v2 = vmov 0  }
  0x97   :  { %v68_v4 = vsub.f32 %v59_v0, %v67_v3  ;;  %v7437_v3 = vmov 3  }
  0x99   :  { %v69_v5 = vmul.f32 %v68_v4, %v68_v4 }
  0x9b   :  { %v70_v6 = vsel %vm62_vm0, %v69_v5, 0.0  ;;  %v7429_v5 = vmov 6  }
  0x9c   :  { %71 = vadd.xlane.f32.xlu0 %v70_v6  ;;  %v7435_v6 = vmov 1  }
 0x125   :  { %v72_v12 = vpop.xlane.xlu0 %71 }
 0x126   :  { %v73_v13 = vmul.f32 0.03125, %v72_v12  ;;  %v7433_v12 = vmov 5  }
 0x128   :  { %v74_v14 = vadd.f32 1e-05, %v73_v13 }
 0x12a   :  { %5255 = vrsqrt.f32 %v74_v14  ;;  %v7427_v14 = vmov 7  }
 0x137   :  { %v5256_v15 = vpop.eup %5255 }
 0x138   :  { %v76_v17 = vmul.f32 %v5256_v15, %v68_v4  ;;  %v4469_v15 = vld [vmem:[%s7414_s7] ss:$0 sm:$0xff] }
 0x13a   :  { %v81_v19 = vmul.f32 %v4463_v16, %v76_v17 }
 0x13c   :  { %v86_v20 = vadd.f32 %v4464_v18, %v81_v19 }
 0x13e   :  { %4787 = vmatmul.mubr.msk.f32.vlgmr.msra.gmra.mxu0 %vm62_vm0, %v86_v20 }
 0x13f   :  { %4859 = vmatprep.mubr.msk.f32.mxu0 %vm5508_vm1, %v5507_v8 }
 0x1fe   :  { %v5696_v36 = vpop.f32.mrf.mxu0 }
 0x1ff   :  { %v170_v39 = vrot.slane %v5696_v36, 5  ;;  %v179_v40 = vrot.slane %v5696_v36, 6  ;;  %v188_v41 = vrot.slane %v5696_v36, 7  ;;  %v169_v46 = vmul.f32 %v168_v35, %v5696_v36  ;;  %v316_v35 = vld [vmem:[%s7415_s8] sm:$0xff] }
 0x200   :  { %v4788_v43 = vpop.f32.mrf.mxu0  ;;  %v4471_v17 = vmul.f32 -1.442695, %v5696_v36 }
 0x201   :  { %v172_v44 = vsel %vm171_vm2, %v170_v39, 0.0  ;;  %v181_v45 = vsel %vm180_vm3, %v179_v40, 0.0  ;;  %v190_v49 = vsel %vm189_vm4, %v188_v41, 0.0  ;;  %v5519_v39 = vmov 1966171168  }
 0x202   :  { %v177_v47 = vmul.f32 %v176_v37, %v172_v44  ;;  %v186_v51 = vmul.f32 %v185_v42, %v181_v45  ;;  %v195_v53 = vmul.f32 %v194_v48, %v190_v49  ;;  %v327_v40 = vunpack.c.l.s4 %v5519_v39  ;;  %v873_v45 = vld [vmem:[%s7417_s10 + $0x30] sm:$0xff]  ;;  %v317_v48 = vld [vmem:[%s7415_s8 + $0x8] sm:$0xff] }
 0x203   :  { %v318_v42 = vmul.f32 1.442695, %v316_v35 }
 0x204   :  { %v178_v50 = vadd.f32 %v177_v47, %v169_v46  ;;  %v872_v46 = vld [vmem:[%s7417_s10 + $0x28] sm:$0xff]  ;;  %v328_v47 = vunpack.c.0.s8 %v327_v40 }
 0x206   :  { %v187_v52 = vadd.f32 %v186_v51, %v178_v50  ;;  %v871_v51 = vld [vmem:[%s7417_s10 + $0x20] sm:$0xff] }
 0x208   :  { %v196_v55 = vadd.f32 %v195_v53, %v187_v52  ;;  %v320_v52 = vmul.f32 1.442695, %v317_v48  ;;  %v870_v53 = vld [vmem:[%s7417_s10 + $0x18] sm:$0xff] }
 0x20a   :  { %v202_v56 = vadd.f32 %v4466_v54, %v196_v55  ;;  %v5802_v54 = vsub.s32 %v328_v47, %v5681_v30 }
 0x20c   :  { %v4467_v57 = vmul.f32 -1.442695, %v202_v56 }
 0x20e   :  { %5257 = vpow2.f32 %v4467_v57 }
 0x21b   :  { %v5258_v58 = vpop.eup %5257 }
 0x21c   :  { %v206_v59 = vadd.f32 1.0, %v5258_v58  ;;  %v868_v58 = vld [vmem:[%s7417_s10 + $0x8] sm:$0xff] }
 0x21e   :  { %5259 = vrcp.f32 %v206_v59 }
 0x21f   :  { %5261 = vpow2.f32 %v4471_v17 }
 0x22b   :  { %v5260_v60 = vpop.eup %5259 }
 0x22c   :  { %v5720_v61 = vmul.f32 %v5260_v60, %v202_v56  ;;  %v5262_v21 = vpop.eup %5261  ;;  %v869_v56 = vld [vmem:[%s7417_s10 + $0x10] sm:$0xff]  ;;  %v867_v60 = vld [vmem:[%s7417_s10] sm:$0xff] }
 0x22d   :  { %v858_v22 = vadd.f32 1.0, %v5262_v21 }
 0x22e   :  { %4806 = vmatmul.mubr.msk.f32.vlgmr.msra.gmra.mxu1 %vm218_vm5, %v5720_v61 }
 0x22f   :  { %4824 = vmatprep.mubr.msk.f32.mxu1 %vm5508_vm1, %v5507_v8 }
 0x2ee   :  { %v5726_v62 = vpop.f32.mrf.mxu1 }
 0x2ef   :  { %464 = vrot.lane.b32.xlu1 %v5726_v62, %s5509_s19  ;;  %v5759_v16 = vadd.f32 %v4469_v15, %v5726_v62 }
 0x2f0   :  { %v4807_v63 = vpop.f32.mrf.mxu1 }
 0x2f1   :  { %v301_v18 = vand.u32 2147483647, %v5759_v16  ;;  %v298_v44 = vmax.f32 %v5759_v16, 0.0  ;;  %vm299_vm7 = vcmp.ne.f32.partialorder %v5759_v16, %v5759_v16 }
 0x2f3   :  { %499 = vrot.lane.b32.xlu1 %v5726_v62, %s5510_s1  ;;  %v302_v19 = vsub.f32 0.0, %v301_v18 }
 0x2f5   :  { %v303_v20 = vmul.f32 1.442695, %v302_v19 }
 0x2f7   :  { %5263 = vpow2.f32 %v303_v20 }
 0x2f8   :  { %5265 = vrcp.f32 %v858_v22 }
 0x304   :  { %v5264_v23 = vpop.eup %5263 }
 0x305   :  { %v305_v24 = vadd.f32 1.0, %v5264_v23  ;;  %v5266_v25 = vpop.eup %5265  ;;  %v308_v27 = vmul.f32 -0.5, %v5264_v23  ;;  %v311_v32 = vand.u32 2147483647, %v5264_v23 }
 0x306   :  { %v861_v26 = vmul.f32 %v5266_v25, %v5696_v36  ;;  %v874_v36 = vld [vmem:[%s7417_s10 + $0x38] sm:$0xff] }
 0x307   :  { %5267 = vlog2.f32 %v305_v24  ;;  %v309_v29 = vadd.f32 1.0, %v308_v27  ;;  %vm312_vm6 = vcmp.lt.f32.partialorder %v311_v32, 0.0004427343  ;;  %4809 = vmatpush3.msra.mxu1 %v874_v36 }
 0x308   :  { %4810 = vmatprep.subr.mxu1 %v5507_v8  ;;  %5269 = vpow2.f32 %v318_v42 }
 0x309   :  { %v310_v41 = vmul.f32 %v5264_v23, %v309_v29  ;;  %4811 = vmatpush3.msra.mxu1 %v873_v45  ;;  %5271 = vpow2.f32 %v320_v52 }
 0x30a   :  { %4812 = vmatprep.subr.mxu1 %v5507_v8 }
 0x30b   :  { %4813 = vmatpush3.msra.mxu1 %v872_v46 }
 0x30c   :  { %4814 = vmatprep.subr.mxu1 %v5507_v8 }
 0x30d   :  { %4815 = vmatpush3.msra.mxu1 %v871_v51 }
 0x30e   :  { %4816 = vmatprep.subr.mxu1 %v5507_v8 }
 0x30f   :  { %4817 = vmatpush3.msra.mxu1 %v870_v53 }
 0x310   :  { %4818 = vmatprep.subr.mxu1 %v5507_v8 }
 0x311   :  { %4819 = vmatpush3.msra.mxu1 %v869_v56 }
 0x312   :  { %4820 = vmatprep.subr.mxu1 %v5507_v8 }
 0x313   :  { %4821 = vmatpush3.msra.mxu1 %v868_v58 }
 0x314   :  { %v5268_v28 = vpop.eup %5267  ;;  %4822 = vmatprep.subr.mxu1 %v5507_v8 }
 0x315   :  { %v307_v37 = vmul.f32 0.6931472, %v5268_v28  ;;  %4823 = vmatpush3.msra.mxu1 %v867_v60 }
 0x317   :  { %v313_v43 = vsel %vm312_vm6, %v310_v41, %v307_v37 }
 0x318   :  { %v314_v49 = vadd.f32 %v313_v43, %v298_v44 }
 0x31a   :  { %v315_v55 = vsel %vm299_vm7, %v5759_v16, %v314_v49 }
 0x31b   :  { %v332_v59 = vrot.slane %v315_v55, %v5802_v54  ;;  %v325_v37 = vcombine.high %v315_v55, %v315_v55  ;;  %v5853_v41 = vmul.f32 %v315_v55, %v5720_v61 }
 0x31d   :  { %v348_v63 = vrot.slane %v332_v59, %v5802_v54  ;;  %v339_v43 = vrot.slane %v325_v37, %v5802_v54  ;;  %v537_v47 = vrot.slane %v5853_v41, %v5690_v33 }
 0x31f   :  { %v370_v24 = vcombine.high %v348_v63, %v348_v63  ;;  %v355_v55 = vrot.slane %v339_v43, %v5802_v54 }
 0x321   :  { %v385_v29 = vrot.slane %v370_v24, %v5690_v33 }
 0x361   :  { %v465_v0 = vpop.permute.xlu1 %464 }
 0x362   :  { %467 = vxpose.xlu0.b32.start.end [1/1] (short) (narrow) %v465_v0, 16  ;;  %v5270_v0 = vpop.eup %5269 }
 0x365   :  { %v500_v1 = vpop.permute.xlu1 %499 }
 0x366   :  { %502 = vxpose.xlu1.b32.start.end [1/1] (short) (narrow) %v500_v1, 16  ;;  %v340_v1 = vcombine.high %v332_v59, %v332_v59 }
 0x368   :  { %v362_v15 = vrot.slane %v340_v1, %v5802_v54 }
 0x36a   :  { %v381_v19 = vrot.slane %v362_v15, %v5690_v33  ;;  %v372_v39 = vcombine.high %v362_v15, %v362_v15 }
 0x36c   :  { %v389_v44 = vrot.slane %v372_v39, %v5690_v33 }
 0x384   :  { %5130 = vset.pattern.permute.xlu1 %v7441_v2 }
 0x38b   :  { %5133 = vset.pattern.permute.xlu0 %v7437_v3 }
 0x3de   :  { %v483_v4 = vpop.trf.xlu0 }
 0x3df   :  { %654 = vperm.xlu0 %5133, %v483_v4   ;;  %540 = vperm.xlu1 %5130, %v483_v4  }
 0x3e2   :  { %v518_v7 = vpop.trf.xlu1  ;;  %v484_v11 = vpop.trf.xlu0 }
 0x3e3   :  { %5136 = vset.pattern.permute.xlu0 %v7429_v5  ;;  %5131 = vset.pattern.permute.xlu1 %v7435_v6 }
 0x3e4   :  { %765 = vperm.xlu0 %5136, %v483_v4   ;;  %580 = vperm.xlu1 %5131, %v483_v4  }
 0x3e6   :  { %v519_v13 = vpop.trf.xlu1 }
 0x3e8   :  { %5139 = vset.pattern.permute.xlu0 %v7439_v9  ;;  %5132 = vset.pattern.permute.xlu1 %v7439_v9 }
 0x3e9   :  { %617 = vperm.xlu1 %5132, %v483_v4   ;;  %631 = vperm.xlu0 %5139, %v518_v7  }
 0x3ed   :  { %5134 = vset.pattern.permute.xlu1 %v7431_v10  ;;  %5142 = vset.pattern.permute.xlu0 %v7431_v10 }
 0x3ee   :  { %691 = vperm.xlu1 %5134, %v483_v4   ;;  %705 = vperm.xlu0 %5142, %v518_v7  }
 0x3f2   :  { %5135 = vset.pattern.permute.xlu1 %v7433_v12  ;;  %5145 = vset.pattern.permute.xlu0 %v7441_v2 }
 0x3f3   :  { %728 = vperm.xlu1 %5135, %v483_v4   ;;  %545 = vperm.xlu0 %5145, %v484_v11  }
 0x3f7   :  { %5137 = vset.pattern.permute.xlu1 %v7441_v2  ;;  %5149 = vset.pattern.permute.xlu0 %v7431_v10 }
 0x3f8   :  { %695 = vperm.xlu0 %5149, %v484_v11   ;;  %556 = vperm.xlu1 %5137, %v518_v7  }
 0x3fc   :  { %5152 = vset.pattern.permute.xlu0 %v7441_v2  ;;  %5138 = vset.pattern.permute.xlu1 %v7435_v6 }
 0x3fd   :  { %594 = vperm.xlu1 %5138, %v518_v7   ;;  %561 = vperm.xlu0 %5152, %v519_v13  }
 0x401   :  { %5140 = vset.pattern.permute.xlu1 %v7437_v3  ;;  %5155 = vset.pattern.permute.xlu0 %v7437_v3 }
 0x402   :  { %668 = vperm.xlu1 %5140, %v518_v7   ;;  %672 = vperm.xlu0 %5155, %v519_v13  }
 0x406   :  { %5141 = vset.pattern.permute.xlu1 %v7427_v14  ;;  %5158 = vset.pattern.permute.xlu0 %v7433_v12 }
 0x407   :  { %802 = vperm.xlu1 %5141, %v483_v4   ;;  %746 = vperm.xlu0 %5158, %v519_v13   ;;  %v5826_v4 = vsub.f32 0.0, %v5270_v0 }
 0x409   :  { %v416_v25 = vmul.f32 %v381_v19, %v5826_v4  ;;  %v418_v42 = vmul.f32 %v385_v29, %v5826_v4  ;;  %v420_v56 = vmul.f32 %v389_v44, %v5826_v4 }
 0x40b   :  { %5143 = vset.pattern.permute.xlu1 %v7433_v12  ;;  %5159 = vset.pattern.permute.xlu0 %v7427_v14  ;;  %v434_v32 = vmul.f32 1.442695, %v416_v25  ;;  %v438_v48 = vmul.f32 1.442695, %v418_v42  ;;  %v442_v15 = vmul.f32 1.442695, %v420_v56 }
 0x40c   :  { %742 = vperm.xlu1 %5143, %v518_v7   ;;  %816 = vperm.xlu0 %5159, %v518_v7  }
 0x410   :  { %5144 = vset.pattern.permute.xlu1 %v7429_v5 }
 0x411   :  { %779 = vperm.xlu1 %5144, %v518_v7   ;;  %v377_v7 = vrot.slane %v348_v63, %v5690_v33 }
 0x413   :  { %v414_v16 = vmul.f32 %v377_v7, %v5826_v4 }
 0x415   :  { %5146 = vset.pattern.permute.xlu1 %v7435_v6  ;;  %v430_v21 = vmul.f32 1.442695, %v414_v16  ;;  %v578_v16 = vrot.slane %v5853_v41, %v5693_v34 }
 0x416   :  { %584 = vperm.xlu1 %5146, %v484_v11  }
 0x417   :  { %5273 = vpow2.f32 %v430_v21 }
 0x41a   :  { %5147 = vset.pattern.permute.xlu1 %v7439_v9 }
 0x41b   :  { %621 = vperm.xlu1 %5147, %v484_v11  }
 0x41f   :  { %5148 = vset.pattern.permute.xlu1 %v7437_v3 }
 0x420   :  { %658 = vperm.xlu1 %5148, %v484_v11  }
 0x424   :  { %5150 = vset.pattern.permute.xlu1 %v7433_v12 }
 0x425   :  { %732 = vperm.xlu1 %5150, %v484_v11  }
 0x429   :  { %5151 = vset.pattern.permute.xlu1 %v7429_v5 }
 0x42a   :  { %769 = vperm.xlu1 %5151, %v484_v11  }
 0x42e   :  { %5153 = vset.pattern.permute.xlu1 %v7435_v6 }
 0x42f   :  { %598 = vperm.xlu1 %5153, %v519_v13  }
 0x433   :  { %5154 = vset.pattern.permute.xlu1 %v7439_v9 }
 0x434   :  { %635 = vperm.xlu1 %5154, %v519_v13  }
 0x438   :  { %5156 = vset.pattern.permute.xlu1 %v7427_v14 }
 0x439   :  { %806 = vperm.xlu1 %5156, %v484_v11  }
 0x43d   :  { %5157 = vset.pattern.permute.xlu1 %v7431_v10 }
 0x43e   :  { %709 = vperm.xlu1 %5157, %v519_v13  }
 0x442   :  { %5160 = vset.pattern.permute.xlu1 %v7429_v5 }
 0x443   :  { %783 = vperm.xlu1 %5160, %v519_v13  }
 0x447   :  { %5161 = vset.pattern.permute.xlu1 %v7427_v14 }
 0x448   :  { %820 = vperm.xlu1 %5161, %v519_v13   ;;  %v5272_v13 = vpop.eup %5271 }
 0x449   :  { %v5835_v18 = vsub.f32 0.0, %v5272_v13  ;;  %v5274_v51 = vpop.eup %5273  ;;  %v393_v13 = vrot.slane %v355_v55, %v5690_v33 }
 0x44a   :  { %v550_v59 = vmul.f32 0.0, %v5274_v51 }
 0x44b   :  { %v415_v23 = vmul.f32 %v377_v7, %v5835_v18  ;;  %v417_v40 = vmul.f32 %v381_v19, %v5835_v18  ;;  %v419_v45 = vmul.f32 %v385_v29, %v5835_v18  ;;  %v421_v60 = vmul.f32 %v389_v44, %v5835_v18 }
 0x44c   :  { %863 = vrot.lane.b32.xlu1 %v861_v26, %s5509_s19  ;;  %v341_v7 = vcombine.high %v339_v43, %v339_v43  ;;  %v423_v37 = vmul.f32 %v393_v13, %v5835_v18  ;;  %v422_v39 = vmul.f32 %v393_v13, %v5826_v4 }
 0x44d   :  { %v432_v27 = vmul.f32 1.442695, %v415_v23  ;;  %v436_v46 = vmul.f32 1.442695, %v417_v40  ;;  %v440_v58 = vmul.f32 1.442695, %v419_v45  ;;  %v615_v45 = vrot.slane %v5853_v41, %v5702_v38 }
 0x44e   :  { %v444_v19 = vmul.f32 1.442695, %v421_v60 }
 0x44f   :  { %5275 = vpow2.f32 %v432_v27  ;;  %v369_v27 = vrot.slane %v341_v7, %v5802_v54  ;;  %v371_v7 = vcombine.high %v355_v55, %v355_v55 }
 0x450   :  { %5277 = vpow2.f32 %v434_v32 }
 0x451   :  { %5279 = vpow2.f32 %v436_v46  ;;  %v397_v43 = vrot.slane %v369_v27, %v5690_v33  ;;  %v446_v46 = vmul.f32 1.442695, %v422_v39 }
 0x452   :  { %5281 = vpow2.f32 %v438_v48 }
 0x453   :  { %5283 = vpow2.f32 %v440_v58  ;;  %v425_v60 = vmul.f32 %v397_v43, %v5835_v18  ;;  %v424_v13 = vmul.f32 %v397_v43, %v5826_v4 }
 0x454   :  { %5285 = vpow2.f32 %v442_v15 }
 0x455   :  { %5287 = vpow2.f32 %v444_v19 }
 0x45a   :  { %v5791_v50 = vpop.permute.xlu1 %540  ;;  %v5838_v20 = vpop.permute.xlu0 %654 }
 0x45b   :  { %v548_v53 = vmul.f32 %v5791_v50, %v537_v47 }
 0x45c   :  { %v5276_v50 = vpop.eup %5275 }
 0x45d   :  { %v5871_v63 = vadd.f32 %v550_v59, %v548_v53  ;;  %v5278_v21 = vpop.eup %5277  ;;  %v551_v29 = vmul.f32 0.0, %v5276_v50 }
 0x45e   :  { %v5280_v44 = vpop.eup %5279 }
 0x45f   :  { %v5811_v57 = vpop.permute.xlu1 %580  ;;  %v5844_v26 = vpop.permute.xlu0 %765  ;;  %v589_v25 = vmul.f32 %v5278_v21, %v5871_v63  ;;  %v452_v21 = vmul.f32 1.442695, %v425_v60 }
 0x460   :  { %v587_v24 = vmul.f32 %v5811_v57, %v578_v16  ;;  %v448_v57 = vmul.f32 1.442695, %v423_v37  ;;  %v5282_v48 = vpop.eup %5281  ;;  %v652_v37 = vrot.slane %v5853_v41, %v5684_v31 }
 0x462   :  { %v5887_v42 = vadd.f32 %v589_v25, %v587_v24  ;;  %5289 = vpow2.f32 %v448_v57  ;;  %v450_v24 = vmul.f32 1.442695, %v424_v13 }
 0x463   :  { %5291 = vpow2.f32 %v446_v46 }
 0x464   :  { %v5822_v62 = vpop.permute.xlu1 %617  ;;  %v5849_v35 = vpop.permute.xlu0 %631  ;;  %v626_v58 = vmul.f32 %v5282_v48, %v5887_v42  ;;  %5293 = vpow2.f32 %v452_v21  ;;  %v5917_v21 = vsub.s32 5, %v5681_v30 }
 0x465   :  { %v624_v56 = vmul.f32 %v5822_v62, %v615_v45  ;;  %v401_v62 = vrot.slane %v371_v7, %v5690_v33  ;;  %5295 = vpow2.f32 %v450_v24 }
 0x467   :  { %v426_v46 = vmul.f32 %v401_v62, %v5826_v4 }
 0x469   :  { %v5829_v11 = vpop.permute.xlu1 %691  ;;  %v5863_v49 = vpop.permute.xlu0 %705  ;;  %v454_v60 = vmul.f32 1.442695, %v426_v46 }
 0x46b   :  { %5297 = vpow2.f32 %v454_v60 }
 0x46e   :  { %v5833_v17 = vpop.permute.xlu1 %728  ;;  %v546_v0 = vpop.permute.xlu0 %545 }
 0x46f   :  { %v549_v23 = vmul.f32 %v546_v0, %v537_v47  ;;  %v5284_v0 = vpop.eup %5283 }
 0x471   :  { %v5885_v40 = vadd.f32 %v551_v29, %v549_v23  ;;  %v5286_v23 = vpop.eup %5285 }
 0x472   :  { %v5288_v29 = vpop.eup %5287 }
 0x473   :  { %v5840_v22 = vpop.permute.xlu1 %556  ;;  %v590_v53 = vmul.f32 %v5280_v44, %v5885_v40  ;;  %v373_v44 = vcombine.high %v369_v27, %v369_v27 }
 0x474   :  { %v564_v46 = vmul.f32 %v5840_v22, %v5871_v63 }
 0x478   :  { %v5846_v28 = vpop.permute.xlu1 %594 }
 0x47d   :  { %v5856_v36 = vpop.permute.xlu1 %668 }
 0x482   :  { %v5865_v52 = vpop.permute.xlu1 %802 }
 0x487   :  { %v5873_v1 = vpop.permute.xlu1 %742 }
 0x48c   :  { %v5881_v32 = vpop.permute.xlu1 %779 }
 0x491   :  { %v585_v47 = vpop.permute.xlu1 %584 }
 0x492   :  { %v588_v51 = vmul.f32 %v585_v47, %v578_v16  ;;  %v628_v16 = vadd.f32 %v626_v58, %v624_v56  ;;  %v5909_v47 = vsub.s32 4, %v5681_v30  ;;  %v5290_v58 = vpop.eup %5289 }
 0x493   :  { %v5292_v7 = vpop.eup %5291 }
 0x494   :  { %v5895_v59 = vadd.f32 %v590_v53, %v588_v51  ;;  %v663_v55 = vmul.f32 %v5286_v23, %v628_v16  ;;  %v696_v53 = vpop.permute.xlu0 %695  ;;  %v689_v27 = vrot.slane %v5853_v41, %v5909_v47  ;;  %v638_v22 = vmul.f32 %v5849_v35, %v628_v16 }
 0x496   :  { %v622_v15 = vpop.permute.xlu1 %621  ;;  %v627_v50 = vmul.f32 %v5284_v0, %v5895_v59  ;;  %v405_v0 = vrot.slane %v373_v44, %v5690_v33 }
 0x497   :  { %v625_v19 = vmul.f32 %v622_v15, %v615_v45  ;;  %v661_v45 = vmul.f32 %v5838_v20, %v652_v37  ;;  %v427_v20 = vmul.f32 %v401_v62, %v5835_v18 }
 0x498   :  { %v562_v23 = vpop.permute.xlu0 %561  ;;  %v428_v24 = vmul.f32 %v405_v0, %v5826_v4  ;;  %v429_v62 = vmul.f32 %v405_v0, %v5835_v18  ;;  %v601_v4 = vmul.f32 %v5846_v28, %v5887_v42  ;;  %v5935_v0 = vsub.s32 6, %v5681_v30 }
 0x499   :  { %v5901_v25 = vadd.f32 %v627_v50, %v625_v19  ;;  %v665_v51 = vadd.f32 %v663_v55, %v661_v45  ;;  %v699_v50 = vmul.f32 %v696_v53, %v689_v27  ;;  %v698_v19 = vmul.f32 %v5829_v11, %v689_v27 }
 0x49a   :  { %v456_v55 = vmul.f32 1.442695, %v427_v20  ;;  %v726_v11 = vrot.slane %v5853_v41, %v5917_v21  ;;  %v458_v44 = vmul.f32 1.442695, %v428_v24  ;;  %v566_v42 = vsel %vm218_vm5, %v564_v46, 0.0 }
 0x49b   :  { %v659_v39 = vpop.permute.xlu1 %658  ;;  %v664_v43 = vmul.f32 %v5288_v29, %v5901_v25  ;;  %v700_v15 = vmul.f32 %v5292_v7, %v665_v51  ;;  %v603_v20 = vsel %vm218_vm5, %v601_v4, 0.0 }
 0x49c   :  { %v662_v57 = vmul.f32 %v659_v39, %v652_v37  ;;  %5299 = vpow2.f32 %v456_v55  ;;  %v735_v63 = vmul.f32 %v5833_v17, %v726_v11  ;;  %v763_v17 = vrot.slane %v5853_v41, %v5935_v0 }
 0x49d   :  { %v702_v39 = vadd.f32 %v700_v15, %v698_v19  ;;  %5301 = vpow2.f32 %v458_v44 }
 0x49e   :  { %v666_v48 = vadd.f32 %v664_v43, %v662_v57  ;;  %v565_v43 = vmul.f32 %v562_v23, %v5885_v40  ;;  %v5294_v57 = vpop.eup %5293  ;;  %v673_v40 = vpop.permute.xlu0 %672 }
 0x49f   :  { %v5296_v45 = vpop.eup %5295 }
 0x4a0   :  { %v733_v56 = vpop.permute.xlu1 %732  ;;  %v701_v13 = vmul.f32 %v5290_v58, %v666_v48  ;;  %v737_v60 = vmul.f32 %v5296_v45, %v702_v39  ;;  %v567_v7 = vsel %vm218_vm5, %v565_v43, 0.0  ;;  %v676_v15 = vmul.f32 %v673_v40, %v666_v48  ;;  %v5298_v16 = vpop.eup %5297 }
 0x4a1   :  { %v736_v27 = vmul.f32 %v733_v56, %v726_v11  ;;  %v568_v19 = vadd.f32 %v567_v7, %v566_v42  ;;  %v675_v56 = vmul.f32 %v5856_v36, %v665_v51  ;;  %v640_v43 = vsel %vm218_vm5, %v638_v22, 0.0 }
 0x4a2   :  { %v5922_v37 = vadd.f32 %v701_v13, %v699_v50  ;;  %v460_v13 = vmul.f32 1.442695, %v429_v62  ;;  %v739_v50 = vadd.f32 %v737_v60, %v735_v63  ;;  %v747_v35 = vpop.permute.xlu0 %746  ;;  %v678_v62 = vsel %vm218_vm5, %v676_v15, 0.0 }
 0x4a3   :  { %v569_v44 = vrot.slane %v568_v19, 4  ;;  %v677_v36 = vsel %vm218_vm5, %v675_v56, 0.0  ;;  %v712_v7 = vmul.f32 %v5863_v49, %v702_v39 }
 0x4a4   :  { %v738_v53 = vmul.f32 %v5294_v57, %v5922_v37  ;;  %5303 = vpow2.f32 %v460_v13  ;;  %v774_v11 = vmul.f32 %v5298_v16, %v739_v50  ;;  %v749_v51 = vmul.f32 %v5873_v1, %v739_v50 }
 0x4a5   :  { %v5920_v29 = vpop.permute.xlu1 %769  ;;  %v714_v39 = vsel %vm218_vm5, %v712_v7, 0.0 }
 0x4a6   :  { %v773_v56 = vmul.f32 %v5920_v29, %v763_v17 }
 0x4aa   :  { %v599_v58 = vpop.permute.xlu1 %598 }
 0x4ab   :  { %v602_v18 = vmul.f32 %v599_v58, %v5895_v59  ;;  %v740_v59 = vadd.f32 %v738_v53, %v736_v27  ;;  %v772_v53 = vmul.f32 %v5844_v26, %v763_v17  ;;  %v679_v58 = vadd.f32 %v678_v62, %v677_v36  ;;  %v817_v17 = vpop.permute.xlu0 %816 }
 0x4ac   :  { %v570_v27 = vadd.f32 %v569_v44, %v568_v19 }
 0x4ad   :  { %v604_v28 = vsel %vm218_vm5, %v602_v18, 0.0  ;;  %v750_v48 = vmul.f32 %v747_v35, %v740_v59  ;;  %v5300_v18 = vpop.eup %5299  ;;  %v776_v13 = vadd.f32 %v774_v11, %v772_v53 }
 0x4ae   :  { %v605_v23 = vadd.f32 %v604_v28, %v603_v20  ;;  %v751_v28 = vsel %vm218_vm5, %v749_v51, 0.0  ;;  %v775_v1 = vmul.f32 %v5300_v18, %v740_v59  ;;  %v680_v20 = vrot.slane %v679_v58, 4  ;;  %v5302_v50 = vpop.eup %5301 }
 0x4af   :  { %v636_v24 = vpop.permute.xlu1 %635  ;;  %v752_v40 = vsel %vm218_vm5, %v750_v48, 0.0  ;;  %v571_v19 = vrot.slane %v570_v27, 2 }
 0x4b0   :  { %v639_v55 = vmul.f32 %v636_v24, %v5901_v25  ;;  %v606_v45 = vrot.slane %v605_v23, 4  ;;  %v5952_v25 = vsub.s32 7, %v5681_v30  ;;  %v753_v15 = vadd.f32 %v752_v40, %v751_v28 }
 0x4b1   :  { %v777_v16 = vadd.f32 %v775_v1, %v773_v56 }
 0x4b2   :  { %v641_v57 = vsel %vm218_vm5, %v639_v55, 0.0  ;;  %v607_v22 = vadd.f32 %v606_v45, %v605_v23  ;;  %v800_v63 = vrot.slane %v5853_v41, %v5952_v25  ;;  %v811_v23 = vmul.f32 %v5302_v50, %v776_v13 }
 0x4b3   :  { %v642_v46 = vadd.f32 %v641_v57, %v640_v43  ;;  %v786_v41 = vmul.f32 %v5881_v32, %v776_v13  ;;  %v681_v43 = vadd.f32 %v680_v20, %v679_v58  ;;  %v754_v62 = vrot.slane %v753_v15, 4  ;;  %v5304_v57 = vpop.eup %5303 }
 0x4b4   :  { %v807_v4 = vpop.permute.xlu1 %806  ;;  %v809_v24 = vmul.f32 %v5865_v52, %v800_v63  ;;  %v608_v55 = vrot.slane %v607_v22, 2  ;;  %v812_v32 = vmul.f32 %v5304_v57, %v777_v16 }
 0x4b5   :  { %v643_v60 = vrot.slane %v642_v46, 4  ;;  %v810_v11 = vmul.f32 %v807_v4, %v800_v63  ;;  %v788_v36 = vsel %vm218_vm5, %v786_v41, 0.0  ;;  %v682_v53 = vrot.slane %v681_v43, 2 }
 0x4b6   :  { %v813_v52 = vadd.f32 %v811_v23, %v809_v24 }
 0x4b7   :  { %v644_v42 = vadd.f32 %v643_v60, %v642_v46  ;;  %v572_v46 = vadd.f32 %v571_v19, %v570_v27  ;;  %v755_v60 = vadd.f32 %v754_v62, %v753_v15  ;;  %v814_v13 = vadd.f32 %v812_v32, %v810_v11  ;;  %v4470_v32 = vld [vmem:[%s7416_s9] ss:$0 sm:$0xff] }
 0x4b8   :  { %v823_v18 = vmul.f32 %v817_v17, %v813_v52  ;;  %v683_v27 = vadd.f32 %v682_v53, %v681_v43 }
 0x4b9   :  { %v710_v26 = vpop.permute.xlu1 %709  ;;  %v645_v35 = vrot.slane %v644_v42, 2  ;;  %v756_v50 = vrot.slane %v755_v60, 2 }
 0x4ba   :  { %v713_v49 = vmul.f32 %v710_v26, %v5922_v37  ;;  %v609_v37 = vadd.f32 %v608_v55, %v607_v22  ;;  %v573_v26 = vrot.slane %v572_v46, 1 }
 0x4bb   :  { %v646_v51 = vadd.f32 %v645_v35, %v644_v42  ;;  %v825_v42 = vsel %vm218_vm5, %v823_v18, 0.0  ;;  %v684_v35 = vrot.slane %v683_v27, 1 }
 0x4bc   :  { %v715_v59 = vsel %vm218_vm5, %v713_v49, 0.0  ;;  %v610_v28 = vrot.slane %v609_v37, 1  ;;  %v574_v41 = vadd.f32 %v573_v26, %v572_v46 }
 0x4bd   :  { %v716_v48 = vadd.f32 %v715_v59, %v714_v39  ;;  %v647_v1 = vrot.slane %v646_v51, 1  ;;  %v757_v59 = vadd.f32 %v756_v50, %v755_v60 }
 0x4be   :  { %v784_v29 = vpop.permute.xlu1 %783  ;;  %v611_v49 = vadd.f32 %v610_v28, %v609_v37 }
 0x4bf   :  { %v717_v44 = vrot.slane %v716_v48, 4  ;;  %v787_v45 = vmul.f32 %v784_v29, %v777_v16  ;;  %v648_v19 = vadd.f32 %v647_v1, %v646_v51  ;;  %v685_v29 = vadd.f32 %v684_v35, %v683_v27  ;;  %v5483_v1 = vld [vmem:[%s7445_s26] sm:$0xff] }
 0x4c0   :  { %v835_v43 = vsel %vm834_vm8, %v574_v41, %v611_v49  ;;  %v758_v17 = vrot.slane %v757_v59, 1  ;;  %v978_v49 = vld [vmem:[%s7420_s13 + $0x28] sm:$0xff]  ;;  %v973_v41 = vld [vmem:[%s7420_s13] sm:$0xff] }
 0x4c1   :  { %v718_v40 = vadd.f32 %v717_v44, %v716_v48  ;;  %v789_v58 = vsel %vm218_vm5, %v787_v45, 0.0  ;;  %v837_v57 = vsel %vm836_vm9, %v835_v43, %v648_v19  ;;  %v976_v19 = vld [vmem:[%s7420_s13 + $0x18] sm:$0xff]  ;;  %v4473_v43 = vld [vmem:[%s7418_s11] ss:$0 sm:$0xff] }
 0x4c2   :  { %v790_v7 = vadd.f32 %v789_v58, %v788_v36  ;;  %v839_v45 = vsel %vm838_vm10, %v837_v57, %v685_v29  ;;  %v759_v53 = vadd.f32 %v758_v17, %v757_v59  ;;  %v853_v58 = vmul.f32 %v4470_v32, %v5720_v61  ;;  %v4474_v57 = vld [vmem:[%s7419_s12] ss:$0 sm:$0xff]  ;;  %v1078_v29 = vld [vmem:[%s7421_s14 + $0x78] sm:$0xff]  ;;  %v1077_v17 = vld [vmem:[%s7421_s14 + $0x70] sm:$0xff] }
 0x4c3   :  { %v719_v4 = vrot.slane %v718_v40, 2  ;;  %v821_v63 = vpop.permute.xlu1 %820  ;;  %4828 = vmatpush3.msra.mxu0 %v1078_v29  ;;  %v1070_v32 = vld [vmem:[%s7421_s14 + $0x38] sm:$0xff] }
 0x4c4   :  { %v791_v22 = vrot.slane %v790_v7, 4  ;;  %v824_v20 = vmul.f32 %v821_v63, %v814_v13  ;;  %4829 = vmatprep.subr.mxu0 %v5507_v8 }
 0x4c5   :  { %v720_v24 = vadd.f32 %v719_v4, %v718_v40  ;;  %4830 = vmatpush3.msra.mxu0 %v1077_v17  ;;  %v4494_v17 = vld [vmem:[%s7413_s6 + $0x78] sm:$0xff] }
 0x4c6   :  { %v792_v56 = vadd.f32 %v791_v22, %v790_v7  ;;  %v826_v15 = vsel %vm218_vm5, %v824_v20, 0.0  ;;  %4831 = vmatprep.subr.mxu0 %v5507_v8 }
 0x4c7   :  { %v827_v39 = vadd.f32 %v826_v15, %v825_v42  ;;  %v721_v23 = vrot.slane %v720_v24, 1  ;;  %v864_v28 = vpop.permute.xlu1 %863  ;;  %v979_v15 = vld [vmem:[%s7420_s13 + $0x30] sm:$0xff] }
 0x4c8   :  { %v793_v55 = vrot.slane %v792_v56, 2 }
 0x4c9   :  { %v828_v16 = vrot.slane %v827_v39, 4  ;;  %v722_v52 = vadd.f32 %v721_v23, %v720_v24  ;;  %v975_v23 = vld [vmem:[%s7420_s13 + $0x10] sm:$0xff] }
 0x4ca   :  { %v794_v62 = vadd.f32 %v793_v55, %v792_v56  ;;  %v980_v56 = vld [vmem:[%s7420_s13 + $0x38] sm:$0xff]  ;;  %v974_v55 = vld [vmem:[%s7420_s13 + $0x8] sm:$0xff] }
 0x4cb   :  { %v829_v48 = vadd.f32 %v828_v16, %v827_v39  ;;  %v841_v36 = vsel %vm840_vm11, %v839_v45, %v722_v52  ;;  %1008 = vmatprep.subr.mxu1 %v980_v56  ;;  %v977_v39 = vld [vmem:[%s7420_s13 + $0x20] sm:$0xff]  ;;  %v1074_v45 = vld [vmem:[%s7421_s14 + $0x58] sm:$0xff] }
 0x4cc   :  { %v795_v11 = vrot.slane %v794_v62, 1  ;;  %v843_v40 = vsel %vm842_vm12, %v841_v36, %v759_v53  ;;  %v1072_v36 = vld [vmem:[%s7421_s14 + $0x48] sm:$0xff]  ;;  %v1069_v53 = vld [vmem:[%s7421_s14 + $0x30] sm:$0xff] }
 0x4cd   :  { %v830_v37 = vrot.slane %v829_v48, 2 }
 0x4ce   :  { %v796_v46 = vadd.f32 %v795_v11, %v794_v62 }
 0x4cf   :  { %v831_v44 = vadd.f32 %v830_v37, %v829_v48  ;;  %v1076_v37 = vld [vmem:[%s7421_s14 + $0x68] sm:$0xff] }
 0x4d0   :  { %v845_v18 = vsel %vm844_vm13, %v843_v40, %v796_v46  ;;  %4832 = vmatpush3.msra.mxu0 %v1076_v37  ;;  %v1073_v46 = vld [vmem:[%s7421_s14 + $0x50] sm:$0xff]  ;;  %v1067_v40 = vld [vmem:[%s7421_s14 + $0x20] sm:$0xff] }
 0x4d1   :  { %v832_v51 = vrot.slane %v831_v44, 1  ;;  %4833 = vmatprep.subr.mxu0 %v5507_v8  ;;  %v4493_v37 = vld [vmem:[%s7413_s6 + $0x70] sm:$0xff] }
 0x4d3   :  { %v833_v60 = vadd.f32 %v832_v51, %v831_v44  ;;  %v1075_v44 = vld [vmem:[%s7421_s14 + $0x60] sm:$0xff] }
 0x4d4   :  { %4834 = vmatpush3.msra.mxu0 %v1075_v44  ;;  %v1071_v51 = vld [vmem:[%s7421_s14 + $0x40] sm:$0xff]  ;;  %v4492_v44 = vld [vmem:[%s7413_s6 + $0x68] sm:$0xff] }
 0x4d5   :  { %v847_v7 = vsel %vm846_vm14, %v845_v18, %v833_v60  ;;  %4835 = vmatprep.subr.mxu0 %v5507_v8  ;;  %v1068_v60 = vld [vmem:[%s7421_s14 + $0x28] sm:$0xff]  ;;  %v1065_v18 = vld [vmem:[%s7421_s14 + $0x10] sm:$0xff] }
 0x4d6   :  { %v854_v13 = vadd.f32 %v853_v58, %v847_v7  ;;  %4836 = vmatpush3.msra.mxu0 %v1074_v45  ;;  %v1066_v58 = vld [vmem:[%s7421_s14 + $0x18] sm:$0xff]  ;;  %v1064_v7 = vld [vmem:[%s7421_s14 + $0x8] sm:$0xff]  ;;  %v4491_v45 = vld [vmem:[%s7413_s6 + $0x60] sm:$0xff] }
 0x4d7   :  { %4837 = vmatprep.subr.mxu0 %v5507_v8 }
 0x4d8   :  { %v866_v4 = vmul.f32 %v864_v28, %v854_v13  ;;  %4838 = vmatpush3.msra.mxu0 %v1073_v46  ;;  %v1063_v13 = vld [vmem:[%s7421_s14] sm:$0xff]  ;;  %v4490_v46 = vld [vmem:[%s7413_s6 + $0x58] sm:$0xff] }
 0x4d9   :  { %4839 = vmatprep.subr.mxu0 %v5507_v8 }
 0x4da   :  { %4825 = vmatmul.mubr.msk.f32.vlgmr.msra.gmra.mxu1 %vm218_vm5, %v866_v4  ;;  %4840 = vmatpush3.msra.mxu0 %v1072_v36  ;;  %v4489_v36 = vld [vmem:[%s7413_s6 + $0x50] sm:$0xff] }
 0x4db   :  { %1048 = vmatprep.mubr.f32.mxu1 %v5507_v8  ;;  %1009 = vmatpush1.msra.mxu1 %v979_v15 }
 0x4dc   :  { %1010 = vmatprep.subr.mxu1 %v978_v49  ;;  %4841 = vmatprep.subr.mxu0 %v5507_v8 }
 0x4dd   :  { %1011 = vmatpush1.msra.mxu1 %v977_v39  ;;  %4842 = vmatpush3.msra.mxu0 %v1071_v51  ;;  %v4488_v51 = vld [vmem:[%s7413_s6 + $0x48] sm:$0xff] }
 0x4de   :  { %1012 = vmatprep.subr.mxu1 %v976_v19  ;;  %4843 = vmatprep.subr.mxu0 %v5507_v8 }
 0x4df   :  { %1013 = vmatpush1.msra.mxu1 %v975_v23  ;;  %4844 = vmatpush3.msra.mxu0 %v1070_v32  ;;  %v4487_v32 = vld [vmem:[%s7413_s6 + $0x40] sm:$0xff] }
 0x4e0   :  { %1014 = vmatprep.subr.mxu1 %v974_v55  ;;  %4845 = vmatprep.subr.mxu0 %v5507_v8  ;;  %v4482_v55 = vld [vmem:[%s7410_s3 + $0x38] sm:$0xff] }
 0x4e1   :  { %1015 = vmatpush1.msra.mxu1 %v973_v41  ;;  %4846 = vmatpush3.msra.mxu0 %v1069_v53  ;;  %v4480_v41 = vld [vmem:[%s7410_s3 + $0x28] sm:$0xff] }
 0x4e2   :  { %4862 = vmatprep.subr.mxu1 %v5507_v8  ;;  %4847 = vmatprep.subr.mxu0 %v5507_v8  ;;  %v6158_v53 = vld [vmem:[%s7445_s26 + $0x8] sm:$0xff] }
 0x4e3   :  { %4848 = vmatpush3.msra.mxu0 %v1068_v60  ;;  %v2266_v60 = vsel %vm62_vm0, %v6158_v53, 0.0 }
 0x4e4   :  { %4849 = vmatprep.subr.mxu0 %v5507_v8 }
 0x4e5   :  { %4850 = vmatpush3.msra.mxu0 %v1067_v40  ;;  %v4484_v40 = vld [vmem:[%s7411_s4 + $0x4] sm:$0xf] }
 0x4e6   :  { %4851 = vmatprep.subr.mxu0 %v5507_v8 }
 0x4e7   :  { %4852 = vmatpush3.msra.mxu0 %v1066_v58 }
 0x4e8   :  { %4853 = vmatprep.subr.mxu0 %v5507_v8 }
 0x4e9   :  { %4854 = vmatpush3.msra.mxu0 %v1065_v18  ;;  %v1257_v18 = vrot.slane %v4484_v40, %v5684_v31 }
 0x4ea   :  { %4855 = vmatprep.subr.mxu0 %v5507_v8 }
 0x4eb   :  { %4856 = vmatpush3.msra.mxu0 %v1064_v7  ;;  %v1264_v7 = vrot.slane %v4484_v40, %v5690_v33 }
 0x4ec   :  { %4857 = vmatprep.subr.mxu0 %v5507_v8 }
 0x4ed   :  { %4858 = vmatpush3.msra.mxu0 %v1063_v13 }
 0x59a   :  { %v944_v63 = vpop.f32.mrf.mxu1 }
 0x59b   :  { %v5987_v22 = vadd.f32 %v5483_v1, %v944_v63 }
 0x59c   :  { %v4826_v20 = vpop.f32.mrf.mxu1 }
 0x59d   :  { %v950_v61 = vsel %vm62_vm0, %v5987_v22, 0.0 }
 0x59e   :  { %951 = vadd.xlane.f32.xlu0 %v950_v61 }
 0x627   :  { %v952_v26 = vpop.xlane.xlu0 %951 }
 0x628   :  { %v953_v27 = vmul.f32 0.03125, %v952_v26 }
 0x62a   :  { %v954_v50 = vsub.f32 %v5987_v22, %v953_v27 }
 0x62c   :  { %v955_v24 = vmul.f32 %v954_v50, %v954_v50 }
 0x62e   :  { %v956_v42 = vsel %vm62_vm0, %v955_v24, 0.0 }
 0x62f   :  { %957 = vadd.xlane.f32.xlu1 %v956_v42 }
 0x633   :  { %2267 = vadd.xlane.f32.xlu1 %v2266_v60 }
 0x6b8   :  { %v958_v35 = vpop.xlane.xlu1 %957 }
 0x6b9   :  { %v959_v59 = vmul.f32 0.03125, %v958_v35  ;;  %v4479_v35 = vld [vmem:[%s7410_s3 + $0x20] sm:$0xff] }
 0x6bb   :  { %v960_v16 = vadd.f32 1e-05, %v959_v59 }
 0x6bd   :  { %5305 = vrsqrt.f32 %v960_v16 }
 0x6ca   :  { %v5306_v62 = vpop.eup %5305 }
 0x6cb   :  { %v962_v48 = vmul.f32 %v5306_v62, %v954_v50 }
 0x6cd   :  { %v967_v52 = vmul.f32 %v4473_v43, %v962_v48  ;;  %v4477_v48 = vld [vmem:[%s7446_s22 + $0x1] ss:$0 sm:$0xff] }
 0x6cf   :  { %v972_v11 = vadd.f32 %v4474_v57, %v967_v52  ;;  %v4478_v52 = vld [vmem:[%s7409_s2 + $0x1] ss:$0 sm:$0xff] }
 0x6d1   :  { %4475 = vmatmul.mubr.msk.f32.vlgmr.msra.gmra.mxu1 %vm62_vm0, %v972_v11 }
 0x6d2   :  { %4870 = vmatprep.mubr.msk.f32.mxu1 %vm5508_vm1, %v5507_v8  ;;  %4863 = vmatpush3.msra.mxu1 %v4482_v55 }
 0x6d3   :  { %4864 = vmatprep.subr.mxu1 %v5507_v8 }
 0x791   :  { %v1050_v28 = vpop.f32.mrf.mxu1 }
 0x793   :  { %v1052_v4 = vpop.f32.mrf.mxu1 }
 0x794   :  { %v4476_v63 = vmul.f32 -1.442695, %v1052_v4 }
 0x796   :  { %5307 = vpow2.f32 %v4476_v63  ;;  %v1272_v63 = vrot.slane %v4484_v40, %v5693_v34 }
 0x7a3   :  { %v5308_v1 = vpop.eup %5307 }
 0x7a4   :  { %v1058_v20 = vadd.f32 1.0, %v5308_v1 }
 0x7a6   :  { %5309 = vrcp.f32 %v1058_v20 }
 0x7b3   :  { %v5310_v61 = vpop.eup %5309 }
 0x7b4   :  { %v1061_v26 = vmul.f32 %v5310_v61, %v1052_v4 }
 0x7b6   :  { %v1062_v27 = vmul.f32 %v1061_v26, %v1050_v28 }
 0x7b8   :  { %4860 = vmatmul.mubr.f32.vlgmr.msra.gmra.mxu0 %v1062_v27 }
 0x7b9   :  { %2130 = vmatprep.mubr.f32.mxu0 %v5507_v8 }
 0x878   :  { %v1145_v50 = vpop.f32.mrf.mxu0 }
 0x879   :  { %v6092_v24 = vadd.f32 %v1145_v50, %v5987_v22  ;;  %v4481_v22 = vld [vmem:[%s7410_s3 + $0x30] sm:$0xff]  ;;  %v1280_v50 = vrot.slane %v4484_v40, %v5702_v38 }
 0x87a   :  { %v4861_v42 = vpop.f32.mrf.mxu0  ;;  %4865 = vmatpush3.msra.mxu1 %v4481_v22 }
 0x87b   :  { %v1151_v56 = vsel %vm62_vm0, %v6092_v24, 0.0  ;;  %4866 = vmatprep.subr.mxu1 %v5507_v8 }
 0x87c   :  { %1152 = vadd.xlane.f32.xlu0 %v1151_v56  ;;  %4867 = vmatpush3.msra.mxu1 %v4480_v41 }
 0x87d   :  { %4868 = vmatprep.subr.mxu1 %v5507_v8 }
 0x87e   :  { %4869 = vmatpush3.msra.mxu1 %v4479_v35 }
 0x87f   :  { %4873 = vmatprep.subr.mxu1 %v5507_v8 }
 0x905   :  { %v1153_v15 = vpop.xlane.xlu0 %1152 }
 0x906   :  { %v1154_v49 = vmul.f32 0.03125, %v1153_v15 }
 0x908   :  { %v1155_v39 = vsub.f32 %v6092_v24, %v1154_v49 }
 0x90a   :  { %v1156_v19 = vmul.f32 %v1155_v39, %v1155_v39 }
 0x90c   :  { %v1157_v23 = vsel %vm62_vm0, %v1156_v19, 0.0  ;;  %v4485_v19 = vld [vmem:[%s7412_s5 + $0x1] ss:$0 sm:$0xff] }
 0x90d   :  { %1158 = vadd.xlane.f32.xlu0 %v1157_v23 }
 0x996   :  { %v1159_v59 = vpop.xlane.xlu0 %1158 }
 0x997   :  { %v1160_v16 = vmul.f32 0.03125, %v1159_v59 }
 0x999   :  { %v1161_v62 = vadd.f32 1e-05, %v1160_v16 }
 0x99b   :  { %5311 = vrsqrt.f32 %v1161_v62 }
 0x9a8   :  { %v5312_v43 = vpop.eup %5311 }
 0x9a9   :  { %v1163_v57 = vmul.f32 %v5312_v43, %v1155_v39 }
 0x9ab   :  { %v1168_v11 = vmul.f32 %v4477_v48, %v1163_v57  ;;  %v6192_v48 = vpop.xlane.xlu1 %2267 }
 0x9ad   :  { %v1173_v29 = vadd.f32 %v4478_v52, %v1168_v11 }
 0x9af   :  { %4871 = vmatmul.mubr.msk.f32.vlgmr.msra.gmra.mxu1 %vm62_vm0, %v1173_v29 }
 0x9b0   :  { %4889 = vmatprep.mubr.msk.f32.mxu1 %vm5508_vm1, %v5507_v8  ;;  %4874 = vmatpush3.msra.mxu1 %v4494_v17 }
 0x9b1   :  { %4875 = vmatprep.subr.mxu1 %v5507_v8 }
 0x9b2   :  { %4876 = vmatpush3.msra.mxu1 %v4493_v37  ;;  %v4496_v37 = vld [vmem:[%s7414_s7 + $0x1] ss:$0 sm:$0xff] }
 0x9b3   :  { %4877 = vmatprep.subr.mxu1 %v5507_v8 }
 0x9b4   :  { %4878 = vmatpush3.msra.mxu1 %v4492_v44 }
 0x9b5   :  { %4879 = vmatprep.subr.mxu1 %v5507_v8 }
 0x9b6   :  { %4880 = vmatpush3.msra.mxu1 %v4491_v45 }
 0x9b7   :  { %4881 = vmatprep.subr.mxu1 %v5507_v8 }
 0x9b8   :  { %4882 = vmatpush3.msra.mxu1 %v4490_v46 }
 0x9b9   :  { %4883 = vmatprep.subr.mxu1 %v5507_v8 }
 0x9ba   :  { %4884 = vmatpush3.msra.mxu1 %v4489_v36 }
 0x9bb   :  { %4885 = vmatprep.subr.mxu1 %v5507_v8 }
 0x9bc   :  { %4886 = vmatpush3.msra.mxu1 %v4488_v51 }
 0x9bd   :  { %4887 = vmatprep.subr.mxu1 %v5507_v8 }
 0x9be   :  { %4888 = vmatpush3.msra.mxu1 %v4487_v32 }
 0x9bf   :  { %4892 = vmatprep.subr.mxu1 %v5507_v8 }
 0xa6f   :  { %v6165_v58 = vpop.f32.mrf.mxu1 }
 0xa70   :  { %v1259_v13 = vrot.slane %v6165_v58, 5  ;;  %v1267_v28 = vrot.slane %v6165_v58, 6  ;;  %v1275_v4 = vrot.slane %v6165_v58, 7  ;;  %v1258_v26 = vmul.f32 %v1257_v18, %v6165_v58 }
 0xa71   :  { %v4872_v1 = vpop.f32.mrf.mxu1  ;;  %v4500_v46 = vmul.f32 -1.442695, %v6165_v58 }
 0xa72   :  { %v1260_v20 = vsel %vm171_vm2, %v1259_v13, 0.0  ;;  %v1268_v61 = vsel %vm180_vm3, %v1267_v28, 0.0  ;;  %v1276_v42 = vsel %vm189_vm4, %v1275_v4, 0.0  ;;  %v2269_v4 = vmul.f32 0.03125, %v6192_v48  ;;  %v4501_v48 = vld [vmem:[%s7417_s10 + $0x40] sm:$0xff] }
 0xa73   :  { %v1265_v27 = vmul.f32 %v1264_v7, %v1260_v20  ;;  %v1273_v15 = vmul.f32 %v1272_v63, %v1268_v61  ;;  %v1281_v39 = vmul.f32 %v1280_v50, %v1276_v42 }
 0xa74   :  { %v6245_v20 = vsub.f32 %v6158_v53, %v2269_v4 }
 0xa75   :  { %v1266_v56 = vadd.f32 %v1265_v27, %v1258_v26  ;;  %v4497_v27 = vld [vmem:[%s7415_s8 + $0x10] sm:$0xff] }
 0xa76   :  { %v2271_v42 = vmul.f32 %v6245_v20, %v6245_v20 }
 0xa77   :  { %v1274_v49 = vadd.f32 %v1273_v15, %v1266_v56  ;;  %v1405_v56 = vmul.f32 1.442695, %v4497_v27  ;;  %v4508_v15 = vld [vmem:[%s7417_s10 + $0x78] sm:$0xff] }
 0xa79   :  { %v1282_v23 = vadd.f32 %v1281_v39, %v1274_v49  ;;  %v4507_v49 = vld [vmem:[%s7417_s10 + $0x70] sm:$0xff]  ;;  %v4506_v39 = vld [vmem:[%s7417_s10 + $0x68] sm:$0xff] }
 0xa7b   :  { %v1288_v55 = vadd.f32 %v4485_v19, %v1282_v23  ;;  %v2272_v23 = vsel %vm62_vm0, %v2271_v42, 0.0 }
 0xa7d   :  { %v4486_v22 = vmul.f32 -1.442695, %v1288_v55 }
 0xa7f   :  { %5313 = vpow2.f32 %v4486_v22 }
 0xa8c   :  { %v5314_v41 = vpop.eup %5313 }
 0xa8d   :  { %v1292_v35 = vadd.f32 1.0, %v5314_v41  ;;  %v4504_v41 = vld [vmem:[%s7417_s10 + $0x58] sm:$0xff] }
 0xa8f   :  { %5315 = vrcp.f32 %v1292_v35  ;;  %v4503_v35 = vld [vmem:[%s7417_s10 + $0x50] sm:$0xff] }
 0xa90   :  { %5317 = vpow2.f32 %v4500_v46 }
 0xa9c   :  { %v5316_v59 = vpop.eup %5315 }
 0xa9d   :  { %v6184_v16 = vmul.f32 %v5316_v59, %v1288_v55  ;;  %v5318_v60 = vpop.eup %5317  ;;  %v4505_v55 = vld [vmem:[%s7417_s10 + $0x60] sm:$0xff] }
 0xa9e   :  { %v1938_v40 = vadd.f32 1.0, %v5318_v60 }
 0xa9f   :  { %4890 = vmatmul.mubr.msk.f32.vlgmr.msra.gmra.mxu1 %vm218_vm5, %v6184_v16 }
 0xaa0   :  { %4908 = vmatprep.mubr.msk.f32.mxu1 %vm5508_vm1, %v5507_v8  ;;  %4893 = vmatpush3.msra.mxu1 %v4508_v15 }
 0xaa1   :  { %4894 = vmatprep.subr.mxu1 %v5507_v8 }
 0xaa2   :  { %4895 = vmatpush3.msra.mxu1 %v4507_v49 }
 0xaa3   :  { %4896 = vmatprep.subr.mxu1 %v5507_v8 }
 0xaa4   :  { %4897 = vmatpush3.msra.mxu1 %v4506_v39 }
 0xaa5   :  { %4898 = vmatprep.subr.mxu1 %v5507_v8 }
 0xaa6   :  { %4899 = vmatpush3.msra.mxu1 %v4505_v55 }
 0xaa7   :  { %4900 = vmatprep.subr.mxu1 %v5507_v8 }
 0xaa8   :  { %4901 = vmatpush3.msra.mxu1 %v4504_v41 }
 0xaa9   :  { %4902 = vmatprep.subr.mxu1 %v5507_v8 }
 0xaaa   :  { %4903 = vmatpush3.msra.mxu1 %v4503_v35 }
 0xaab   :  { %4904 = vmatprep.subr.mxu1 %v5507_v8 }
 0xb5f   :  { %v1374_v62 = vpop.f32.mrf.mxu1 }
 0xb60   :  { %1586 = vrot.lane.b32.xlu0 %v1374_v62, %s5510_s1  ;;  %1551 = vrot.lane.b32.xlu1 %v1374_v62, %s5509_s19  ;;  %v6223_v45 = vadd.f32 %v4496_v37, %v1374_v62  ;;  %v4502_v62 = vld [vmem:[%s7417_s10 + $0x48] sm:$0xff] }
 0xb61   :  { %v4891_v43 = vpop.f32.mrf.mxu1  ;;  %4905 = vmatpush3.msra.mxu1 %v4502_v62 }
 0xb62   :  { %v1387_v36 = vand.u32 2147483647, %v6223_v45  ;;  %v1384_v19 = vmax.f32 %v6223_v45, 0.0  ;;  %vm1385_vm6 = vcmp.ne.f32.partialorder %v6223_v45, %v6223_v45  ;;  %4906 = vmatprep.subr.mxu1 %v5507_v8 }
 0xb63   :  { %4907 = vmatpush3.msra.mxu1 %v4501_v48 }
 0xb64   :  { %v1388_v51 = vsub.f32 0.0, %v1387_v36  ;;  %4946 = vmatprep.subr.mxu1 %v5507_v8 }
 0xb66   :  { %v1389_v32 = vmul.f32 1.442695, %v1388_v51 }
 0xb68   :  { %5319 = vpow2.f32 %v1389_v32 }
 0xb69   :  { %5321 = vrcp.f32 %v1938_v40 }
 0xb75   :  { %v5320_v18 = vpop.eup %5319 }
 0xb76   :  { %v1391_v7 = vadd.f32 1.0, %v5320_v18  ;;  %v5322_v13 = vpop.eup %5321  ;;  %v1394_v63 = vmul.f32 -0.5, %v5320_v18  ;;  %v1397_v26 = vand.u32 2147483647, %v5320_v18 }
 0xb77   :  { %v1941_v28 = vmul.f32 %v5322_v13, %v6165_v58 }
 0xb78   :  { %5323 = vlog2.f32 %v1391_v7  ;;  %v1395_v61 = vadd.f32 1.0, %v1394_v63  ;;  %vm1398_vm15 = vcmp.lt.f32.partialorder %v1397_v26, 0.0004427343 }
 0xb79   :  { %5325 = vpow2.f32 %v1405_v56 }
 0xb7a   :  { %v1396_v58 = vmul.f32 %v5320_v18, %v1395_v61 }
 0xb85   :  { %v5324_v1 = vpop.eup %5323 }
 0xb86   :  { %v1393_v50 = vmul.f32 0.6931472, %v5324_v1 }
 0xb88   :  { %v1399_v53 = vsel %vm1398_vm15, %v1396_v58, %v1393_v50 }
 0xb89   :  { %v1400_v22 = vadd.f32 %v1399_v53, %v1384_v19 }
 0xb8b   :  { %v1401_v59 = vsel %vm1385_vm6, %v6223_v45, %v1400_v22 }
 0xb8c   :  { %v1419_v43 = vrot.slane %v1401_v59, %v5802_v54  ;;  %v1412_v26 = vcombine.high %v1401_v59, %v1401_v59  ;;  %v6311_v42 = vmul.f32 %v1401_v59, %v6184_v16 }
 0xb8e   :  { %v1426_v49 = vrot.slane %v1412_v26, %v5802_v54  ;;  %v1624_v19 = vrot.slane %v6311_v42, %v5690_v33 }
 0xb90   :  { %v1442_v62 = vrot.slane %v1426_v49, %v5802_v54 }
 0xbd2   :  { %v1587_v57 = vpop.permute.xlu0 %1586  ;;  %v1552_v52 = vpop.permute.xlu1 %1551 }
 0xbd3   :  { %1589 = vxpose.xlu1.b32.start.end [1/1] (short) (narrow) %v1587_v57, 16  ;;  %1554 = vxpose.xlu0.b32.start.end [1/1] (short) (narrow) %v1552_v52, 16  ;;  %v1435_v57 = vrot.slane %v1419_v43, %v5802_v54  ;;  %v4498_v52 = vld [vmem:[%s7415_s8 + $0x18] sm:$0xff] }
 0xbd5   :  { %v1457_v7 = vcombine.high %v1435_v57, %v1435_v57 }
 0xbd7   :  { %v1472_v4 = vrot.slane %v1457_v7, %v5690_v33 }
 0xbf1   :  { %5167 = vset.pattern.permute.xlu1 %v7433_v12 }
 0xbfc   :  { %5162 = vset.pattern.permute.xlu0 %v7441_v2 }
 0xc4f   :  { %v1570_v11 = vpop.trf.xlu0  ;;  %v6198_v29 = vpop.trf.xlu1 }
 0xc50   :  { %1815 = vperm.xlu1 %5167, %v1570_v11   ;;  %1627 = vperm.xlu0 %5162, %v1570_v11  }
 0xc53   :  { %v1571_v17 = vpop.trf.xlu0  ;;  %v1606_v44 = vpop.trf.xlu1 }
 0xc54   :  { %5168 = vset.pattern.permute.xlu1 %v7429_v5  ;;  %5163 = vset.pattern.permute.xlu0 %v7435_v6 }
 0xc55   :  { %1852 = vperm.xlu1 %5168, %v1570_v11   ;;  %1667 = vperm.xlu0 %5163, %v1570_v11  }
 0xc59   :  { %5170 = vset.pattern.permute.xlu1 %v7435_v6  ;;  %5164 = vset.pattern.permute.xlu0 %v7439_v9 }
 0xc5a   :  { %1681 = vperm.xlu1 %5170, %v6198_v29   ;;  %1704 = vperm.xlu0 %5164, %v1570_v11  }
 0xc5e   :  { %5171 = vset.pattern.permute.xlu1 %v7439_v9  ;;  %5165 = vset.pattern.permute.xlu0 %v7437_v3 }
 0xc5f   :  { %1718 = vperm.xlu1 %5171, %v6198_v29   ;;  %1741 = vperm.xlu0 %5165, %v1570_v11  }
 0xc63   :  { %5173 = vset.pattern.permute.xlu1 %v7427_v14  ;;  %5166 = vset.pattern.permute.xlu0 %v7431_v10 }
 0xc64   :  { %1889 = vperm.xlu1 %5173, %v1570_v11   ;;  %1778 = vperm.xlu0 %5166, %v1570_v11   ;;  %v5326_v11 = vpop.eup %5325 }
 0xc65   :  { %v6294_v37 = vsub.f32 0.0, %v5326_v11 }
 0xc67   :  { %v1505_v58 = vmul.f32 %v1472_v4, %v6294_v37 }
 0xc68   :  { %5174 = vset.pattern.permute.xlu1 %v7431_v10  ;;  %5169 = vset.pattern.permute.xlu0 %v7441_v2 }
 0xc69   :  { %1792 = vperm.xlu1 %5174, %v6198_v29   ;;  %1643 = vperm.xlu0 %5169, %v6198_v29  }
 0xc6d   :  { %5177 = vset.pattern.permute.xlu1 %v7435_v6  ;;  %5172 = vset.pattern.permute.xlu0 %v7437_v3 }
 0xc6e   :  { %1755 = vperm.xlu0 %5172, %v6198_v29   ;;  %1671 = vperm.xlu1 %5177, %v1571_v17  }
 0xc72   :  { %5175 = vset.pattern.permute.xlu0 %v7433_v12  ;;  %5180 = vset.pattern.permute.xlu1 %v7431_v10 }
 0xc73   :  { %1829 = vperm.xlu0 %5175, %v6198_v29   ;;  %1782 = vperm.xlu1 %5180, %v1571_v17  }
 0xc77   :  { %5176 = vset.pattern.permute.xlu0 %v7441_v2  ;;  %5182 = vset.pattern.permute.xlu1 %v7429_v5 }
 0xc78   :  { %1856 = vperm.xlu1 %5182, %v1571_v17   ;;  %1632 = vperm.xlu0 %5176, %v1571_v17  }
 0xc7c   :  { %5183 = vset.pattern.permute.xlu1 %v7441_v2  ;;  %5178 = vset.pattern.permute.xlu0 %v7439_v9 }
 0xc7d   :  { %1648 = vperm.xlu1 %5183, %v1606_v44   ;;  %1708 = vperm.xlu0 %5178, %v1571_v17  }
 0xc81   :  { %5185 = vset.pattern.permute.xlu1 %v7439_v9  ;;  %5179 = vset.pattern.permute.xlu0 %v7437_v3 }
 0xc82   :  { %1722 = vperm.xlu1 %5185, %v1606_v44   ;;  %1745 = vperm.xlu0 %5179, %v1571_v17  }
 0xc86   :  { %5186 = vset.pattern.permute.xlu1 %v7437_v3  ;;  %5181 = vset.pattern.permute.xlu0 %v7433_v12 }
 0xc87   :  { %1759 = vperm.xlu1 %5186, %v1606_v44   ;;  %1819 = vperm.xlu0 %5181, %v1571_v17  }
 0xc8b   :  { %5188 = vset.pattern.permute.xlu1 %v7431_v10  ;;  %5184 = vset.pattern.permute.xlu0 %v7435_v6 }
 0xc8c   :  { %1796 = vperm.xlu1 %5188, %v1606_v44   ;;  %1685 = vperm.xlu0 %5184, %v1606_v44  }
 0xc90   :  { %5189 = vset.pattern.permute.xlu1 %v7433_v12  ;;  %5187 = vset.pattern.permute.xlu0 %v7427_v14 }
 0xc91   :  { %1833 = vperm.xlu1 %5189, %v1606_v44   ;;  %1893 = vperm.xlu0 %5187, %v1571_v17   ;;  %v1427_v17 = vcombine.high %v1419_v43, %v1419_v43 }
 0xc93   :  { %v1449_v45 = vrot.slane %v1427_v17, %v5802_v54  ;;  %v1428_v17 = vcombine.high %v1426_v49, %v1426_v49 }
 0xc95   :  { %1903 = vperm.xlu0 %5187, %v6198_v29   ;;  %v1468_v32 = vrot.slane %v1449_v45, %v5690_v33  ;;  %v1459_v50 = vcombine.high %v1449_v45, %v1449_v45  ;;  %v1665_v45 = vrot.slane %v6311_v42, %v5693_v34 }
 0xc97   :  { %v1503_v13 = vmul.f32 %v1468_v32, %v6294_v37  ;;  %v1476_v39 = vrot.slane %v1459_v50, %v5690_v33 }
 0xc99   :  { %5190 = vset.pattern.permute.xlu0 %v7429_v5  ;;  %v1521_v1 = vmul.f32 1.442695, %v1503_v13  ;;  %v1507_v48 = vmul.f32 %v1476_v39, %v6294_v37 }
 0xc9a   :  { %1866 = vperm.xlu0 %5190, %v6198_v29   ;;  %v1407_v29 = vmul.f32 1.442695, %v4498_v52 }
 0xc9c   :  { %5327 = vpow2.f32 %v1407_v29 }
 0xc9e   :  { %1870 = vperm.xlu0 %5190, %v1606_v44  }
 0xca2   :  { %5191 = vset.pattern.permute.xlu0 %v7427_v14 }
 0xca3   :  { %1907 = vperm.xlu0 %5191, %v1606_v44   ;;  %v1464_v44 = vrot.slane %v1435_v57, %v5690_v33 }
 0xca5   :  { %v1501_v46 = vmul.f32 %v1464_v44, %v6294_v37 }
 0xca7   :  { %1943 = vrot.lane.b32.xlu0 %v1941_v28, %s5509_s19  ;;  %v1517_v60 = vmul.f32 1.442695, %v1501_v46  ;;  %v1529_v46 = vmul.f32 1.442695, %v1507_v48 }
 0xca9   :  { %5329 = vpow2.f32 %v1517_v60  ;;  %v5328_v28 = vpop.eup %5327 }
 0xcaa   :  { %v6308_v27 = vsub.f32 0.0, %v5328_v28  ;;  %5331 = vpow2.f32 %v1521_v1  ;;  %v1456_v28 = vrot.slane %v1428_v17, %v5802_v54 }
 0xcac   :  { %v1502_v53 = vmul.f32 %v1464_v44, %v6308_v27  ;;  %v1504_v57 = vmul.f32 %v1468_v32, %v6308_v27  ;;  %v1480_v44 = vrot.slane %v1442_v62, %v5690_v33  ;;  %v1506_v7 = vmul.f32 %v1472_v4, %v6308_v27 }
 0xcae   :  { %v1519_v59 = vmul.f32 1.442695, %v1502_v53  ;;  %v1523_v60 = vmul.f32 1.442695, %v1504_v57  ;;  %v1509_v1 = vmul.f32 %v1480_v44, %v6294_v37  ;;  %v1508_v53 = vmul.f32 %v1476_v39, %v6308_v27 }
 0xcb0   :  { %v1533_v4 = vmul.f32 1.442695, %v1509_v1  ;;  %v1531_v48 = vmul.f32 1.442695, %v1508_v53 }
 0xcb5   :  { %2273 = vadd.xlane.f32.xlu1 %v2272_v23  ;;  %v1525_v23 = vmul.f32 1.442695, %v1505_v58  ;;  %v1527_v58 = vmul.f32 1.442695, %v1506_v7 }
 0xcb6   :  { %v5330_v55 = vpop.eup %5329 }
 0xcb7   :  { %v1637_v43 = vmul.f32 0.0, %v5330_v55  ;;  %5333 = vpow2.f32 %v1525_v23  ;;  %v1484_v23 = vrot.slane %v1456_v28, %v5690_v33 }
 0xcb8   :  { %5335 = vpow2.f32 %v1519_v59 }
 0xcb9   :  { %5337 = vpow2.f32 %v1529_v46  ;;  %v1458_v46 = vcombine.high %v1442_v62, %v1442_v62  ;;  %v1512_v7 = vmul.f32 %v1484_v23, %v6308_v27 }
 0xcba   :  { %5339 = vpow2.f32 %v1523_v60 }
 0xcbb   :  { %5341 = vpow2.f32 %v1527_v58 }
 0xcbc   :  { %5343 = vpow2.f32 %v1533_v4 }
 0xcbd   :  { %5345 = vpow2.f32 %v1531_v48 }
 0xccb   :  { %v6299_v36 = vpop.permute.xlu1 %1815  ;;  %v1628_v51 = vpop.permute.xlu0 %1627 }
 0xccc   :  { %v1635_v22 = vmul.f32 %v1628_v51, %v1624_v19  ;;  %v5332_v51 = vpop.eup %5331 }
 0xccd   :  { %v5334_v55 = vpop.eup %5333 }
 0xcce   :  { %v6330_v52 = vadd.f32 %v1637_v43, %v1635_v22  ;;  %v1510_v43 = vmul.f32 %v1480_v44, %v6308_v27  ;;  %v5336_v17 = vpop.eup %5335  ;;  %v1488_v44 = vrot.slane %v1458_v46, %v5690_v33 }
 0xccf   :  { %v1638_v14 = vmul.f32 0.0, %v5336_v17  ;;  %v5338_v62 = vpop.eup %5337 }
 0xcd0   :  { %v6302_v40 = vpop.permute.xlu1 %1852  ;;  %v1668_v18 = vpop.permute.xlu0 %1667  ;;  %v1676_v32 = vmul.f32 %v5332_v51, %v6330_v52  ;;  %v1511_v51 = vmul.f32 %v1484_v23, %v6294_v37  ;;  %v1535_v60 = vmul.f32 1.442695, %v1510_v43  ;;  %v1460_v43 = vcombine.high %v1456_v28, %v1456_v28 }
 0xcd1   :  { %v1674_v13 = vmul.f32 %v1668_v18, %v1665_v45  ;;  %v1702_v18 = vrot.slane %v6311_v42, %v5702_v38  ;;  %v5340_v48 = vpop.eup %5339  ;;  %v1513_v17 = vmul.f32 %v1488_v44, %v6294_v37 }
 0xcd2   :  { %v1537_v53 = vmul.f32 1.442695, %v1511_v51  ;;  %5347 = vpow2.f32 %v1535_v60  ;;  %v1514_v60 = vmul.f32 %v1488_v44, %v6308_v27 }
 0xcd3   :  { %v6346_v49 = vadd.f32 %v1676_v32, %v1674_v13 }
 0xcd4   :  { %5349 = vpow2.f32 %v1537_v53 }
 0xcd5   :  { %v6306_v63 = vpop.permute.xlu1 %1681  ;;  %v1705_v61 = vpop.permute.xlu0 %1704  ;;  %v1713_v39 = vmul.f32 %v5334_v55, %v6346_v49  ;;  %v1539_v55 = vmul.f32 1.442695, %v1512_v7 }
 0xcd6   :  { %v1711_v57 = vmul.f32 %v1705_v61, %v1702_v18  ;;  %v1739_v61 = vrot.slane %v6311_v42, %v5684_v31 }
 0xcd7   :  { %5351 = vpow2.f32 %v1539_v55 }
 0xcd8   :  { %v1715_v13 = vadd.f32 %v1713_v39, %v1711_v57 }
 0xcda   :  { %v6314_v56 = vpop.permute.xlu1 %1718  ;;  %v6316_v15 = vpop.permute.xlu0 %1741  ;;  %v1750_v57 = vmul.f32 %v5338_v62, %v1715_v13 }
 0xcdb   :  { %v1748_v23 = vmul.f32 %v6316_v15, %v1739_v61  ;;  %v1776_v15 = vrot.slane %v6311_v42, %v5909_v47 }
 0xcdd   :  { %v1752_v51 = vadd.f32 %v1750_v57, %v1748_v23  ;;  %v1543_v23 = vmul.f32 1.442695, %v1514_v60 }
 0xcdf   :  { %v6323_v41 = vpop.permute.xlu1 %1889  ;;  %v6325_v35 = vpop.permute.xlu0 %1778 }
 0xce4   :  { %v6332_v11 = vpop.permute.xlu1 %1792  ;;  %v6334_v29 = vpop.permute.xlu0 %1643 }
 0xce9   :  { %v1672_v26 = vpop.permute.xlu1 %1671  ;;  %v6343_v50 = vpop.permute.xlu0 %1755 }
 0xcea   :  { %v1675_v39 = vmul.f32 %v1672_v26, %v1665_v45  ;;  %v1541_v45 = vmul.f32 1.442695, %v1513_v17 }
 0xcec   :  { %5353 = vpow2.f32 %v1541_v45 }
 0xced   :  { %5355 = vpow2.f32 %v1543_v23 }
 0xcee   :  { %v6351_v22 = vpop.permute.xlu1 %1782  ;;  %v6353_v59 = vpop.permute.xlu0 %1829 }
 0xcf3   :  { %v6359_v32 = vpop.permute.xlu1 %1856  ;;  %v1633_v1 = vpop.permute.xlu0 %1632 }
 0xcf4   :  { %v1636_v58 = vmul.f32 %v1633_v1, %v1624_v19  ;;  %v5342_v1 = vpop.eup %5341 }
 0xcf5   :  { %v5344_v62 = vpop.eup %5343 }
 0xcf6   :  { %v1640_v4 = vadd.f32 %v1638_v14, %v1636_v58  ;;  %v1492_v14 = vrot.slane %v1460_v43, %v5690_v33  ;;  %v5346_v12 = vpop.eup %5345  ;;  %v1787_v53 = vmul.f32 %v5344_v62, %v1752_v51 }
 0xcf8   :  { %v1677_v5 = vmul.f32 %v5340_v48, %v1640_v4  ;;  %v1649_v10 = vpop.permute.xlu1 %1648  ;;  %v1709_v19 = vpop.permute.xlu0 %1708  ;;  %v1515_v55 = vmul.f32 %v1492_v14, %v6294_v37 }
 0xcf9   :  { %v1712_v7 = vmul.f32 %v1709_v19, %v1702_v18  ;;  %v1652_v43 = vmul.f32 %v1649_v10, %v1640_v4  ;;  %v1516_v18 = vmul.f32 %v1492_v14, %v6308_v27 }
 0xcfa   :  { %v1679_v46 = vadd.f32 %v1677_v5, %v1675_v39  ;;  %v1785_v5 = vmul.f32 %v6325_v35, %v1776_v15  ;;  %v1651_v39 = vmul.f32 %v6334_v29, %v6330_v52  ;;  %v1545_v6 = vmul.f32 1.442695, %v1515_v55 }
 0xcfb   :  { %v1786_v35 = vmul.f32 %v6351_v22, %v1776_v15  ;;  %v1654_v37 = vsel %vm218_vm5, %v1652_v43, 0.0  ;;  %v1547_v27 = vmul.f32 1.442695, %v1516_v18  ;;  %v1813_v52 = vrot.slane %v6311_v42, %v5917_v21 }
 0xcfc   :  { %v1714_v28 = vmul.f32 %v5342_v1, %v1679_v46  ;;  %v1725_v29 = vmul.f32 %v6314_v56, %v1715_v13  ;;  %v1653_v14 = vsel %vm218_vm5, %v1651_v39, 0.0  ;;  %5357 = vpow2.f32 %v1545_v6 }
 0xcfd   :  { %v1723_v26 = vpop.permute.xlu1 %1722  ;;  %v1746_v58 = vpop.permute.xlu0 %1745  ;;  %v1655_v22 = vadd.f32 %v1654_v37, %v1653_v14  ;;  %v1762_v56 = vmul.f32 %v6343_v50, %v1752_v51  ;;  %5359 = vpow2.f32 %v1547_v27 }
 0xcfe   :  { %v1716_v48 = vadd.f32 %v1714_v28, %v1712_v7  ;;  %v1749_v57 = vmul.f32 %v1746_v58, %v1739_v61  ;;  %v5348_v7 = vpop.eup %5347  ;;  %v1789_v28 = vadd.f32 %v1787_v53, %v1785_v5  ;;  %v1822_v53 = vmul.f32 %v6299_v36, %v1813_v52 }
 0xcff   :  { %v5350_v4 = vpop.eup %5349  ;;  %v1727_v13 = vsel %vm218_vm5, %v1725_v29, 0.0 }
 0xd00   :  { %v1751_v44 = vmul.f32 %v5346_v12, %v1716_v48  ;;  %v1726_v10 = vmul.f32 %v1723_v26, %v1716_v48  ;;  %v1688_v12 = vmul.f32 %v6306_v63, %v6346_v49  ;;  %v5352_v45 = vpop.eup %5351  ;;  %v1824_v58 = vmul.f32 %v5350_v4, %v1789_v28 }
 0xd02   :  { %v1753_v19 = vadd.f32 %v1751_v44, %v1749_v57  ;;  %v1760_v17 = vpop.permute.xlu1 %1759  ;;  %v1820_v1 = vpop.permute.xlu0 %1819  ;;  %v1728_v48 = vsel %vm218_vm5, %v1726_v10, 0.0  ;;  %v1690_v55 = vsel %vm218_vm5, %v1688_v12, 0.0  ;;  %v1826_v44 = vadd.f32 %v1824_v58, %v1822_v53 }
 0xd03   :  { %v1823_v63 = vmul.f32 %v1820_v1, %v1813_v52  ;;  %v1729_v6 = vadd.f32 %v1728_v48, %v1727_v13  ;;  %v1764_v1 = vsel %vm218_vm5, %v1762_v56, 0.0 }
 0xd04   :  { %v1788_v61 = vmul.f32 %v5348_v7, %v1753_v19  ;;  %v1763_v15 = vmul.f32 %v1760_v17, %v1753_v19  ;;  %v1656_v19 = vrot.slane %v1655_v22, 4  ;;  %v1836_v50 = vmul.f32 %v6353_v59, %v1826_v44  ;;  %v5354_v7 = vpop.eup %5353 }
 0xd05   :  { %v1861_v12 = vmul.f32 %v5354_v7, %v1826_v44  ;;  %v1730_v27 = vrot.slane %v1729_v6, 4  ;;  %v1887_v44 = vrot.slane %v6311_v42, %v5952_v25 }
 0xd06   :  { %v1790_v60 = vadd.f32 %v1788_v61, %v1786_v35  ;;  %v1765_v18 = vsel %vm218_vm5, %v1763_v15, 0.0  ;;  %v1850_v61 = vrot.slane %v6311_v42, %v5935_v0  ;;  %v1657_v52 = vadd.f32 %v1656_v19, %v1655_v22 }
 0xd07   :  { %v1797_v62 = vpop.permute.xlu1 %1796  ;;  %v1686_v26 = vpop.permute.xlu0 %1685  ;;  %v1766_v35 = vadd.f32 %v1765_v18, %v1764_v1 }
 0xd08   :  { %v1825_v49 = vmul.f32 %v5352_v45, %v1790_v60  ;;  %v1689_v5 = vmul.f32 %v1686_v26, %v1679_v46  ;;  %v1800_v43 = vmul.f32 %v1797_v62, %v1790_v60  ;;  %v1799_v46 = vmul.f32 %v6332_v11, %v1789_v28  ;;  %v5356_v11 = vpop.eup %5355 }
 0xd09   :  { %v1859_v59 = vmul.f32 %v6302_v40, %v1850_v61  ;;  %v1838_v60 = vsel %vm218_vm5, %v1836_v50, 0.0  ;;  %v1767_v15 = vrot.slane %v1766_v35, 4  ;;  %v1860_v48 = vmul.f32 %v6359_v32, %v1850_v61 }
 0xd0a   :  { %v1827_v23 = vadd.f32 %v1825_v49, %v1823_v63  ;;  %v1691_v57 = vsel %vm218_vm5, %v1689_v5, 0.0  ;;  %v1802_v37 = vsel %vm218_vm5, %v1800_v43, 0.0  ;;  %v1801_v28 = vsel %vm218_vm5, %v1799_v46, 0.0  ;;  %v5358_v5 = vpop.eup %5357 }
 0xd0b   :  { %v1692_v39 = vadd.f32 %v1691_v57, %v1690_v55  ;;  %v1803_v45 = vadd.f32 %v1802_v37, %v1801_v28  ;;  %v1731_v63 = vadd.f32 %v1730_v27, %v1729_v6  ;;  %v1863_v49 = vadd.f32 %v1861_v12, %v1859_v59  ;;  %v5360_v13 = vpop.eup %5359 }
 0xd0c   :  { %v1834_v36 = vpop.permute.xlu1 %1833  ;;  %v1894_v17 = vpop.permute.xlu0 %1893  ;;  %v1862_v58 = vmul.f32 %v5356_v11, %v1827_v23  ;;  %v1658_v53 = vrot.slane %v1657_v52, 2  ;;  %v1768_v43 = vadd.f32 %v1767_v15, %v1766_v35  ;;  %v1896_v32 = vmul.f32 %v6323_v41, %v1887_v44 }
 0xd0d   :  { %v1693_v51 = vrot.slane %v1692_v39, 4  ;;  %v1837_v10 = vmul.f32 %v1834_v36, %v1827_v23  ;;  %v1804_v55 = vrot.slane %v1803_v45, 4  ;;  %v1732_v23 = vrot.slane %v1731_v63, 2 }
 0xd0e   :  { %v1864_v56 = vadd.f32 %v1862_v58, %v1860_v48  ;;  %v1898_v18 = vmul.f32 %v5358_v5, %v1863_v49  ;;  %v1769_v1 = vrot.slane %v1768_v43, 2  ;;  %v1897_v35 = vmul.f32 %v1894_v17, %v1887_v44 }
 0xd0f   :  { %v1694_v4 = vadd.f32 %v1693_v51, %v1692_v39  ;;  %v1839_v29 = vsel %vm218_vm5, %v1837_v10, 0.0  ;;  %v1659_v39 = vadd.f32 %v1658_v53, %v1657_v52  ;;  %v1805_v6 = vadd.f32 %v1804_v55, %v1803_v45 }
 0xd10   :  { %v1904_v14 = vpop.permute.xlu0 %1903  ;;  %v1840_v26 = vadd.f32 %v1839_v29, %v1838_v60  ;;  %v1899_v36 = vmul.f32 %v5360_v13, %v1864_v56  ;;  %v1733_v37 = vadd.f32 %v1732_v23, %v1731_v63  ;;  %v1900_v10 = vadd.f32 %v1898_v18, %v1896_v32 }
 0xd11   :  { %v1695_v62 = vrot.slane %v1694_v4, 2  ;;  %v1660_v61 = vrot.slane %v1659_v39, 1  ;;  %v1806_v27 = vrot.slane %v1805_v6, 2  ;;  %v1770_v41 = vadd.f32 %v1769_v1, %v1768_v43 }
 0xd12   :  { %v1841_v40 = vrot.slane %v1840_v26, 4  ;;  %v1901_v28 = vadd.f32 %v1899_v36, %v1897_v35  ;;  %v1734_v60 = vrot.slane %v1733_v37, 1 }
 0xd13   :  { %v1696_v57 = vadd.f32 %v1695_v62, %v1694_v4  ;;  %v1910_v4 = vmul.f32 %v1904_v14, %v1900_v10  ;;  %v1661_v15 = vadd.f32 %v1660_v61, %v1659_v39  ;;  %v1807_v62 = vadd.f32 %v1806_v27, %v1805_v6  ;;  %v2292_v27 = vld [vmem:[%s7410_s3 + $0x18] sm:$0xff] }
 0xd14   :  { %v1842_v51 = vadd.f32 %v1841_v40, %v1840_v26  ;;  %v1771_v63 = vrot.slane %v1770_v41, 1  ;;  %v1735_v53 = vadd.f32 %v1734_v60, %v1733_v37 }
 0xd15   :  { %v1867_v22 = vpop.permute.xlu0 %1866  ;;  %v1697_v50 = vrot.slane %v1696_v57, 1  ;;  %v1912_v17 = vsel %vm218_vm5, %v1910_v4, 0.0  ;;  %v2291_v4 = vld [vmem:[%s7410_s3 + $0x10] sm:$0xff] }
 0xd16   :  { %v1873_v46 = vmul.f32 %v1867_v22, %v1863_v49  ;;  %v1843_v29 = vrot.slane %v1842_v51, 2 }
 0xd17   :  { %v1698_v52 = vadd.f32 %v1697_v50, %v1696_v57  ;;  %v1772_v57 = vadd.f32 %v1771_v63, %v1770_v41  ;;  %v4499_v50 = vld [vmem:[%s7416_s9 + $0x1] ss:$0 sm:$0xff]  ;;  %v2411_v63 = vld [vmem:[%s7413_s6 + $0x10] sm:$0xff] }
 0xd18   :  { %v1875_v12 = vsel %vm218_vm5, %v1873_v46, 0.0  ;;  %v1844_v14 = vadd.f32 %v1843_v29, %v1842_v51  ;;  %v1933_v37 = vmul.f32 %v4499_v50, %v6184_v16  ;;  %v2290_v16 = vld [vmem:[%s7410_s3 + $0x8] sm:$0xff] }
 0xd19   :  { %v1871_v19 = vpop.permute.xlu0 %1870  ;;  %v1921_v49 = vsel %vm834_vm8, %v1661_v15, %v1698_v52 }
 0xd1a   :  { %v1874_v7 = vmul.f32 %v1871_v19, %v1864_v56  ;;  %v1808_v56 = vrot.slane %v1807_v62, 1  ;;  %v1922_v43 = vsel %vm836_vm9, %v1921_v49, %v1735_v53  ;;  %v1845_v40 = vrot.slane %v1844_v14, 1  ;;  %v2410_v49 = vld [vmem:[%s7413_s6 + $0x8] sm:$0xff] }
 0xd1b   :  { %v1923_v39 = vsel %vm838_vm10, %v1922_v43, %v1772_v57 }
 0xd1c   :  { %v1876_v42 = vsel %vm218_vm5, %v1874_v7, 0.0  ;;  %v1809_v46 = vadd.f32 %v1808_v56, %v1807_v62  ;;  %v1846_v32 = vadd.f32 %v1845_v40, %v1844_v14  ;;  %v2416_v62 = vld [vmem:[%s7413_s6 + $0x38] sm:$0xff]  ;;  %v2409_v14 = vld [vmem:[%s7413_s6] sm:$0xff] }
 0xd1d   :  { %v1877_v11 = vadd.f32 %v1876_v42, %v1875_v12 }
 0xd1e   :  { %v1908_v59 = vpop.permute.xlu0 %1907  ;;  %v1924_v36 = vsel %vm840_vm11, %v1923_v39, %v1809_v46 }
 0xd1f   :  { %v1878_v45 = vrot.slane %v1877_v11, 4  ;;  %v1911_v58 = vmul.f32 %v1908_v59, %v1901_v28  ;;  %v1925_v7 = vsel %vm842_vm12, %v1924_v36, %v1846_v32  ;;  %v4541_v59 = vld [vmem:[%s7446_s22] ss:$0 sm:$0xff] }
 0xd21   :  { %v1879_v26 = vadd.f32 %v1878_v45, %v1877_v11  ;;  %v1913_v48 = vsel %vm218_vm5, %v1911_v58, 0.0  ;;  %v2289_v11 = vld [vmem:[%s7410_s3] sm:$0xff] }
 0xd22   :  { %v1914_v5 = vadd.f32 %v1913_v48, %v1912_v17  ;;  %v1944_v12 = vpop.permute.xlu0 %1943  ;;  %v4542_v45 = vld [vmem:[%s7409_s2] ss:$0 sm:$0xff]  ;;  %v2415_v17 = vld [vmem:[%s7413_s6 + $0x30] sm:$0xff]  ;;  %v2412_v48 = vld [vmem:[%s7413_s6 + $0x18] sm:$0xff] }
 0xd23   :  { %v1880_v55 = vrot.slane %v1879_v26, 2 }
 0xd24   :  { %v1915_v22 = vrot.slane %v1914_v5, 4 }
 0xd25   :  { %v1881_v13 = vadd.f32 %v1880_v55, %v1879_v26  ;;  %v2413_v26 = vld [vmem:[%s7413_s6 + $0x20] sm:$0xff] }
 0xd26   :  { %v1916_v44 = vadd.f32 %v1915_v22, %v1914_v5  ;;  %v2366_v55 = vld [vmem:[%s7411_s4] sm:$0xf] }
 0xd27   :  { %v1882_v23 = vrot.slane %v1881_v13, 1  ;;  %v2370_v56 = vrot.slane %v2366_v55, %v5684_v31 }
 0xd28   :  { %v1917_v18 = vrot.slane %v1916_v44, 2 }
 0xd29   :  { %v1883_v19 = vadd.f32 %v1882_v23, %v1881_v13  ;;  %v2377_v13 = vrot.slane %v2366_v55, %v5690_v33 }
 0xd2a   :  { %v1918_v6 = vadd.f32 %v1917_v18, %v1916_v44  ;;  %v2385_v44 = vrot.slane %v2366_v55, %v5693_v34 }
 0xd2b   :  { %v1926_v35 = vsel %vm844_vm13, %v1925_v7, %v1883_v19  ;;  %v4544_v7 = vld [vmem:[%s7412_s5] ss:$0 sm:$0xff] }
 0xd2c   :  { %v1919_v1 = vrot.slane %v1918_v6, 1 }
 0xd2e   :  { %v1920_v51 = vadd.f32 %v1919_v1, %v1918_v6  ;;  %v2393_v6 = vrot.slane %v2366_v55, %v5702_v38 }
 0xd30   :  { %v1927_v10 = vsel %vm846_vm14, %v1926_v35, %v1920_v51 }
 0xd31   :  { %v1934_v61 = vadd.f32 %v1933_v37, %v1927_v10 }
 0xd33   :  { %v1946_v42 = vmul.f32 %v1944_v12, %v1934_v61 }
 0xd35   :  { %4909 = vmatmul.mubr.msk.f32.vlgmr.msra.gmra.mxu1 %vm218_vm5, %v1946_v42 }
 0xd36   :  { %4947 = vmatpush3.msra.mxu1 %v2292_v27  ;;  %4954 = vmatprep.mubr.msk.f32.mxu1 %vm5508_vm1, %v5507_v8 }
 0xd37   :  { %4948 = vmatprep.subr.mxu1 %v5507_v8 }
 0xd38   :  { %4949 = vmatpush3.msra.mxu1 %v2291_v4 }
 0xd39   :  { %4950 = vmatprep.subr.mxu1 %v5507_v8 }
 0xd3a   :  { %4951 = vmatpush3.msra.mxu1 %v2290_v16 }
 0xd3b   :  { %4952 = vmatprep.subr.mxu1 %v5507_v8 }
 0xd3c   :  { %4953 = vmatpush3.msra.mxu1 %v2289_v11 }
 0xd3d   :  { %4957 = vmatprep.subr.mxu1 %v5507_v8 }
 0xd3e   :  { %v2274_v28 = vpop.xlane.xlu1 %2273 }
 0xd3f   :  { %v2275_v41 = vmul.f32 0.03125, %v2274_v28 }
 0xd41   :  { %v2276_v52 = vadd.f32 1e-05, %v2275_v41 }
 0xd43   :  { %5361 = vrsqrt.f32 %v2276_v52  ;;  %v7447_v52 = vmov 1  }
 0xd50   :  { %v5362_v29 = vpop.eup %5361 }
 0xd51   :  { %v2278_v60 = vmul.f32 %v5362_v29, %v6245_v20  ;;  %v2414_v20 = vld [vmem:[%s7413_s6 + $0x28] sm:$0xff]  ;;  %v7448_v29 = vmov 5  }
 0xd53   :  { %v2283_v58 = vmul.f32 %v4541_v59, %v2278_v60  ;;  %v7449_v59 = vmov 4  }
 0xd55   :  { %v2288_v15 = vadd.f32 %v4542_v45, %v2283_v58  ;;  %v7450_v45 = vmov 6  }
 0xd57   :  { %4955 = vmatmul.mubr.msk.f32.vlgmr.msra.gmra.mxu1 %vm62_vm0, %v2288_v15 }
 0xd58   :  { %4973 = vmatprep.mubr.msk.f32.mxu1 %vm5508_vm1, %v5507_v8  ;;  %4958 = vmatpush3.msra.mxu1 %v2416_v62  ;;  %v7451_v62 = vmov 7  }
 0xd59   :  { %4959 = vmatprep.subr.mxu1 %v5507_v8 }
 0xd5a   :  { %4960 = vmatpush3.msra.mxu1 %v2415_v17 }
 0xd5b   :  { %4961 = vmatprep.subr.mxu1 %v5507_v8 }
 0xd5c   :  { %4962 = vmatpush3.msra.mxu1 %v2414_v20 }
 0xd5d   :  { %4963 = vmatprep.subr.mxu1 %v5507_v8 }
 0xd5e   :  { %4964 = vmatpush3.msra.mxu1 %v2413_v26 }
 0xd5f   :  { %4965 = vmatprep.subr.mxu1 %v5507_v8 }
 0xd60   :  { %4966 = vmatpush3.msra.mxu1 %v2412_v48  ;;  %v4547_v48 = vld [vmem:[%s7414_s7] ss:$0 sm:$0xff] }
 0xd61   :  { %4967 = vmatprep.subr.mxu1 %v5507_v8 }
 0xd62   :  { %4968 = vmatpush3.msra.mxu1 %v2411_v63 }
 0xd63   :  { %4969 = vmatprep.subr.mxu1 %v5507_v8 }
 0xd64   :  { %4970 = vmatpush3.msra.mxu1 %v2410_v49 }
 0xd65   :  { %4971 = vmatprep.subr.mxu1 %v5507_v8 }
 0xd66   :  { %4972 = vmatpush3.msra.mxu1 %v2409_v14 }
 0xd67   :  { %4976 = vmatprep.subr.mxu1 %v5507_v8 }
 0xdf5   :  { %v6480_v5 = vpop.f32.mrf.mxu1 }
 0xdf7   :  { %v4910_v53 = vpop.f32.mrf.mxu1 }
 0xe17   :  { %v6485_v22 = vpop.f32.mrf.mxu1 }
 0xe18   :  { %v2372_v43 = vrot.slane %v6485_v22, 5  ;;  %v2380_v57 = vrot.slane %v6485_v22, 6  ;;  %v2388_v40 = vrot.slane %v6485_v22, 7  ;;  %v2371_v46 = vmul.f32 %v2370_v56, %v6485_v22 }
 0xe19   :  { %v4956_v23 = vpop.f32.mrf.mxu1  ;;  %v4549_v58 = vmul.f32 -1.442695, %v6485_v22 }
 0xe1a   :  { %v2373_v18 = vsel %vm171_vm2, %v2372_v43, 0.0  ;;  %v2381_v39 = vsel %vm180_vm3, %v2380_v57, 0.0  ;;  %v2389_v19 = vsel %vm189_vm4, %v2388_v40, 0.0  ;;  %v2514_v23 = vld [vmem:[%s7415_s8] sm:$0xff] }
 0xe1b   :  { %v2378_v32 = vmul.f32 %v2377_v13, %v2373_v18  ;;  %v2386_v1 = vmul.f32 %v2385_v44, %v2381_v39  ;;  %v2394_v51 = vmul.f32 %v2393_v6, %v2389_v19 }
 0xe1d   :  { %v2379_v36 = vadd.f32 %v2378_v32, %v2371_v46  ;;  %v2516_v46 = vmul.f32 1.442695, %v2514_v23 }
 0xe1f   :  { %v2387_v50 = vadd.f32 %v2386_v1, %v2379_v36  ;;  %v3065_v36 = vld [vmem:[%s7417_s10 + $0x38] sm:$0xff]  ;;  %v3064_v1 = vld [vmem:[%s7417_s10 + $0x30] sm:$0xff] }
 0xe21   :  { %v2395_v37 = vadd.f32 %v2394_v51, %v2387_v50  ;;  %v3063_v50 = vld [vmem:[%s7417_s10 + $0x28] sm:$0xff] }
 0xe23   :  { %v2401_v35 = vadd.f32 %v4544_v7, %v2395_v37  ;;  %v3062_v7 = vld [vmem:[%s7417_s10 + $0x20] sm:$0xff]  ;;  %v3061_v37 = vld [vmem:[%s7417_s10 + $0x18] sm:$0xff] }
 0xe25   :  { %v4545_v10 = vmul.f32 -1.442695, %v2401_v35 }
 0xe27   :  { %5363 = vpow2.f32 %v4545_v10  ;;  %v3060_v10 = vld [vmem:[%s7417_s10 + $0x10] sm:$0xff] }
 0xe34   :  { %v5364_v61 = vpop.eup %5363 }
 0xe35   :  { %v2405_v12 = vadd.f32 1.0, %v5364_v61  ;;  %v3059_v61 = vld [vmem:[%s7417_s10 + $0x8] sm:$0xff] }
 0xe37   :  { %5365 = vrcp.f32 %v2405_v12  ;;  %v2515_v12 = vld [vmem:[%s7415_s8 + $0x8] sm:$0xff] }
 0xe38   :  { %5367 = vpow2.f32 %v4549_v58 }
 0xe44   :  { %v5366_v42 = vpop.eup %5365 }
 0xe45   :  { %v6504_v27 = vmul.f32 %v5366_v42, %v2401_v35  ;;  %v5368_v17 = vpop.eup %5367 }
 0xe46   :  { %v3049_v20 = vadd.f32 1.0, %v5368_v17 }
 0xe47   :  { %4974 = vmatmul.mubr.msk.f32.vlgmr.msra.gmra.mxu1 %vm218_vm5, %v6504_v27 }
 0xe48   :  { %4992 = vmatprep.mubr.msk.f32.mxu1 %vm5508_vm1, %v5507_v8  ;;  %5369 = vrcp.f32 %v3049_v20  ;;  %4977 = vmatpush3.msra.mxu1 %v3065_v36 }
 0xe49   :  { %4978 = vmatprep.subr.mxu1 %v5507_v8 }
 0xe4a   :  { %4979 = vmatpush3.msra.mxu1 %v3064_v1 }
 0xe4b   :  { %4980 = vmatprep.subr.mxu1 %v5507_v8 }
 0xe4c   :  { %4981 = vmatpush3.msra.mxu1 %v3063_v50 }
 0xe4d   :  { %4982 = vmatprep.subr.mxu1 %v5507_v8 }
 0xe4e   :  { %4983 = vmatpush3.msra.mxu1 %v3062_v7 }
 0xe4f   :  { %4984 = vmatprep.subr.mxu1 %v5507_v8 }
 0xe50   :  { %4985 = vmatpush3.msra.mxu1 %v3061_v37 }
 0xe51   :  { %4986 = vmatprep.subr.mxu1 %v5507_v8 }
 0xe52   :  { %4987 = vmatpush3.msra.mxu1 %v3060_v10 }
 0xe53   :  { %4988 = vmatprep.subr.mxu1 %v5507_v8 }
 0xe54   :  { %4989 = vmatpush3.msra.mxu1 %v3059_v61 }
 0xe55   :  { %v5370_v14 = vpop.eup %5369  ;;  %4990 = vmatprep.subr.mxu1 %v5507_v8 }
 0xe56   :  { %v3052_v55 = vmul.f32 %v5370_v14, %v6485_v22 }
 0xf07   :  { %v2486_v4 = vpop.f32.mrf.mxu1 }
 0xf08   :  { %2662 = vrot.lane.b32.xlu0 %v2486_v4, %s5509_s19  ;;  %v2495_v63 = vadd.f32 %v4547_v48, %v2486_v4 }
 0xf09   :  { %v4975_v16 = vpop.f32.mrf.mxu1 }
 0xf0a   :  { %v2499_v49 = vand.u32 2147483647, %v2495_v63  ;;  %v2496_v6 = vmax.f32 %v2495_v63, 0.0  ;;  %vm2497_vm15 = vcmp.ne.f32.partialorder %v2495_v63, %v2495_v63  ;;  %v3058_v16 = vld [vmem:[%s7417_s10] sm:$0xff] }
 0xf0b   :  { %4991 = vmatpush3.msra.mxu1 %v3058_v16 }
 0xf0c   :  { %2697 = vrot.lane.b32.xlu0 %v2486_v4, %s5510_s1  ;;  %v2500_v53 = vsub.f32 0.0, %v2499_v49  ;;  %5030 = vmatprep.subr.mxu1 %v5507_v8 }
 0xf0e   :  { %v2501_v56 = vmul.f32 1.442695, %v2500_v53 }
 0xf10   :  { %5371 = vpow2.f32 %v2501_v56 }
 0xf1d   :  { %v5372_v13 = vpop.eup %5371 }
 0xf1e   :  { %v2503_v22 = vadd.f32 1.0, %v5372_v13  ;;  %v2506_v43 = vmul.f32 -0.5, %v5372_v13  ;;  %v2509_v44 = vand.u32 2147483647, %v5372_v13 }
 0xf20   :  { %5373 = vlog2.f32 %v2503_v22  ;;  %v2507_v40 = vadd.f32 1.0, %v2506_v43  ;;  %vm2510_vm7 = vcmp.lt.f32.partialorder %v2509_v44, 0.0004427343 }
 0xf21   :  { %5375 = vpow2.f32 %v2516_v46 }
 0xf22   :  { %v2508_v39 = vmul.f32 %v5372_v13, %v2507_v40 }
 0xf2d   :  { %v5374_v57 = vpop.eup %5373 }
 0xf2e   :  { %v2505_v18 = vmul.f32 0.6931472, %v5374_v57  ;;  %v5376_v4 = vpop.eup %5375 }
 0xf30   :  { %v2511_v32 = vsel %vm2510_vm7, %v2508_v39, %v2505_v18 }
 0xf31   :  { %v2512_v19 = vadd.f32 %v2511_v32, %v2496_v6 }
 0xf33   :  { %v2513_v51 = vsel %vm2497_vm15, %v2495_v63, %v2512_v19 }
 0xf34   :  { %v2530_v35 = vrot.slane %v2513_v51, %v5802_v54  ;;  %v2523_v57 = vcombine.high %v2513_v51, %v2513_v51  ;;  %v6624_v23 = vmul.f32 %v2513_v51, %v6504_v27 }
 0xf36   :  { %v2546_v42 = vrot.slane %v2530_v35, %v5802_v54  ;;  %v2537_v6 = vrot.slane %v2523_v57, %v5802_v54  ;;  %v2735_v36 = vrot.slane %v6624_v23, %v5690_v33 }
 0xf7a   :  { %v2663_v11 = vpop.permute.xlu0 %2662 }
 0xf7b   :  { %2665 = vxpose.xlu1.b32.start.end [1/1] (short) (narrow) %v2663_v11, 16  ;;  %v2518_v11 = vmul.f32 1.442695, %v2515_v12 }
 0xf7d   :  { %5377 = vpow2.f32 %v2518_v11  ;;  %v2539_v11 = vcombine.high %v2537_v6, %v2537_v6 }
 0xf7e   :  { %v2698_v28 = vpop.permute.xlu0 %2697 }
 0xf7f   :  { %2700 = vxpose.xlu0.b32.start.end [1/1] (short) (narrow) %v2698_v28, 16  ;;  %v2538_v28 = vcombine.high %v2530_v35, %v2530_v35  ;;  %v2553_v35 = vrot.slane %v2537_v6, %v5802_v54 }
 0xf81   :  { %v2560_v17 = vrot.slane %v2538_v28, %v5802_v54  ;;  %v2591_v28 = vrot.slane %v2553_v35, %v5690_v33 }
 0xf83   :  { %v2579_v63 = vrot.slane %v2560_v17, %v5690_v33  ;;  %v2570_v44 = vcombine.high %v2560_v17, %v2560_v17 }
 0xf85   :  { %v2587_v19 = vrot.slane %v2570_v44, %v5690_v33 }
 0xf99   :  { %5194 = vset.pattern.permute.xlu1 %v7439_v9 }
 0xfa8   :  { %5192 = vset.pattern.permute.xlu0 %v7441_v2 }
 0xff7   :  { %v2681_v41 = vpop.trf.xlu1 }
 0xff8   :  { %2815 = vperm.xlu1 %5194, %v2681_v41   ;;  %2738 = vperm.xlu0 %5192, %v2681_v41  }
 0xffb   :  { %v6518_v60 = vpop.trf.xlu0  ;;  %v2682_v15 = vpop.trf.xlu1 }
 0xffc   :  { %5195 = vset.pattern.permute.xlu1 %v7437_v3  ;;  %5193 = vset.pattern.permute.xlu0 %v7447_v52 }
 0xffd   :  { %2852 = vperm.xlu1 %5195, %v2681_v41   ;;  %2778 = vperm.xlu0 %5193, %v2681_v41  }
 0xfff   :  { %v2717_v26 = vpop.trf.xlu0 }
0x1001   :  { %5197 = vset.pattern.permute.xlu1 %v7448_v29  ;;  %5196 = vset.pattern.permute.xlu0 %v7449_v59 }
0x1002   :  { %2926 = vperm.xlu1 %5197, %v2681_v41   ;;  %2889 = vperm.xlu0 %5196, %v2681_v41  }
0x1006   :  { %5198 = vset.pattern.permute.xlu1 %v7450_v45  ;;  %5199 = vset.pattern.permute.xlu0 %v7441_v2 }
0x1007   :  { %2963 = vperm.xlu1 %5198, %v2681_v41   ;;  %2754 = vperm.xlu0 %5199, %v6518_v60  }
0x100b   :  { %5200 = vset.pattern.permute.xlu1 %v7447_v52  ;;  %5202 = vset.pattern.permute.xlu0 %v7437_v3 }
0x100c   :  { %2792 = vperm.xlu1 %5200, %v6518_v60   ;;  %2866 = vperm.xlu0 %5202, %v6518_v60  }
0x1010   :  { %5201 = vset.pattern.permute.xlu1 %v7439_v9  ;;  %5205 = vset.pattern.permute.xlu0 %v7448_v29 }
0x1011   :  { %2829 = vperm.xlu1 %5201, %v6518_v60   ;;  %2940 = vperm.xlu0 %5205, %v6518_v60  }
0x1015   :  { %5203 = vset.pattern.permute.xlu1 %v7451_v62  ;;  %5208 = vset.pattern.permute.xlu0 %v7447_v52 }
0x1016   :  { %3000 = vperm.xlu1 %5203, %v2681_v41   ;;  %2782 = vperm.xlu0 %5208, %v2682_v15   ;;  %v6598_v41 = vsub.f32 0.0, %v5376_v4 }
0x1018   :  { %v2618_v61 = vmul.f32 %v2587_v19, %v6598_v41 }
0x101a   :  { %5204 = vset.pattern.permute.xlu1 %v7449_v59  ;;  %5209 = vset.pattern.permute.xlu0 %v7439_v9  ;;  %v2640_v17 = vmul.f32 1.442695, %v2618_v61 }
0x101b   :  { %2903 = vperm.xlu1 %5204, %v6518_v60   ;;  %2819 = vperm.xlu0 %5209, %v2682_v15  }
0x101f   :  { %5206 = vset.pattern.permute.xlu1 %v7450_v45  ;;  %5212 = vset.pattern.permute.xlu0 %v7448_v29 }
0x1020   :  { %2977 = vperm.xlu1 %5206, %v6518_v60   ;;  %2930 = vperm.xlu0 %5212, %v2682_v15  }
0x1024   :  { %5207 = vset.pattern.permute.xlu1 %v7441_v2  ;;  %5215 = vset.pattern.permute.xlu0 %v7447_v52 }
0x1025   :  { %2743 = vperm.xlu1 %5207, %v2682_v15   ;;  %2796 = vperm.xlu0 %5215, %v2717_v26  }
0x1029   :  { %5210 = vset.pattern.permute.xlu1 %v7437_v3  ;;  %5218 = vset.pattern.permute.xlu0 %v7451_v62 }
0x102a   :  { %2856 = vperm.xlu1 %5210, %v2682_v15   ;;  %3004 = vperm.xlu0 %5218, %v2682_v15  }
0x102e   :  { %5211 = vset.pattern.permute.xlu1 %v7449_v59  ;;  %5221 = vset.pattern.permute.xlu0 %v7450_v45 }
0x102f   :  { %2893 = vperm.xlu1 %5211, %v2682_v15   ;;  %2981 = vperm.xlu0 %5221, %v2717_v26  }
0x1033   :  { %5213 = vset.pattern.permute.xlu1 %v7450_v45  ;;  %3054 = vrot.lane.b32.xlu0 %v3052_v55, %s5509_s19  ;;  %v2568_v55 = vcombine.high %v2546_v42, %v2546_v42 }
0x1034   :  { %2967 = vperm.xlu1 %5213, %v2682_v15   ;;  %v6606_v15 = vadd.f32 %v6480_v5, %v6092_v24  ;;  %v2614_v24 = vmul.f32 %v2579_v63, %v6598_v41  ;;  %v5378_v5 = vpop.eup %5377 }
0x1035   :  { %v2583_v56 = vrot.slane %v2568_v55, %v5690_v33  ;;  %v6621_v40 = vsub.f32 0.0, %v5378_v5  ;;  %v2620_v5 = vmul.f32 %v2591_v28, %v6598_v41 }
0x1036   :  { %v2031_v48 = vsel %vm62_vm0, %v6606_v15, 0.0  ;;  %v2632_v22 = vmul.f32 1.442695, %v2614_v24  ;;  %v6655_v24 = vrot.slane %v2539_v11, %v5802_v54 }
0x1037   :  { %v2616_v18 = vmul.f32 %v2583_v56, %v6598_v41  ;;  %v2619_v44 = vmul.f32 %v2587_v19, %v6621_v40 }
0x1038   :  { %5214 = vset.pattern.permute.xlu1 %v7441_v2 }
0x1039   :  { %2759 = vperm.xlu1 %5214, %v2717_v26   ;;  %v2636_v1 = vmul.f32 1.442695, %v2616_v18 }
0x103d   :  { %5216 = vset.pattern.permute.xlu1 %v7439_v9 }
0x103e   :  { %2833 = vperm.xlu1 %5216, %v2717_v26  }
0x1042   :  { %5217 = vset.pattern.permute.xlu1 %v7437_v3 }
0x1043   :  { %2870 = vperm.xlu1 %5217, %v2717_v26  }
0x1047   :  { %5219 = vset.pattern.permute.xlu1 %v7449_v59 }
0x1048   :  { %2907 = vperm.xlu1 %5219, %v2717_v26  }
0x104c   :  { %5220 = vset.pattern.permute.xlu1 %v7448_v29 }
0x104d   :  { %2944 = vperm.xlu1 %5220, %v2717_v26  }
0x1051   :  { %5222 = vset.pattern.permute.xlu1 %v7451_v62 }
0x1052   :  { %3014 = vperm.xlu1 %5222, %v6518_v60   ;;  %v2575_v60 = vrot.slane %v2546_v42, %v5690_v33  ;;  %v2615_v42 = vmul.f32 %v2579_v63, %v6621_v40 }
0x1054   :  { %v2612_v20 = vmul.f32 %v2575_v60, %v6598_v41  ;;  %v2613_v32 = vmul.f32 %v2575_v60, %v6621_v40  ;;  %v2776_v60 = vrot.slane %v6624_v23, %v5693_v34 }
0x1056   :  { %3018 = vperm.xlu1 %5222, %v2717_v26   ;;  %v2628_v49 = vmul.f32 1.442695, %v2612_v20  ;;  %v2630_v37 = vmul.f32 1.442695, %v2613_v32  ;;  %v2595_v32 = vrot.slane %v6655_v24, %v5690_v33 }
0x1058   :  { %5379 = vpow2.f32 %v2628_v49  ;;  %v2634_v49 = vmul.f32 1.442695, %v2615_v42  ;;  %v2622_v11 = vmul.f32 %v2595_v32, %v6598_v41 }
0x1059   :  { %5381 = vpow2.f32 %v2632_v22 }
0x105a   :  { %5383 = vpow2.f32 %v2636_v1  ;;  %v2569_v1 = vcombine.high %v2553_v35, %v2553_v35  ;;  %v2623_v35 = vmul.f32 %v2595_v32, %v6621_v40 }
0x105b   :  { %5385 = vpow2.f32 %v2630_v37  ;;  %v2621_v37 = vmul.f32 %v2591_v28, %v6621_v40 }
0x105c   :  { %5387 = vpow2.f32 %v2640_v17  ;;  %v2599_v17 = vrot.slane %v2569_v1, %v5690_v33  ;;  %v2850_v1 = vrot.slane %v6624_v23, %v5684_v31 }
0x105d   :  { %5389 = vpow2.f32 %v2634_v49 }
0x1065   :  { %v5380_v50 = vpop.eup %5379 }
0x1066   :  { %v2748_v10 = vmul.f32 0.0, %v5380_v50  ;;  %v5382_v20 = vpop.eup %5381 }
0x1067   :  { %v5384_v6 = vpop.eup %5383 }
0x1068   :  { %v5386_v61 = vpop.eup %5385 }
0x1073   :  { %v6601_v58 = vpop.permute.xlu1 %2815  ;;  %v2739_v14 = vpop.permute.xlu0 %2738 }
0x1074   :  { %v2746_v51 = vmul.f32 %v2739_v14, %v2735_v36 }
0x1076   :  { %v6643_v4 = vadd.f32 %v2748_v10, %v2746_v51  ;;  %v2642_v51 = vmul.f32 1.442695, %v2619_v44  ;;  %v2813_v10 = vrot.slane %v6624_v23, %v5702_v38 }
0x1078   :  { %v6610_v26 = vpop.permute.xlu1 %2852  ;;  %v2779_v13 = vpop.permute.xlu0 %2778  ;;  %v2787_v55 = vmul.f32 %v5382_v20, %v6643_v4  ;;  %v2822_v42 = vmul.f32 %v6601_v58, %v2813_v10  ;;  %v2646_v20 = vmul.f32 1.442695, %v2621_v37  ;;  %v2650_v58 = vmul.f32 1.442695, %v2623_v35 }
0x1079   :  { %v2785_v14 = vmul.f32 %v2779_v13, %v2776_v60 }
0x107a   :  { %2032 = vadd.xlane.f32.xlu1 %v2031_v48  ;;  %v2617_v48 = vmul.f32 %v2583_v56, %v6621_v40  ;;  %v2644_v56 = vmul.f32 1.442695, %v2620_v5  ;;  %v2648_v5 = vmul.f32 1.442695, %v2622_v11 }
0x107b   :  { %v6661_v18 = vadd.f32 %v2787_v55, %v2785_v14  ;;  %v2749_v55 = vmul.f32 0.0, %v5386_v61  ;;  %v2624_v61 = vmul.f32 %v2599_v17, %v6598_v41 }
0x107c   :  { %v2638_v57 = vmul.f32 1.442695, %v2617_v48 }
0x107d   :  { %v6615_v53 = vpop.permute.xlu1 %2926  ;;  %v6629_v46 = vpop.permute.xlu0 %2889  ;;  %v2824_v19 = vmul.f32 %v5384_v6, %v6661_v18  ;;  %v2652_v3 = vmul.f32 1.442695, %v2624_v61 }
0x107e   :  { %5391 = vpow2.f32 %v2638_v57  ;;  %v5388_v57 = vpop.eup %5387 }
0x107f   :  { %5393 = vpow2.f32 %v2644_v56  ;;  %v6677_v48 = vadd.f32 %v2824_v19, %v2822_v42  ;;  %v2625_v56 = vmul.f32 %v2599_v17, %v6621_v40  ;;  %v5390_v6 = vpop.eup %5389  ;;  %v2859_v42 = vmul.f32 %v6610_v26, %v2850_v1 }
0x1080   :  { %5395 = vpow2.f32 %v2642_v51 }
0x1081   :  { %5397 = vpow2.f32 %v2646_v20  ;;  %v2861_v32 = vmul.f32 %v5388_v57, %v6677_v48  ;;  %v2654_v35 = vmul.f32 1.442695, %v2625_v56 }
0x1082   :  { %v6619_v43 = vpop.permute.xlu1 %2963  ;;  %v6640_v12 = vpop.permute.xlu0 %2754  ;;  %5399 = vpow2.f32 %v2648_v5  ;;  %v2887_v5 = vrot.slane %v6624_v23, %v5909_v47 }
0x1083   :  { %5401 = vpow2.f32 %v2650_v58 }
0x1084   :  { %5403 = vpow2.f32 %v2654_v35  ;;  %v2896_v56 = vmul.f32 %v6629_v46, %v2887_v5  ;;  %v2924_v35 = vrot.slane %v6624_v23, %v5917_v21 }
0x1085   :  { %5405 = vpow2.f32 %v2652_v3 }
0x1087   :  { %v6627_v39 = vpop.permute.xlu1 %2792  ;;  %v6652_v63 = vpop.permute.xlu0 %2866 }
0x108b   :  { %v5392_v20 = vpop.eup %5391 }
0x108c   :  { %v6636_v7 = vpop.permute.xlu1 %2829  ;;  %v6663_v13 = vpop.permute.xlu0 %2940 }
0x108d   :  { %v5394_v2 = vpop.eup %5393 }
0x108e   :  { %v5396_v26 = vpop.eup %5395 }
0x1091   :  { %v6645_v16 = vpop.permute.xlu1 %3000  ;;  %v2783_v28 = vpop.permute.xlu0 %2782 }
0x1092   :  { %v2786_v51 = vmul.f32 %v2783_v28, %v2776_v60  ;;  %v2571_v60 = vcombine.high %v6655_v24, %v6655_v24 }
0x1096   :  { %v6658_v22 = vpop.permute.xlu1 %2903 }
0x109b   :  { %v6667_v50 = vpop.permute.xlu1 %2977 }
0x10a0   :  { %v2744_v49 = vpop.permute.xlu1 %2743 }
0x10a1   :  { %v2747_v14 = vmul.f32 %v2744_v49, %v2735_v36  ;;  %v2820_v36 = vpop.permute.xlu0 %2819  ;;  %v2863_v49 = vadd.f32 %v2861_v32, %v2859_v42 }
0x10a3   :  { %v2751_v44 = vadd.f32 %v2749_v55, %v2747_v14  ;;  %v2823_v14 = vmul.f32 %v2820_v36, %v2813_v10  ;;  %v2898_v17 = vmul.f32 %v5394_v2, %v2863_v49 }
0x10a5   :  { %v2788_v37 = vmul.f32 %v5390_v6, %v2751_v44  ;;  %v2857_v19 = vpop.permute.xlu1 %2856  ;;  %v2931_v10 = vpop.permute.xlu0 %2930  ;;  %v2900_v42 = vadd.f32 %v2898_v17, %v2896_v56 }
0x10a6   :  { %v2860_v57 = vmul.f32 %v2857_v19, %v2850_v1 }
0x10a7   :  { %v2790_v11 = vadd.f32 %v2788_v37, %v2786_v51  ;;  %v2603_v51 = vrot.slane %v2571_v60, %v5690_v33  ;;  %v5398_v37 = vpop.eup %5397  ;;  %v2933_v60 = vmul.f32 %v6615_v53, %v2924_v35 }
0x10a8   :  { %v5400_v61 = vpop.eup %5399 }
0x10a9   :  { %v2825_v55 = vmul.f32 %v5392_v20, %v2790_v11  ;;  %v2797_v20 = vpop.permute.xlu0 %2796  ;;  %v2626_v1 = vmul.f32 %v2603_v51, %v6598_v41  ;;  %v5402_v19 = vpop.eup %5401  ;;  %v2935_v46 = vmul.f32 %v5400_v61, %v2900_v42 }
0x10aa   :  { %v2894_v9 = vpop.permute.xlu1 %2893 }
0x10ab   :  { %v2827_v28 = vadd.f32 %v2825_v55, %v2823_v14  ;;  %v2897_v24 = vmul.f32 %v2894_v9, %v2887_v5  ;;  %v2934_v14 = vmul.f32 %v2931_v10, %v2924_v35  ;;  %v2656_v9 = vmul.f32 1.442695, %v2626_v1  ;;  %v5404_v5 = vpop.eup %5403 }
0x10ac   :  { %v5406_v61 = vpop.eup %5405  ;;  %v2836_v35 = vmul.f32 %v6636_v7, %v6677_v48 }
0x10ad   :  { %v2862_v58 = vmul.f32 %v5396_v26, %v2827_v28  ;;  %v2627_v26 = vmul.f32 %v2603_v51, %v6621_v40  ;;  %v2762_v40 = vmul.f32 %v6640_v12, %v6643_v4  ;;  %v2800_v51 = vmul.f32 %v2797_v20, %v2790_v11 }
0x10ae   :  { %5407 = vpow2.f32 %v2656_v9  ;;  %v2838_v7 = vsel %vm218_vm5, %v2836_v35, 0.0 }
0x10af   :  { %v2864_v6 = vadd.f32 %v2862_v58, %v2860_v57  ;;  %v2968_v32 = vpop.permute.xlu1 %2967  ;;  %v2961_v57 = vrot.slane %v6624_v23, %v5935_v0  ;;  %v2937_v58 = vadd.f32 %v2935_v46, %v2933_v60  ;;  %v2658_v10 = vmul.f32 1.442695, %v2627_v26 }
0x10b0   :  { %v2764_v4 = vsel %vm218_vm5, %v2762_v40, 0.0  ;;  %v2802_v11 = vsel %vm218_vm5, %v2800_v51, 0.0  ;;  %v2910_v60 = vmul.f32 %v6658_v22, %v2900_v42 }
0x10b1   :  { %v2899_v36 = vmul.f32 %v5398_v37, %v2864_v6  ;;  %v6700_v37 = vpop.permute.xlu0 %3004  ;;  %v2971_v53 = vmul.f32 %v2968_v32, %v2961_v57  ;;  %v2972_v1 = vmul.f32 %v5406_v61, %v2937_v58  ;;  %v2970_v12 = vmul.f32 %v6619_v43, %v2961_v57 }
0x10b2   :  { %5409 = vpow2.f32 %v2658_v10  ;;  %v2947_v51 = vmul.f32 %v6663_v13, %v2937_v58 }
0x10b3   :  { %v2901_v2 = vadd.f32 %v2899_v36, %v2897_v24  ;;  %v2974_v20 = vadd.f32 %v2972_v1, %v2970_v12 }
0x10b4   :  { %v2760_v3 = vpop.permute.xlu1 %2759  ;;  %v2949_v58 = vsel %vm218_vm5, %v2947_v51, 0.0 }
0x10b5   :  { %v2936_v55 = vmul.f32 %v5402_v19, %v2901_v2  ;;  %v2763_v56 = vmul.f32 %v2760_v3, %v2751_v44  ;;  %v2799_v44 = vmul.f32 %v6627_v39, %v6661_v18  ;;  %v2873_v3 = vmul.f32 %v6652_v63, %v2863_v49  ;;  %v2982_v48 = vpop.permute.xlu0 %2981 }
0x10b6   :  { %v2984_v9 = vmul.f32 %v6667_v50, %v2974_v20 }
0x10b7   :  { %v6696_v17 = vadd.f32 %v2936_v55, %v2934_v14  ;;  %v2765_v46 = vsel %vm218_vm5, %v2763_v56, 0.0  ;;  %v2801_v32 = vsel %vm218_vm5, %v2799_v44, 0.0  ;;  %v2875_v49 = vsel %vm218_vm5, %v2873_v3, 0.0 }
0x10b8   :  { %v2766_v39 = vadd.f32 %v2765_v46, %v2764_v4  ;;  %v2803_v26 = vadd.f32 %v2802_v11, %v2801_v32  ;;  %v2998_v44 = vrot.slane %v6624_v23, %v5952_v25 }
0x10b9   :  { %v2973_v41 = vmul.f32 %v5404_v5, %v6696_v17  ;;  %v2834_v24 = vpop.permute.xlu1 %2833 }
0x10ba   :  { %v2837_v36 = vmul.f32 %v2834_v24, %v2827_v28  ;;  %v2767_v57 = vrot.slane %v2766_v39, 4  ;;  %v2804_v10 = vrot.slane %v2803_v26, 4  ;;  %v3007_v12 = vmul.f32 %v6645_v16, %v2998_v44 }
0x10bb   :  { %v2975_v19 = vadd.f32 %v2973_v41, %v2971_v53  ;;  %v2912_v53 = vsel %vm218_vm5, %v2910_v60, 0.0  ;;  %v5408_v35 = vpop.eup %5407 }
0x10bc   :  { %v2839_v14 = vsel %vm218_vm5, %v2837_v36, 0.0  ;;  %v2986_v36 = vsel %vm218_vm5, %v2984_v9, 0.0  ;;  %v2768_v42 = vadd.f32 %v2767_v57, %v2766_v39  ;;  %v3009_v4 = vmul.f32 %v5408_v35, %v2974_v20 }
0x10bd   :  { %v2985_v55 = vmul.f32 %v2982_v48, %v2975_v19  ;;  %v2840_v63 = vadd.f32 %v2839_v14, %v2838_v7 }
0x10be   :  { %v2871_v28 = vpop.permute.xlu1 %2870  ;;  %v2769_v7 = vrot.slane %v2768_v42, 2  ;;  %v3011_v60 = vadd.f32 %v3009_v4, %v3007_v12 }
0x10bf   :  { %v2874_v18 = vmul.f32 %v2871_v28, %v2864_v6  ;;  %v2987_v41 = vsel %vm218_vm5, %v2985_v55, 0.0  ;;  %v2841_v6 = vrot.slane %v2840_v63, 4  ;;  %v5410_v11 = vpop.eup %5409 }
0x10c0   :  { %v2988_v22 = vadd.f32 %v2987_v41, %v2986_v36  ;;  %v3010_v32 = vmul.f32 %v5410_v11, %v2975_v19  ;;  %v2770_v16 = vadd.f32 %v2769_v7, %v2768_v42 }
0x10c1   :  { %v2876_v43 = vsel %vm218_vm5, %v2874_v18, 0.0  ;;  %v2842_v1 = vadd.f32 %v2841_v6, %v2840_v63 }
0x10c2   :  { %v2877_v5 = vadd.f32 %v2876_v43, %v2875_v49  ;;  %v2989_v28 = vrot.slane %v2988_v22, 4 }
0x10c3   :  { %v2908_v56 = vpop.permute.xlu1 %2907  ;;  %v2843_v18 = vrot.slane %v2842_v1, 2 }
0x10c4   :  { %v2911_v24 = vmul.f32 %v2908_v56, %v2901_v2  ;;  %v2878_v40 = vrot.slane %v2877_v5, 4  ;;  %v2805_v2 = vadd.f32 %v2804_v10, %v2803_v26  ;;  %v3008_v26 = vmul.f32 %v6700_v37, %v2998_v44 }
0x10c5   :  { %v2990_v9 = vadd.f32 %v2989_v28, %v2988_v22  ;;  %v2844_v20 = vadd.f32 %v2843_v18, %v2842_v1 }
0x10c6   :  { %v2913_v61 = vsel %vm218_vm5, %v2911_v24, 0.0  ;;  %v2879_v3 = vadd.f32 %v2878_v40, %v2877_v5  ;;  %v2806_v55 = vrot.slane %v2805_v2, 2  ;;  %v3012_v56 = vadd.f32 %v3010_v32, %v3008_v26 }
0x10c7   :  { %v2914_v50 = vadd.f32 %v2913_v61, %v2912_v53  ;;  %v2991_v51 = vrot.slane %v2990_v9, 2  ;;  %v2771_v53 = vrot.slane %v2770_v16, 1  ;;  %v2845_v36 = vrot.slane %v2844_v20, 1 }
0x10c8   :  { %v2945_v46 = vpop.permute.xlu1 %2944  ;;  %v2880_v63 = vrot.slane %v2879_v3, 2  ;;  %v2807_v41 = vadd.f32 %v2806_v55, %v2805_v2 }
0x10c9   :  { %v2915_v14 = vrot.slane %v2914_v50, 4  ;;  %v2948_v13 = vmul.f32 %v2945_v46, %v6696_v17  ;;  %v2772_v1 = vadd.f32 %v2771_v53, %v2770_v16  ;;  %v4514_v53 = vld [vmem:[%s7420_s13 + $0x50] sm:$0xff] }
0x10ca   :  { %v2881_v6 = vadd.f32 %v2880_v63, %v2879_v3  ;;  %v2808_v22 = vrot.slane %v2807_v41, 1  ;;  %v2992_v3 = vadd.f32 %v2991_v51, %v2990_v9  ;;  %v4515_v51 = vld [vmem:[%s7420_s13 + $0x58] sm:$0xff] }
0x10cb   :  { %v2916_v48 = vadd.f32 %v2915_v14, %v2914_v50  ;;  %v2950_v39 = vsel %vm218_vm5, %v2948_v13, 0.0  ;;  %v2846_v14 = vadd.f32 %v2845_v36, %v2844_v20  ;;  %v3055_v20 = vpop.permute.xlu0 %3054  ;;  %v4513_v36 = vld [vmem:[%s7420_s13 + $0x48] sm:$0xff] }
0x10cc   :  { %v2951_v23 = vadd.f32 %v2950_v39, %v2949_v58  ;;  %v2882_v42 = vrot.slane %v2881_v6, 1  ;;  %v2809_v13 = vadd.f32 %v2808_v22, %v2807_v41 }
0x10cd   :  { %v3015_v49 = vpop.permute.xlu1 %3014  ;;  %v2917_v17 = vrot.slane %v2916_v48, 2 }
0x10ce   :  { %v2952_v43 = vrot.slane %v2951_v23, 4  ;;  %v3021_v57 = vmul.f32 %v3015_v49, %v3011_v60  ;;  %v2883_v58 = vadd.f32 %v2882_v42, %v2881_v6  ;;  %v3032_v11 = vsel %vm834_vm8, %v2772_v1, %v2809_v13  ;;  %v4548_v49 = vld [vmem:[%s7416_s9] ss:$0 sm:$0xff] }
0x10cf   :  { %v2918_v10 = vadd.f32 %v2917_v17, %v2916_v48  ;;  %v2993_v48 = vrot.slane %v2992_v3, 1  ;;  %v3033_v39 = vsel %vm836_vm9, %v3032_v11, %v2846_v14  ;;  %v3044_v60 = vmul.f32 %v4548_v49, %v6504_v27  ;;  %v4519_v27 = vld [vmem:[%s7420_s13 + $0x78] sm:$0xff]  ;;  %v4536_v11 = vld [vmem:[%s7421_s14 + $0xf0] sm:$0xff]  ;;  %v4526_v49 = vld [vmem:[%s7421_s14 + $0xa0] sm:$0xff] }
0x10d0   :  { %v2953_v5 = vadd.f32 %v2952_v43, %v2951_v23  ;;  %v3023_v37 = vsel %vm218_vm5, %v3021_v57, 0.0  ;;  %v3034_v18 = vsel %vm838_vm10, %v3033_v39, %v2883_v58  ;;  %2090 = vmatprep.subr.mxu0 %v4519_v27  ;;  %v4532_v39 = vld [vmem:[%s7421_s14 + $0xd0] sm:$0xff] }
0x10d1   :  { %v3019_v24 = vpop.permute.xlu1 %3018  ;;  %v2919_v44 = vrot.slane %v2918_v10, 1  ;;  %v2994_v26 = vadd.f32 %v2993_v48, %v2992_v3  ;;  %v4533_v48 = vld [vmem:[%s7421_s14 + $0xd8] sm:$0xff] }
0x10d2   :  { %v2954_v40 = vrot.slane %v2953_v5, 2  ;;  %v3022_v19 = vmul.f32 %v3019_v24, %v3012_v56 }
0x10d3   :  { %v2920_v4 = vadd.f32 %v2919_v44, %v2918_v10  ;;  %v4518_v10 = vld [vmem:[%s7420_s13 + $0x70] sm:$0xff] }
0x10d4   :  { %v2955_v61 = vadd.f32 %v2954_v40, %v2953_v5  ;;  %v3024_v50 = vsel %vm218_vm5, %v3022_v19, 0.0  ;;  %v4517_v40 = vld [vmem:[%s7420_s13 + $0x68] sm:$0xff]  ;;  %v4516_v19 = vld [vmem:[%s7420_s13 + $0x60] sm:$0xff]  ;;  %2091 = vmatpush1.msra.mxu0 %v4518_v10 }
0x10d5   :  { %v3025_v35 = vadd.f32 %v3024_v50, %v3023_v37  ;;  %v3035_v32 = vsel %vm840_vm11, %v3034_v18, %v2920_v4  ;;  %2092 = vmatprep.subr.mxu0 %v4517_v40  ;;  %v4537_v4 = vld [vmem:[%s7421_s14 + $0xf8] sm:$0xff]  ;;  %v4531_v18 = vld [vmem:[%s7421_s14 + $0xc8] sm:$0xff] }
0x10d6   :  { %v2956_v46 = vrot.slane %v2955_v61, 1  ;;  %2093 = vmatpush1.msra.mxu0 %v4516_v19 }
0x10d7   :  { %v3026_v2 = vrot.slane %v3025_v35, 4  ;;  %2094 = vmatprep.subr.mxu0 %v4515_v51 }
0x10d8   :  { %v2957_v28 = vadd.f32 %v2956_v46, %v2955_v61  ;;  %v4512_v61 = vld [vmem:[%s7420_s13 + $0x40] sm:$0xff]  ;;  %2095 = vmatpush1.msra.mxu0 %v4514_v53  ;;  %v3170_v53 = vld [vmem:[%s7420_s13 + $0x30] sm:$0xff] }
0x10d9   :  { %v3027_v12 = vadd.f32 %v3026_v2, %v3025_v35  ;;  %2096 = vmatprep.subr.mxu0 %v4513_v36  ;;  %v4510_v35 = vld [vmem:[%s7418_s11 + $0x1] ss:$0 sm:$0xff]  ;;  %v5484_v2 = vld [vmem:[%s7445_s26 + $0x8] sm:$0xff] }
0x10da   :  { %v3036_v55 = vsel %vm842_vm12, %v3035_v32, %v2957_v28  ;;  %2097 = vmatpush1.msra.mxu0 %v4512_v61  ;;  %v4511_v46 = vld [vmem:[%s7419_s12 + $0x1] ss:$0 sm:$0xff]  ;;  %v4535_v28 = vld [vmem:[%s7421_s14 + $0xe8] sm:$0xff]  ;;  %v4529_v32 = vld [vmem:[%s7421_s14 + $0xb8] sm:$0xff] }
0x10db   :  { %v3028_v7 = vrot.slane %v3027_v12, 2  ;;  %v3037_v43 = vsel %vm844_vm13, %v3036_v55, %v2994_v26  ;;  %4911 = vmatprep.subr.mxu0 %v5507_v8  ;;  %v4528_v55 = vld [vmem:[%s7421_s14 + $0xb0] sm:$0xff]  ;;  %v4525_v26 = vld [vmem:[%s7421_s14 + $0x98] sm:$0xff]  ;;  %v3169_v36 = vld [vmem:[%s7420_s13 + $0x28] sm:$0xff] }
0x10dc   :  { %v3168_v61 = vld [vmem:[%s7420_s13 + $0x20] sm:$0xff] }
0x10dd   :  { %v3029_v23 = vadd.f32 %v3028_v7, %v3027_v12  ;;  %v4534_v7 = vld [vmem:[%s7421_s14 + $0xe0] sm:$0xff] }
0x10df   :  { %v3030_v63 = vrot.slane %v3029_v23, 1 }
0x10e1   :  { %v3031_v17 = vadd.f32 %v3030_v63, %v3029_v23  ;;  %v4530_v23 = vld [vmem:[%s7421_s14 + $0xc0] sm:$0xff]  ;;  %v4527_v63 = vld [vmem:[%s7421_s14 + $0xa8] sm:$0xff] }
0x10e3   :  { %v3038_v9 = vsel %vm846_vm14, %v3037_v43, %v3031_v17  ;;  %v4524_v17 = vld [vmem:[%s7421_s14 + $0x90] sm:$0xff]  ;;  %v4523_v43 = vld [vmem:[%s7421_s14 + $0x88] sm:$0xff] }
0x10e4   :  { %v3045_v16 = vadd.f32 %v3044_v60, %v3038_v9  ;;  %v4522_v60 = vld [vmem:[%s7421_s14 + $0x80] sm:$0xff] }
0x10e6   :  { %v3057_v5 = vmul.f32 %v3055_v20, %v3045_v16 }
0x10e8   :  { %4993 = vmatmul.mubr.msk.f32.vlgmr.msra.gmra.mxu1 %vm218_vm5, %v3057_v5 }
0x10e9   :  { %5038 = vmatprep.mubr.msk.f32.mxu1 %vm5508_vm1, %v5507_v8 }
0x1103   :  { %v2033_v57 = vpop.xlane.xlu1 %2032 }
0x1104   :  { %v2034_v56 = vmul.f32 0.03125, %v2033_v57 }
0x1106   :  { %v2035_v41 = vsub.f32 %v6606_v15, %v2034_v56  ;;  %v3171_v56 = vld [vmem:[%s7420_s13 + $0x38] sm:$0xff] }
0x1108   :  { %v2036_v6 = vmul.f32 %v2035_v41, %v2035_v41 }
0x110a   :  { %v2037_v24 = vsel %vm62_vm0, %v2036_v6, 0.0 }
0x110b   :  { %2038 = vadd.xlane.f32.xlu0 %v2037_v24 }
0x1194   :  { %v2039_v37 = vpop.xlane.xlu0 %2038 }
0x1195   :  { %v2040_v50 = vmul.f32 0.03125, %v2039_v37  ;;  %v3167_v37 = vld [vmem:[%s7420_s13 + $0x18] sm:$0xff] }
0x1197   :  { %v2041_v22 = vadd.f32 1e-05, %v2040_v50  ;;  %v3166_v50 = vld [vmem:[%s7420_s13 + $0x10] sm:$0xff] }
0x1199   :  { %5411 = vrsqrt.f32 %v2041_v22  ;;  %v3165_v22 = vld [vmem:[%s7420_s13 + $0x8] sm:$0xff] }
0x11a6   :  { %v5412_v42 = vpop.eup %5411 }
0x11a7   :  { %v2043_v44 = vmul.f32 %v5412_v42, %v2035_v41  ;;  %v3164_v42 = vld [vmem:[%s7420_s13] sm:$0xff] }
0x11a8   :  { %v3135_v1 = vpop.f32.mrf.mxu1 }
0x11a9   :  { %v6785_v3 = vadd.f32 %v5484_v2, %v3135_v1  ;;  %v2048_v14 = vmul.f32 %v4510_v35, %v2043_v44  ;;  %v4551_v2 = vld [vmem:[%s7418_s11] ss:$0 sm:$0xff] }
0x11aa   :  { %v4994_v13 = vpop.f32.mrf.mxu1 }
0x11ab   :  { %v3141_v58 = vsel %vm62_vm0, %v6785_v3, 0.0  ;;  %v2053_v12 = vadd.f32 %v4511_v46, %v2048_v14  ;;  %v4552_v13 = vld [vmem:[%s7419_s12] ss:$0 sm:$0xff] }
0x11ac   :  { %3142 = vadd.xlane.f32.xlu0 %v3141_v58 }
0x11ad   :  { %4520 = vmatmul.mubr.msk.f32.vlgmr.msra.gmra.mxu0 %vm62_vm0, %v2053_v12 }
0x11ae   :  { %4943 = vmatprep.mubr.msk.f32.mxu0 %vm5508_vm1, %v5507_v8  ;;  %4912 = vmatpush3.msra.mxu0 %v4537_v4  ;;  %v3269_v4 = vld [vmem:[%s7421_s14 + $0x78] sm:$0xff] }
0x11af   :  { %4913 = vmatprep.subr.mxu0 %v5507_v8 }
0x11b0   :  { %4914 = vmatpush3.msra.mxu0 %v4536_v11  ;;  %v3268_v11 = vld [vmem:[%s7421_s14 + $0x70] sm:$0xff] }
0x11b1   :  { %4915 = vmatprep.subr.mxu0 %v5507_v8 }
0x11b2   :  { %4916 = vmatpush3.msra.mxu0 %v4535_v28  ;;  %v3267_v28 = vld [vmem:[%s7421_s14 + $0x68] sm:$0xff] }
0x11b3   :  { %4917 = vmatprep.subr.mxu0 %v5507_v8 }
0x11b4   :  { %4918 = vmatpush3.msra.mxu0 %v4534_v7  ;;  %v3266_v7 = vld [vmem:[%s7421_s14 + $0x60] sm:$0xff] }
0x11b5   :  { %4919 = vmatprep.subr.mxu0 %v5507_v8 }
0x11b6   :  { %4920 = vmatpush3.msra.mxu0 %v4533_v48  ;;  %v3265_v48 = vld [vmem:[%s7421_s14 + $0x58] sm:$0xff] }
0x11b7   :  { %4921 = vmatprep.subr.mxu0 %v5507_v8 }
0x11b8   :  { %4922 = vmatpush3.msra.mxu0 %v4532_v39  ;;  %v3264_v39 = vld [vmem:[%s7421_s14 + $0x50] sm:$0xff] }
0x11b9   :  { %4923 = vmatprep.subr.mxu0 %v5507_v8 }
0x11ba   :  { %4924 = vmatpush3.msra.mxu0 %v4531_v18  ;;  %v3263_v18 = vld [vmem:[%s7421_s14 + $0x48] sm:$0xff] }
0x11bb   :  { %4925 = vmatprep.subr.mxu0 %v5507_v8 }
0x11bc   :  { %4926 = vmatpush3.msra.mxu0 %v4530_v23  ;;  %v3262_v23 = vld [vmem:[%s7421_s14 + $0x40] sm:$0xff] }
0x11bd   :  { %4927 = vmatprep.subr.mxu0 %v5507_v8 }
0x11be   :  { %4928 = vmatpush3.msra.mxu0 %v4529_v32  ;;  %v3261_v32 = vld [vmem:[%s7421_s14 + $0x38] sm:$0xff] }
0x11bf   :  { %4929 = vmatprep.subr.mxu0 %v5507_v8 }
0x11c0   :  { %4930 = vmatpush3.msra.mxu0 %v4528_v55  ;;  %v3260_v55 = vld [vmem:[%s7421_s14 + $0x30] sm:$0xff] }
0x11c1   :  { %4931 = vmatprep.subr.mxu0 %v5507_v8 }
0x11c2   :  { %4932 = vmatpush3.msra.mxu0 %v4527_v63  ;;  %v3259_v63 = vld [vmem:[%s7421_s14 + $0x28] sm:$0xff] }
0x11c3   :  { %4933 = vmatprep.subr.mxu0 %v5507_v8 }
0x11c4   :  { %4934 = vmatpush3.msra.mxu0 %v4526_v49  ;;  %v3258_v49 = vld [vmem:[%s7421_s14 + $0x20] sm:$0xff] }
0x11c5   :  { %4935 = vmatprep.subr.mxu0 %v5507_v8 }
0x11c6   :  { %4936 = vmatpush3.msra.mxu0 %v4525_v26  ;;  %v3257_v26 = vld [vmem:[%s7421_s14 + $0x18] sm:$0xff] }
0x11c7   :  { %4937 = vmatprep.subr.mxu0 %v5507_v8 }
0x11c8   :  { %4938 = vmatpush3.msra.mxu0 %v4524_v17  ;;  %v3256_v17 = vld [vmem:[%s7421_s14 + $0x10] sm:$0xff] }
0x11c9   :  { %4939 = vmatprep.subr.mxu0 %v5507_v8 }
0x11ca   :  { %4940 = vmatpush3.msra.mxu0 %v4523_v43  ;;  %v3255_v43 = vld [vmem:[%s7421_s14 + $0x8] sm:$0xff] }
0x11cb   :  { %4941 = vmatprep.subr.mxu0 %v5507_v8 }
0x11cc   :  { %4942 = vmatpush3.msra.mxu0 %v4522_v60  ;;  %v3254_v60 = vld [vmem:[%s7421_s14] sm:$0xff] }
0x11cd   :  { %3199 = vmatprep.subr.mxu0 %v3171_v56 }
0x1235   :  { %v3143_v9 = vpop.xlane.xlu0 %3142 }
0x1236   :  { %v3144_v16 = vmul.f32 0.03125, %v3143_v9 }
0x1238   :  { %v3145_v20 = vsub.f32 %v6785_v3, %v3144_v16 }
0x123a   :  { %v3146_v5 = vmul.f32 %v3145_v20, %v3145_v20 }
0x123c   :  { %v3147_v57 = vsel %vm62_vm0, %v3146_v5, 0.0 }
0x123d   :  { %3148 = vadd.xlane.f32.xlu1 %v3147_v57 }
0x126d   :  { %v2132_v41 = vpop.f32.mrf.mxu0 }
0x126f   :  { %v2134_v6 = vpop.f32.mrf.mxu0 }
0x1270   :  { %v4521_v24 = vmul.f32 -1.442695, %v2134_v6 }
0x1272   :  { %5413 = vpow2.f32 %v4521_v24 }
0x127f   :  { %v5414_v27 = vpop.eup %5413 }
0x1280   :  { %v2140_v10 = vadd.f32 1.0, %v5414_v27 }
0x1282   :  { %5415 = vrcp.f32 %v2140_v10 }
0x128f   :  { %v5416_v40 = vpop.eup %5415 }
0x1290   :  { %v2143_v19 = vmul.f32 %v5416_v40, %v2134_v6 }
0x1292   :  { %v2144_v51 = vmul.f32 %v2143_v19, %v2132_v41 }
0x1294   :  { %4944 = vmatmul.mubr.f32.vlgmr.msra.gmra.mxu0 %v2144_v51 }
0x1295   :  { %3200 = vmatpush1.msra.mxu0 %v3170_v53  ;;  %3239 = vmatprep.mubr.f32.mxu0 %v5507_v8 }
0x1296   :  { %3201 = vmatprep.subr.mxu0 %v3169_v36 }
0x1297   :  { %3202 = vmatpush1.msra.mxu0 %v3168_v61 }
0x1298   :  { %3203 = vmatprep.subr.mxu0 %v3167_v37 }
0x1299   :  { %3204 = vmatpush1.msra.mxu0 %v3166_v50 }
0x129a   :  { %3205 = vmatprep.subr.mxu0 %v3165_v22  ;;  %v4560_v22 = vld [vmem:[%s7410_s3 + $0x38] sm:$0xff] }
0x129b   :  { %3206 = vmatpush1.msra.mxu0 %v3164_v42  ;;  %5031 = vmatpush3.msra.mxu1 %v4560_v22  ;;  %v4558_v42 = vld [vmem:[%s7410_s3 + $0x28] sm:$0xff] }
0x129c   :  { %4995 = vmatprep.subr.mxu0 %v5507_v8  ;;  %5032 = vmatprep.subr.mxu1 %v5507_v8 }
0x12c6   :  { %v3149_v35 = vpop.xlane.xlu1 %3148 }
0x12c7   :  { %v3150_v44 = vmul.f32 0.03125, %v3149_v35  ;;  %v4557_v35 = vld [vmem:[%s7410_s3 + $0x20] sm:$0xff] }
0x12c9   :  { %v3151_v1 = vadd.f32 1e-05, %v3150_v44 }
0x12cb   :  { %5417 = vrsqrt.f32 %v3151_v1 }
0x12d8   :  { %v5418_v46 = vpop.eup %5417 }
0x12d9   :  { %v3153_v14 = vmul.f32 %v5418_v46, %v3145_v20 }
0x12db   :  { %v3158_v58 = vmul.f32 %v4551_v2, %v3153_v14  ;;  %v4555_v14 = vld [vmem:[%s7446_s22 + $0x1] ss:$0 sm:$0xff] }
0x12dd   :  { %v3163_v12 = vadd.f32 %v4552_v13, %v3158_v58  ;;  %v4556_v58 = vld [vmem:[%s7409_s2 + $0x1] ss:$0 sm:$0xff] }
0x12df   :  { %4553 = vmatmul.mubr.msk.f32.vlgmr.msra.gmra.mxu0 %vm62_vm0, %v3163_v12 }
0x12e0   :  { %5027 = vmatprep.mubr.msk.f32.mxu0 %vm5508_vm1, %v5507_v8  ;;  %4996 = vmatpush3.msra.mxu0 %v3269_v4 }
0x12e1   :  { %4997 = vmatprep.subr.mxu0 %v5507_v8 }
0x12e2   :  { %4998 = vmatpush3.msra.mxu0 %v3268_v11  ;;  %v4572_v11 = vld [vmem:[%s7413_s6 + $0x78] sm:$0xff] }
0x12e3   :  { %4999 = vmatprep.subr.mxu0 %v5507_v8 }
0x12e4   :  { %5000 = vmatpush3.msra.mxu0 %v3267_v28  ;;  %v4571_v28 = vld [vmem:[%s7413_s6 + $0x70] sm:$0xff] }
0x12e5   :  { %5001 = vmatprep.subr.mxu0 %v5507_v8 }
0x12e6   :  { %5002 = vmatpush3.msra.mxu0 %v3266_v7  ;;  %v4570_v7 = vld [vmem:[%s7413_s6 + $0x68] sm:$0xff] }
0x12e7   :  { %5003 = vmatprep.subr.mxu0 %v5507_v8 }
0x12e8   :  { %5004 = vmatpush3.msra.mxu0 %v3265_v48  ;;  %v4569_v48 = vld [vmem:[%s7413_s6 + $0x60] sm:$0xff] }
0x12e9   :  { %5005 = vmatprep.subr.mxu0 %v5507_v8 }
0x12ea   :  { %5006 = vmatpush3.msra.mxu0 %v3264_v39  ;;  %v4568_v39 = vld [vmem:[%s7413_s6 + $0x58] sm:$0xff] }
0x12eb   :  { %5007 = vmatprep.subr.mxu0 %v5507_v8 }
0x12ec   :  { %5008 = vmatpush3.msra.mxu0 %v3263_v18  ;;  %v4567_v18 = vld [vmem:[%s7413_s6 + $0x50] sm:$0xff] }
0x12ed   :  { %5009 = vmatprep.subr.mxu0 %v5507_v8 }
0x12ee   :  { %5010 = vmatpush3.msra.mxu0 %v3262_v23  ;;  %v4566_v23 = vld [vmem:[%s7413_s6 + $0x48] sm:$0xff] }
0x12ef   :  { %5011 = vmatprep.subr.mxu0 %v5507_v8 }
0x12f0   :  { %5012 = vmatpush3.msra.mxu0 %v3261_v32  ;;  %v4565_v32 = vld [vmem:[%s7413_s6 + $0x40] sm:$0xff] }
0x12f1   :  { %5013 = vmatprep.subr.mxu0 %v5507_v8 }
0x12f2   :  { %5014 = vmatpush3.msra.mxu0 %v3260_v55  ;;  %v4562_v55 = vld [vmem:[%s7411_s4 + $0x4] sm:$0xf] }
0x12f3   :  { %5015 = vmatprep.subr.mxu0 %v5507_v8 }
0x12f4   :  { %5016 = vmatpush3.msra.mxu0 %v3259_v63 }
0x12f5   :  { %5017 = vmatprep.subr.mxu0 %v5507_v8 }
0x12f6   :  { %5018 = vmatpush3.msra.mxu0 %v3258_v49  ;;  %v3446_v49 = vrot.slane %v4562_v55, %v5684_v31 }
0x12f7   :  { %5019 = vmatprep.subr.mxu0 %v5507_v8 }
0x12f8   :  { %5020 = vmatpush3.msra.mxu0 %v3257_v26  ;;  %v3453_v26 = vrot.slane %v4562_v55, %v5690_v33 }
0x12f9   :  { %5021 = vmatprep.subr.mxu0 %v5507_v8 }
0x12fa   :  { %5022 = vmatpush3.msra.mxu0 %v3256_v17 }
0x12fb   :  { %5023 = vmatprep.subr.mxu0 %v5507_v8 }
0x12fc   :  { %5024 = vmatpush3.msra.mxu0 %v3255_v43 }
0x12fd   :  { %5025 = vmatprep.subr.mxu0 %v5507_v8 }
0x12fe   :  { %5026 = vmatpush3.msra.mxu0 %v3254_v60 }
0x1354   :  { %v6955_v9 = vpop.f32.mrf.mxu0 }
0x1356   :  { %v4945_v16 = vpop.f32.mrf.mxu0 }
0x1357   :  { %v3461_v16 = vrot.slane %v4562_v55, %v5693_v34 }
0x139f   :  { %v3241_v20 = vpop.f32.mrf.mxu0 }
0x13a1   :  { %v3243_v5 = vpop.f32.mrf.mxu0 }
0x13a2   :  { %v4554_v57 = vmul.f32 -1.442695, %v3243_v5 }
0x13a4   :  { %5419 = vpow2.f32 %v4554_v57 }
0x13b1   :  { %v5420_v56 = vpop.eup %5419 }
0x13b2   :  { %v3249_v41 = vadd.f32 1.0, %v5420_v56 }
0x13b4   :  { %5421 = vrcp.f32 %v3249_v41 }
0x13c1   :  { %v5422_v6 = vpop.eup %5421 }
0x13c2   :  { %v3252_v24 = vmul.f32 %v5422_v6, %v3243_v5  ;;  %v3469_v6 = vrot.slane %v4562_v55, %v5702_v38 }
0x13c4   :  { %v3253_v27 = vmul.f32 %v3252_v24, %v3241_v20 }
0x13c6   :  { %5028 = vmatmul.mubr.f32.vlgmr.msra.gmra.mxu0 %v3253_v27 }
0x13c7   :  { %4315 = vmatprep.mubr.f32.mxu0 %v5507_v8 }
0x1486   :  { %v3336_v10 = vpop.f32.mrf.mxu0 }
0x1487   :  { %v6959_v40 = vadd.f32 %v3336_v10, %v6785_v3  ;;  %v4559_v3 = vld [vmem:[%s7410_s3 + $0x30] sm:$0xff] }
0x1488   :  { %v5029_v19 = vpop.f32.mrf.mxu0  ;;  %5033 = vmatpush3.msra.mxu1 %v4559_v3 }
0x1489   :  { %v3342_v51 = vsel %vm62_vm0, %v6959_v40, 0.0  ;;  %5034 = vmatprep.subr.mxu1 %v5507_v8 }
0x148a   :  { %3343 = vadd.xlane.f32.xlu0 %v3342_v51  ;;  %5035 = vmatpush3.msra.mxu1 %v4558_v42 }
0x148b   :  { %5036 = vmatprep.subr.mxu1 %v5507_v8 }
0x148c   :  { %5037 = vmatpush3.msra.mxu1 %v4557_v35 }
0x148d   :  { %5041 = vmatprep.subr.mxu1 %v5507_v8 }
0x1513   :  { %v3344_v53 = vpop.xlane.xlu0 %3343 }
0x1514   :  { %v3345_v36 = vmul.f32 0.03125, %v3344_v53  ;;  %v4563_v53 = vld [vmem:[%s7412_s5 + $0x1] ss:$0 sm:$0xff] }
0x1516   :  { %v3346_v61 = vsub.f32 %v6959_v40, %v3345_v36 }
0x1518   :  { %v3347_v37 = vmul.f32 %v3346_v61, %v3346_v61 }
0x151a   :  { %v3348_v50 = vsel %vm62_vm0, %v3347_v37, 0.0 }
0x151b   :  { %3349 = vadd.xlane.f32.xlu1 %v3348_v50 }
0x15a4   :  { %v3350_v44 = vpop.xlane.xlu1 %3349 }
0x15a5   :  { %v3351_v1 = vmul.f32 0.03125, %v3350_v44 }
0x15a7   :  { %v3352_v46 = vadd.f32 1e-05, %v3351_v1 }
0x15a9   :  { %5423 = vrsqrt.f32 %v3352_v46  ;;  %v7452_v46 = vmov 0  }
0x15b6   :  { %v5424_v2 = vpop.eup %5423 }
0x15b7   :  { %v3354_v13 = vmul.f32 %v5424_v2, %v3346_v61 }
0x15b9   :  { %v3359_v12 = vmul.f32 %v4555_v14, %v3354_v13  ;;  %v7453_v14 = vmov 2   ;;  %v7454_v13 = vmov 3  }
0x15bb   :  { %v3364_v4 = vadd.f32 %v4556_v58, %v3359_v12 }
0x15bd   :  { %5039 = vmatmul.mubr.msk.f32.vlgmr.msra.gmra.mxu1 %vm62_vm0, %v3364_v4 }
0x15be   :  { %5057 = vmatprep.mubr.msk.f32.mxu1 %vm5508_vm1, %v5507_v8  ;;  %5042 = vmatpush3.msra.mxu1 %v4572_v11  ;;  %v4574_v11 = vld [vmem:[%s7414_s7 + $0x1] ss:$0 sm:$0xff] }
0x15bf   :  { %5043 = vmatprep.subr.mxu1 %v5507_v8 }
0x15c0   :  { %5044 = vmatpush3.msra.mxu1 %v4571_v28 }
0x15c1   :  { %5045 = vmatprep.subr.mxu1 %v5507_v8 }
0x15c2   :  { %5046 = vmatpush3.msra.mxu1 %v4570_v7 }
0x15c3   :  { %5047 = vmatprep.subr.mxu1 %v5507_v8 }
0x15c4   :  { %5048 = vmatpush3.msra.mxu1 %v4569_v48 }
0x15c5   :  { %5049 = vmatprep.subr.mxu1 %v5507_v8 }
0x15c6   :  { %5050 = vmatpush3.msra.mxu1 %v4568_v39 }
0x15c7   :  { %5051 = vmatprep.subr.mxu1 %v5507_v8 }
0x15c8   :  { %5052 = vmatpush3.msra.mxu1 %v4567_v18 }
0x15c9   :  { %5053 = vmatprep.subr.mxu1 %v5507_v8 }
0x15ca   :  { %5054 = vmatpush3.msra.mxu1 %v4566_v23 }
0x15cb   :  { %5055 = vmatprep.subr.mxu1 %v5507_v8 }
0x15cc   :  { %5056 = vmatpush3.msra.mxu1 %v4565_v32 }
0x15cd   :  { %5060 = vmatprep.subr.mxu1 %v5507_v8 }
0x167d   :  { %v7025_v63 = vpop.f32.mrf.mxu1 }
0x167e   :  { %v3448_v17 = vrot.slane %v7025_v63, 5  ;;  %v3456_v43 = vrot.slane %v7025_v63, 6  ;;  %v3464_v60 = vrot.slane %v7025_v63, 7  ;;  %v3447_v56 = vmul.f32 %v3446_v49, %v7025_v63 }
0x167f   :  { %v5040_v20 = vpop.f32.mrf.mxu1  ;;  %v4578_v7 = vmul.f32 -1.442695, %v7025_v63 }
0x1680   :  { %v3449_v5 = vsel %vm171_vm2, %v3448_v17, 0.0  ;;  %v3457_v57 = vsel %vm180_vm3, %v3456_v43, 0.0  ;;  %v3465_v24 = vsel %vm189_vm4, %v3464_v60, 0.0 }
0x1681   :  { %v3454_v41 = vmul.f32 %v3453_v26, %v3449_v5  ;;  %v3462_v10 = vmul.f32 %v3461_v16, %v3457_v57  ;;  %v3470_v51 = vmul.f32 %v3469_v6, %v3465_v24  ;;  %v4584_v5 = vld [vmem:[%s7417_s10 + $0x68] sm:$0xff]  ;;  %v4582_v24 = vld [vmem:[%s7417_s10 + $0x58] sm:$0xff] }
0x1683   :  { %v3455_v27 = vadd.f32 %v3454_v41, %v3447_v56  ;;  %v4583_v41 = vld [vmem:[%s7417_s10 + $0x60] sm:$0xff] }
0x1685   :  { %v3463_v19 = vadd.f32 %v3462_v10, %v3455_v27  ;;  %v4581_v27 = vld [vmem:[%s7417_s10 + $0x50] sm:$0xff]  ;;  %v4576_v10 = vld [vmem:[%s7415_s8 + $0x18] sm:$0xff] }
0x1687   :  { %v3471_v36 = vadd.f32 %v3470_v51, %v3463_v19 }
0x1689   :  { %v3477_v61 = vadd.f32 %v4563_v53, %v3471_v36  ;;  %v4580_v53 = vld [vmem:[%s7417_s10 + $0x48] sm:$0xff]  ;;  %v3594_v36 = vmul.f32 1.442695, %v4576_v10 }
0x168b   :  { %v4564_v37 = vmul.f32 -1.442695, %v3477_v61 }
0x168d   :  { %5425 = vpow2.f32 %v4564_v37 }
0x169a   :  { %v5426_v50 = vpop.eup %5425 }
0x169b   :  { %v3481_v22 = vadd.f32 1.0, %v5426_v50 }
0x169d   :  { %5427 = vrcp.f32 %v3481_v22 }
0x169e   :  { %5429 = vpow2.f32 %v4578_v7 }
0x16aa   :  { %v5428_v3 = vpop.eup %5427 }
0x16ab   :  { %v7044_v42 = vmul.f32 %v5428_v3, %v3477_v61  ;;  %v5430_v23 = vpop.eup %5429  ;;  %v4579_v61 = vld [vmem:[%s7417_s10 + $0x40] sm:$0xff] }
0x16ac   :  { %v4125_v32 = vadd.f32 1.0, %v5430_v23 }
0x16ad   :  { %5058 = vmatmul.mubr.msk.f32.vlgmr.msra.gmra.mxu1 %vm218_vm5, %v7044_v42 }
0x16ae   :  { %5076 = vmatprep.mubr.msk.f32.mxu1 %vm5508_vm1, %v5507_v8 }
0x176d   :  { %v3562_v30 = vpop.f32.mrf.mxu1 }
0x176e   :  { %3773 = vrot.lane.b32.xlu1 %v3562_v30, %s5510_s1  ;;  %3738 = vrot.lane.b32.xlu0 %v3562_v30, %s5509_s19  ;;  %v7079_v28 = vadd.f32 %v4574_v11, %v3562_v30 }
0x176f   :  { %v5059_v35 = vpop.f32.mrf.mxu1 }
0x1770   :  { %v3575_v48 = vand.u32 2147483647, %v7079_v28  ;;  %v3572_v56 = vmax.f32 %v7079_v28, 0.0  ;;  %vm3573_vm3 = vcmp.ne.f32.partialorder %v7079_v28, %v7079_v28 }
0x1772   :  { %v3576_v39 = vsub.f32 0.0, %v3575_v48 }
0x1774   :  { %v3577_v18 = vmul.f32 1.442695, %v3576_v39 }
0x1776   :  { %5431 = vpow2.f32 %v3577_v18 }
0x1777   :  { %5433 = vrcp.f32 %v4125_v32 }
0x17e0   :  { %v3774_v44 = vpop.permute.xlu1 %3773  ;;  %v3739_v1 = vpop.permute.xlu0 %3738 }
0x17e1   :  { %3776 = vxpose.xlu0.b32.start.end [1/1] (short) (narrow) %v3774_v44, 16  ;;  %3741 = vxpose.xlu1.b32.start.end [1/1] (short) (narrow) %v3739_v1, 16 }
0x17ff   :  { %5224 = vset.pattern.permute.xlu1 %v7447_v52 }
0x180a   :  { %5223 = vset.pattern.permute.xlu0 %v7452_v46 }
0x185d   :  { %v3757_v2 = vpop.trf.xlu1  ;;  %v3792_v58 = vpop.trf.xlu0 }
0x185e   :  { %3854 = vperm.xlu1 %5224, %v3757_v2   ;;  %3814 = vperm.xlu0 %5223, %v3757_v2  }
0x1861   :  { %v3758_v12 = vpop.trf.xlu1  ;;  %v3793_v4 = vpop.trf.xlu0 }
0x1862   :  { %5225 = vset.pattern.permute.xlu1 %v7453_v14  ;;  %5226 = vset.pattern.permute.xlu0 %v7454_v13 }
0x1863   :  { %3891 = vperm.xlu1 %5225, %v3757_v2   ;;  %3928 = vperm.xlu0 %5226, %v3757_v2  }
0x1867   :  { %5227 = vset.pattern.permute.xlu1 %v7449_v59  ;;  %5229 = vset.pattern.permute.xlu0 %v7450_v45 }
0x1868   :  { %3965 = vperm.xlu1 %5227, %v3757_v2   ;;  %4039 = vperm.xlu0 %5229, %v3757_v2  }
0x186c   :  { %5228 = vset.pattern.permute.xlu1 %v7448_v29  ;;  %5232 = vset.pattern.permute.xlu0 %v7453_v14 }
0x186d   :  { %4002 = vperm.xlu1 %5228, %v3757_v2   ;;  %3905 = vperm.xlu0 %5232, %v3792_v58  }
0x1871   :  { %5230 = vset.pattern.permute.xlu1 %v7452_v46  ;;  %5235 = vset.pattern.permute.xlu0 %v7449_v59 }
0x1872   :  { %3830 = vperm.xlu1 %5230, %v3792_v58   ;;  %3979 = vperm.xlu0 %5235, %v3792_v58  }
0x1876   :  { %5231 = vset.pattern.permute.xlu1 %v7447_v52  ;;  %5239 = vset.pattern.permute.xlu0 %v7447_v52 }
0x1877   :  { %3868 = vperm.xlu1 %5231, %v3792_v58   ;;  %3858 = vperm.xlu0 %5239, %v3758_v12  }
0x187b   :  { %5233 = vset.pattern.permute.xlu1 %v7454_v13  ;;  %5242 = vset.pattern.permute.xlu0 %v7449_v59 }
0x187c   :  { %3942 = vperm.xlu1 %5233, %v3792_v58   ;;  %3969 = vperm.xlu0 %5242, %v3758_v12  }
0x1880   :  { %5234 = vset.pattern.permute.xlu1 %v7451_v62  ;;  %5245 = vset.pattern.permute.xlu0 %v7452_v46 }
0x1881   :  { %4076 = vperm.xlu1 %5234, %v3757_v2   ;;  %3835 = vperm.xlu0 %5245, %v3793_v4  }
0x1885   :  { %5236 = vset.pattern.permute.xlu1 %v7448_v29  ;;  %5248 = vset.pattern.permute.xlu0 %v7454_v13 }
0x1886   :  { %4016 = vperm.xlu1 %5236, %v3792_v58   ;;  %3946 = vperm.xlu0 %5248, %v3793_v4  }
0x188a   :  { %5237 = vset.pattern.permute.xlu1 %v7450_v45  ;;  %5251 = vset.pattern.permute.xlu0 %v7448_v29 }
0x188b   :  { %4053 = vperm.xlu1 %5237, %v3792_v58   ;;  %4020 = vperm.xlu0 %5251, %v3793_v4  }
0x188f   :  { %5238 = vset.pattern.permute.xlu1 %v7452_v46  ;;  %5252 = vset.pattern.permute.xlu0 %v7451_v62 }
0x1890   :  { %4090 = vperm.xlu0 %5252, %v3792_v58   ;;  %3819 = vperm.xlu1 %5238, %v3758_v12  }
0x1894   :  { %5240 = vset.pattern.permute.xlu1 %v7453_v14 }
0x1895   :  { %3895 = vperm.xlu1 %5240, %v3758_v12  }
0x1899   :  { %5241 = vset.pattern.permute.xlu1 %v7454_v13 }
0x189a   :  { %3932 = vperm.xlu1 %5241, %v3758_v12  }
0x189e   :  { %5243 = vset.pattern.permute.xlu1 %v7448_v29  ;;  %v5432_v29 = vpop.eup %5431 }
0x189f   :  { %4006 = vperm.xlu1 %5243, %v3758_v12   ;;  %v3579_v55 = vadd.f32 1.0, %v5432_v29  ;;  %v3582_v26 = vmul.f32 -0.5, %v5432_v29  ;;  %v3585_v60 = vand.u32 2147483647, %v5432_v29 }
0x18a1   :  { %5435 = vlog2.f32 %v3579_v55  ;;  %v3583_v43 = vadd.f32 1.0, %v3582_v26  ;;  %vm3586_vm2 = vcmp.lt.f32.partialorder %v3585_v60, 0.0004427343 }
0x18a3   :  { %5244 = vset.pattern.permute.xlu1 %v7450_v45  ;;  %v3584_v20 = vmul.f32 %v5432_v29, %v3583_v43 }
0x18a4   :  { %4043 = vperm.xlu1 %5244, %v3758_v12  }
0x18a8   :  { %5246 = vset.pattern.permute.xlu1 %v7447_v52  ;;  %v5434_v52 = vpop.eup %5433 }
0x18a9   :  { %3872 = vperm.xlu1 %5246, %v3793_v4   ;;  %v4128_v49 = vmul.f32 %v5434_v52, %v7025_v63  ;;  %v4585_v63 = vld [vmem:[%s7417_s10 + $0x70] sm:$0xff] }
0x18ad   :  { %5247 = vset.pattern.permute.xlu1 %v7453_v14 }
0x18ae   :  { %3909 = vperm.xlu1 %5247, %v3793_v4   ;;  %v5436_v17 = vpop.eup %5435 }
0x18af   :  { %v3581_v16 = vmul.f32 0.6931472, %v5436_v17 }
0x18b1   :  { %v3587_v57 = vsel %vm3586_vm2, %v3584_v20, %v3581_v16 }
0x18b2   :  { %5249 = vset.pattern.permute.xlu1 %v7451_v62  ;;  %v3588_v6 = vadd.f32 %v3587_v57, %v3572_v56 }
0x18b3   :  { %4080 = vperm.xlu1 %5249, %v3758_v12  }
0x18b4   :  { %v3589_v51 = vsel %vm3573_vm3, %v7079_v28, %v3588_v6 }
0x18b5   :  { %v3606_v37 = vrot.slane %v3589_v51, %v5802_v54  ;;  %v3599_v55 = vcombine.high %v3589_v51, %v3589_v51  ;;  %v7164_v17 = vmul.f32 %v3589_v51, %v7044_v42 }
0x18b7   :  { %5250 = vset.pattern.permute.xlu1 %v7449_v59  ;;  %v4575_v59 = vld [vmem:[%s7415_s8 + $0x10] sm:$0xff]  ;;  %v3622_v22 = vrot.slane %v3606_v37, %v5802_v54  ;;  %v3614_v35 = vcombine.high %v3606_v37, %v3606_v37  ;;  %v3613_v60 = vrot.slane %v3599_v55, %v5802_v54  ;;  %v3811_v20 = vrot.slane %v7164_v17, %v5690_v33 }
0x18b8   :  { %3983 = vperm.xlu1 %5250, %v3793_v4  }
0x18b9   :  { %v3651_v1 = vrot.slane %v3622_v22, %v5690_v33  ;;  %v3636_v2 = vrot.slane %v3614_v35, %v5802_v54  ;;  %v3644_v7 = vcombine.high %v3622_v22, %v3622_v22  ;;  %v3629_v57 = vrot.slane %v3613_v60, %v5802_v54 }
0x18bb   :  { %v3655_v58 = vrot.slane %v3636_v2, %v5690_v33  ;;  %v3659_v23 = vrot.slane %v3644_v7, %v5690_v33  ;;  %v3646_v26 = vcombine.high %v3636_v2, %v3636_v2 }
0x18bc   :  { %5253 = vset.pattern.permute.xlu1 %v7450_v45  ;;  %v4586_v45 = vld [vmem:[%s7417_s10 + $0x78] sm:$0xff] }
0x18bd   :  { %4057 = vperm.xlu1 %5253, %v3793_v4   ;;  %5061 = vmatpush3.msra.mxu1 %v4586_v45 }
0x18be   :  { %5062 = vmatprep.subr.mxu1 %v5507_v8 }
0x18bf   :  { %5063 = vmatpush3.msra.mxu1 %v4585_v63 }
0x18c0   :  { %5064 = vmatprep.subr.mxu1 %v5507_v8 }
0x18c1   :  { %5254 = vset.pattern.permute.xlu1 %v7451_v62  ;;  %v3592_v62 = vmul.f32 1.442695, %v4575_v59  ;;  %5065 = vmatpush3.msra.mxu1 %v4584_v5 }
0x18c2   :  { %4094 = vperm.xlu1 %5254, %v3793_v4   ;;  %5066 = vmatprep.subr.mxu1 %v5507_v8 }
0x18c3   :  { %5437 = vpow2.f32 %v3592_v62  ;;  %5067 = vmatpush3.msra.mxu1 %v4583_v41  ;;  %v3663_v62 = vrot.slane %v3646_v26, %v5690_v33 }
0x18c4   :  { %5068 = vmatprep.subr.mxu1 %v5507_v8  ;;  %5439 = vpow2.f32 %v3594_v36  ;;  %v3667_v36 = vrot.slane %v3629_v57, %v5690_v33 }
0x18c5   :  { %5069 = vmatpush3.msra.mxu1 %v4582_v24  ;;  %v3615_v24 = vcombine.high %v3613_v60, %v3613_v60 }
0x18c6   :  { %4130 = vrot.lane.b32.xlu1 %v4128_v49, %s5509_s19  ;;  %5070 = vmatprep.subr.mxu1 %v5507_v8 }
0x18c7   :  { %5071 = vmatpush3.msra.mxu1 %v4581_v27 }
0x18c8   :  { %5072 = vmatprep.subr.mxu1 %v5507_v8 }
0x18c9   :  { %5073 = vmatpush3.msra.mxu1 %v4580_v53 }
0x18ca   :  { %5074 = vmatprep.subr.mxu1 %v5507_v8 }
0x18cb   :  { %5075 = vmatpush3.msra.mxu1 %v4579_v61 }
0x18d0   :  { %v5438_v3 = vpop.eup %5437 }
0x18d1   :  { %v7142_v44 = vsub.f32 0.0, %v5438_v3  ;;  %v5440_v13 = vpop.eup %5439 }
0x18d2   :  { %v7152_v28 = vsub.f32 0.0, %v5440_v13 }
0x18d3   :  { %v3688_v14 = vmul.f32 %v3651_v1, %v7142_v44  ;;  %v3690_v48 = vmul.f32 %v3655_v58, %v7142_v44  ;;  %v3692_v43 = vmul.f32 %v3659_v23, %v7142_v44  ;;  %v3694_v51 = vmul.f32 %v3663_v62, %v7142_v44 }
0x18d4   :  { %v3689_v18 = vmul.f32 %v3651_v1, %v7152_v28  ;;  %v3691_v59 = vmul.f32 %v3655_v58, %v7152_v28  ;;  %v3693_v56 = vmul.f32 %v3659_v23, %v7152_v28  ;;  %v3695_v37 = vmul.f32 %v3663_v62, %v7152_v28 }
0x18d5   :  { %v3704_v12 = vmul.f32 1.442695, %v3688_v14  ;;  %v3708_v32 = vmul.f32 1.442695, %v3690_v48  ;;  %v3712_v63 = vmul.f32 1.442695, %v3692_v43  ;;  %v7188_v1 = vrot.slane %v3615_v24, %v5802_v54 }
0x18d6   :  { %v3706_v49 = vmul.f32 1.442695, %v3689_v18  ;;  %v3710_v41 = vmul.f32 1.442695, %v3691_v59  ;;  %v3714_v61 = vmul.f32 1.442695, %v3693_v56  ;;  %v3697_v14 = vmul.f32 %v3667_v36, %v7152_v28 }
0x18d7   :  { %5441 = vpow2.f32 %v3704_v12  ;;  %v3716_v3 = vmul.f32 1.442695, %v3694_v51  ;;  %v3718_v13 = vmul.f32 1.442695, %v3695_v37  ;;  %v3852_v58 = vrot.slane %v7164_v17, %v5693_v34 }
0x18d8   :  { %5443 = vpow2.f32 %v3708_v32  ;;  %v3696_v54 = vmul.f32 %v3667_v36, %v7142_v44  ;;  %v3671_v18 = vrot.slane %v7188_v1, %v5690_v33  ;;  %v3722_v23 = vmul.f32 1.442695, %v3697_v14 }
0x18d9   :  { %v7124_v19 = vpop.permute.xlu1 %3854  ;;  %v3815_v11 = vpop.permute.xlu0 %3814  ;;  %5445 = vpow2.f32 %v3706_v49  ;;  %v3645_v24 = vcombine.high %v3629_v57, %v3629_v57 }
0x18da   :  { %v3822_v6 = vmul.f32 %v3815_v11, %v3811_v20  ;;  %5447 = vpow2.f32 %v3712_v63  ;;  %v3861_v48 = vmul.f32 %v7124_v19, %v3852_v58  ;;  %v3720_v26 = vmul.f32 1.442695, %v3696_v54 }
0x18db   :  { %5449 = vpow2.f32 %v3710_v41  ;;  %v3699_v19 = vmul.f32 %v3671_v18, %v7152_v28  ;;  %v3889_v63 = vrot.slane %v7164_v17, %v5702_v38  ;;  %v3675_v38 = vrot.slane %v3645_v24, %v5690_v33 }
0x18dc   :  { %5451 = vpow2.f32 %v3714_v61 }
0x18dd   :  { %5453 = vpow2.f32 %v3716_v3  ;;  %v3726_v36 = vmul.f32 1.442695, %v3699_v19 }
0x18de   :  { %v7136_v50 = vpop.permute.xlu1 %3891  ;;  %v7159_v29 = vpop.permute.xlu0 %3928  ;;  %5455 = vpow2.f32 %v3718_v13 }
0x18df   :  { %5457 = vpow2.f32 %v3722_v23 }
0x18e0   :  { %5459 = vpow2.f32 %v3720_v26 }
0x18e1   :  { %5461 = vpow2.f32 %v3726_v36 }
0x18e3   :  { %v7140_v30 = vpop.permute.xlu1 %3965  ;;  %v7169_v16 = vpop.permute.xlu0 %4039 }
0x18e4   :  { %v5442_v5 = vpop.eup %5441 }
0x18e5   :  { %v3824_v27 = vmul.f32 0.0, %v5442_v5  ;;  %v5444_v35 = vpop.eup %5443 }
0x18e6   :  { %v5446_v7 = vpop.eup %5445 }
0x18e7   :  { %v7185_v22 = vadd.f32 %v3824_v27, %v3822_v6  ;;  %v3825_v34 = vmul.f32 0.0, %v5446_v7  ;;  %v5448_v60 = vpop.eup %5447  ;;  %v3698_v27 = vmul.f32 %v3671_v18, %v7142_v44  ;;  %v3647_v18 = vcombine.high %v7188_v1, %v7188_v1 }
0x18e8   :  { %v7145_v46 = vpop.permute.xlu1 %4002  ;;  %v7178_v10 = vpop.permute.xlu0 %3905 }
0x18e9   :  { %v3863_v12 = vmul.f32 %v5444_v35, %v7185_v22  ;;  %v5450_v62 = vpop.eup %5449  ;;  %v3724_v14 = vmul.f32 1.442695, %v3698_v27 }
0x18ea   :  { %v5452_v61 = vpop.eup %5451 }
0x18eb   :  { %v7202_v32 = vadd.f32 %v3863_v12, %v3861_v48  ;;  %v5454_v12 = vpop.eup %5453  ;;  %5463 = vpow2.f32 %v3724_v14 }
0x18ed   :  { %v7150_v4 = vpop.permute.xlu1 %3830  ;;  %v7196_v11 = vpop.permute.xlu0 %3979  ;;  %v3900_v5 = vmul.f32 %v5448_v60, %v7202_v32 }
0x18f2   :  { %v7155_v39 = vpop.permute.xlu1 %3868  ;;  %v3859_v43 = vpop.permute.xlu0 %3858 }
0x18f3   :  { %v3862_v56 = vmul.f32 %v3859_v43, %v3852_v58  ;;  %v3926_v58 = vrot.slane %v7164_v17, %v5684_v31  ;;  %v3963_v31 = vrot.slane %v7164_v17, %v5909_v47  ;;  %v3875_v14 = vmul.f32 %v7155_v39, %v7202_v32 }
0x18f5   :  { %v3935_v23 = vmul.f32 %v7159_v29, %v3926_v58  ;;  %v3972_v27 = vmul.f32 %v7140_v30, %v3963_v31  ;;  %v3838_v30 = vmul.f32 %v7150_v4, %v7185_v22  ;;  %v3877_v32 = vsel %vm218_vm5, %v3875_v14, 0.0 }
0x18f7   :  { %v7161_v52 = vpop.permute.xlu1 %3942  ;;  %v3970_v60 = vpop.permute.xlu0 %3969  ;;  %v3840_v4 = vsel %vm218_vm5, %v3838_v30, 0.0 }
0x18fc   :  { %v7171_v45 = vpop.permute.xlu1 %4076 }
0x1901   :  { %v7181_v53 = vpop.permute.xlu1 %4016 }
0x1906   :  { %v7190_v2 = vpop.permute.xlu1 %4053 }
0x190b   :  { %v3820_v55 = vpop.permute.xlu1 %3819 }
0x190c   :  { %v3823_v49 = vmul.f32 %v3820_v55, %v3811_v20  ;;  %v3898_v20 = vmul.f32 %v7136_v50, %v3889_v63  ;;  %v5456_v50 = vpop.eup %5455  ;;  %v3700_v55 = vmul.f32 %v3675_v38, %v7142_v44 }
0x190d   :  { %v5458_v26 = vpop.eup %5457 }
0x190e   :  { %v3827_v59 = vadd.f32 %v3825_v34, %v3823_v49  ;;  %v3902_v37 = vadd.f32 %v3900_v5, %v3898_v20  ;;  %v3679_v5 = vrot.slane %v3647_v18, %v5690_v33  ;;  %v5460_v1 = vpop.eup %5459  ;;  %v4000_v33 = vrot.slane %v7164_v17, %v5917_v21 }
0x190f   :  { %v5462_v36 = vpop.eup %5461 }
0x1910   :  { %v3864_v41 = vmul.f32 %v5450_v62, %v3827_v59  ;;  %v3896_v6 = vpop.permute.xlu1 %3895  ;;  %v3937_v7 = vmul.f32 %v5454_v12, %v3902_v37  ;;  %v3701_v62 = vmul.f32 %v3675_v38, %v7152_v28  ;;  %v3702_v47 = vmul.f32 %v3679_v5, %v7142_v44 }
0x1911   :  { %v3899_v3 = vmul.f32 %v3896_v6, %v3889_v63  ;;  %v3728_v63 = vmul.f32 1.442695, %v3700_v55  ;;  %v3912_v39 = vmul.f32 %v7178_v10, %v3902_v37 }
0x1912   :  { %v3866_v51 = vadd.f32 %v3864_v41, %v3862_v56  ;;  %v3939_v43 = vadd.f32 %v3937_v7, %v3935_v23  ;;  %v3973_v56 = vmul.f32 %v3970_v60, %v3963_v31  ;;  %v3836_v41 = vpop.permute.xlu0 %3835  ;;  %v3730_v20 = vmul.f32 1.442695, %v3701_v62 }
0x1913   :  { %5465 = vpow2.f32 %v3728_v63  ;;  %v3732_v44 = vmul.f32 1.442695, %v3702_v47  ;;  %v4009_v23 = vmul.f32 %v7145_v46, %v4000_v33  ;;  %v3914_v10 = vsel %vm218_vm5, %v3912_v39, 0.0 }
0x1914   :  { %v3901_v35 = vmul.f32 %v5452_v61, %v3866_v51  ;;  %v3974_v29 = vmul.f32 %v5460_v1, %v3939_v43  ;;  %5467 = vpow2.f32 %v3730_v20  ;;  %v3949_v55 = vmul.f32 %v7161_v52, %v3939_v43 }
0x1915   :  { %v3933_v13 = vpop.permute.xlu1 %3932  ;;  %5469 = vpow2.f32 %v3732_v44 }
0x1916   :  { %v3903_v57 = vadd.f32 %v3901_v35, %v3899_v3  ;;  %v3936_v48 = vmul.f32 %v3933_v13, %v3926_v58  ;;  %v3976_v61 = vadd.f32 %v3974_v29, %v3972_v27  ;;  %v3839_v3 = vmul.f32 %v3836_v41, %v3827_v59  ;;  %v3947_v12 = vpop.permute.xlu0 %3946 }
0x1917   :  { %v3703_v35 = vmul.f32 %v3679_v5, %v7152_v28  ;;  %v3951_v5 = vsel %vm218_vm5, %v3949_v55, 0.0 }
0x1918   :  { %v3938_v54 = vmul.f32 %v5456_v50, %v3903_v57  ;;  %v5464_v50 = vpop.eup %5463  ;;  %v3841_v28 = vsel %vm218_vm5, %v3839_v3, 0.0 }
0x1919   :  { %v4011_v7 = vmul.f32 %v5464_v50, %v3976_v61 }
0x191a   :  { %v3940_v49 = vadd.f32 %v3938_v54, %v3936_v48  ;;  %v4007_v34 = vpop.permute.xlu1 %4006  ;;  %v3734_v48 = vmul.f32 1.442695, %v3703_v35  ;;  %v4021_v31 = vpop.permute.xlu0 %4020 }
0x191b   :  { %v4010_v59 = vmul.f32 %v4007_v34, %v4000_v33  ;;  %v3842_v34 = vadd.f32 %v3841_v28, %v3840_v4  ;;  %v4013_v60 = vadd.f32 %v4011_v7, %v4009_v23 }
0x191c   :  { %v3975_v19 = vmul.f32 %v5458_v26, %v3940_v49  ;;  %v3950_v54 = vmul.f32 %v3947_v12, %v3940_v49  ;;  %5471 = vpow2.f32 %v3734_v48 }
0x191d   :  { %v4023_v1 = vmul.f32 %v7181_v53, %v4013_v60  ;;  %v3843_v52 = vrot.slane %v3842_v34, 4 }
0x191e   :  { %v7223_v24 = vadd.f32 %v3975_v19, %v3973_v56  ;;  %v3952_v37 = vsel %vm218_vm5, %v3950_v54, 0.0 }
0x191f   :  { %v7221_v6 = vpop.permute.xlu1 %4043  ;;  %v3953_v29 = vadd.f32 %v3952_v37, %v3951_v5  ;;  %v4025_v35 = vsel %vm218_vm5, %v4023_v1, 0.0  ;;  %v3844_v33 = vadd.f32 %v3843_v52, %v3842_v34 }
0x1920   :  { %v4012_v38 = vmul.f32 %v5462_v36, %v7223_v24  ;;  %v5466_v63 = vpop.eup %5465  ;;  %v3986_v36 = vmul.f32 %v7196_v11, %v3976_v61 }
0x1921   :  { %v4048_v56 = vmul.f32 %v5466_v63, %v4013_v60  ;;  %v5468_v27 = vpop.eup %5467  ;;  %v3845_v7 = vrot.slane %v3844_v33, 2 }
0x1922   :  { %v4014_v18 = vadd.f32 %v4012_v38, %v4010_v59  ;;  %v4074_v38 = vrot.slane %v7164_v17, %v5952_v25  ;;  %v5470_v59 = vpop.eup %5469 }
0x1924   :  { %v3873_v13 = vpop.permute.xlu1 %3872  ;;  %v4024_v49 = vmul.f32 %v4021_v31, %v4014_v18  ;;  %v4049_v14 = vmul.f32 %v5468_v27, %v4014_v18  ;;  %v4083_v11 = vmul.f32 %v7171_v45, %v4074_v38  ;;  %v4091_v18 = vpop.permute.xlu0 %4090 }
0x1925   :  { %v3876_v58 = vmul.f32 %v3873_v13, %v3866_v51  ;;  %v3954_v13 = vrot.slane %v3953_v29, 4 }
0x1926   :  { %v4026_v20 = vsel %vm218_vm5, %v4024_v49, 0.0 }
0x1927   :  { %v3878_v21 = vsel %vm218_vm5, %v3876_v58, 0.0  ;;  %v4027_v30 = vadd.f32 %v4026_v20, %v4025_v35  ;;  %v3955_v48 = vadd.f32 %v3954_v13, %v3953_v29 }
0x1928   :  { %v3879_v22 = vadd.f32 %v3878_v21, %v3877_v32 }
0x1929   :  { %v3910_v51 = vpop.permute.xlu1 %3909  ;;  %v4028_v39 = vrot.slane %v4027_v30, 4 }
0x192a   :  { %v3913_v26 = vmul.f32 %v3910_v51, %v3903_v57  ;;  %v3880_v46 = vrot.slane %v3879_v22, 4  ;;  %v4037_v57 = vrot.slane %v7164_v17, %v5935_v0  ;;  %v3846_v51 = vadd.f32 %v3845_v7, %v3844_v33 }
0x192b   :  { %v4029_v60 = vadd.f32 %v4028_v39, %v4027_v30 }
0x192c   :  { %v3915_v19 = vsel %vm218_vm5, %v3913_v26, 0.0  ;;  %v4046_v47 = vmul.f32 %v7169_v16, %v4037_v57  ;;  %v3881_v3 = vadd.f32 %v3880_v46, %v3879_v22  ;;  %v4047_v44 = vmul.f32 %v7221_v6, %v4037_v57  ;;  %v5472_v6 = vpop.eup %5471 }
0x192d   :  { %v3916_v62 = vadd.f32 %v3915_v19, %v3914_v10  ;;  %v3988_v16 = vsel %vm218_vm5, %v3986_v36, 0.0  ;;  %v3956_v26 = vrot.slane %v3955_v48, 2 }
0x192e   :  { %v4081_v43 = vpop.permute.xlu1 %4080  ;;  %v4050_v0 = vadd.f32 %v4048_v56, %v4046_v47  ;;  %v3882_v50 = vrot.slane %v3881_v3, 2  ;;  %v4051_v17 = vadd.f32 %v4049_v14, %v4047_v44  ;;  %v4030_v56 = vrot.slane %v4029_v60, 2 }
0x192f   :  { %v3917_v41 = vrot.slane %v3916_v62, 4  ;;  %v4084_v54 = vmul.f32 %v4081_v43, %v4074_v38  ;;  %v3847_v43 = vrot.slane %v3846_v51, 1  ;;  %v3957_v57 = vadd.f32 %v3956_v26, %v3955_v48 }
0x1930   :  { %v4060_v61 = vmul.f32 %v7190_v2, %v4050_v0  ;;  %v4085_v21 = vmul.f32 %v5470_v59, %v4050_v0  ;;  %v3883_v4 = vadd.f32 %v3882_v50, %v3881_v3  ;;  %v4086_v34 = vmul.f32 %v5472_v6, %v4051_v17 }
0x1931   :  { %v3918_v53 = vadd.f32 %v3917_v41, %v3916_v62  ;;  %v3958_v14 = vrot.slane %v3957_v57, 1  ;;  %v4031_v38 = vadd.f32 %v4030_v56, %v4029_v60 }
0x1932   :  { %v4087_v23 = vadd.f32 %v4085_v21, %v4083_v11  ;;  %v4062_v2 = vsel %vm218_vm5, %v4060_v61, 0.0  ;;  %v4088_v19 = vadd.f32 %v4086_v34, %v4084_v54  ;;  %v3884_v46 = vrot.slane %v3883_v4, 1  ;;  %v4577_v21 = vld [vmem:[%s7416_s9 + $0x1] ss:$0 sm:$0xff] }
0x1933   :  { %v3984_v12 = vpop.permute.xlu1 %3983  ;;  %v3919_v28 = vrot.slane %v3918_v53, 2  ;;  %v3959_v11 = vadd.f32 %v3958_v14, %v3957_v57  ;;  %v4032_v61 = vrot.slane %v4031_v38, 1  ;;  %v4120_v6 = vmul.f32 %v4577_v21, %v7044_v42  ;;  %v7322_v14 = vld [vmem:[%s7422_s15] ss:$0 sm:$0xff] }
0x1934   :  { %v3987_v58 = vmul.f32 %v3984_v12, %v7223_v24  ;;  %v4097_v37 = vmul.f32 %v4091_v18, %v4087_v23  ;;  %v3885_v47 = vadd.f32 %v3884_v46, %v3883_v4  ;;  %v4596_v46 = vld [vmem:[%s7420_s13 + $0x70] sm:$0xff]  ;;  %v4604_v21 = vld [vmem:[%s7421_s14 + $0xa0] sm:$0xff] }
0x1935   :  { %v3920_v55 = vadd.f32 %v3919_v28, %v3918_v53  ;;  %v3848_v53 = vadd.f32 %v3847_v43, %v3846_v51  ;;  %v4033_v48 = vadd.f32 %v4032_v61, %v4031_v38  ;;  %v2229_v51 = vadd.f32 %v6955_v9, %v6606_v15  ;;  %v4597_v9 = vld [vmem:[%s7420_s13 + $0x78] sm:$0xff]  ;;  %v4590_v43 = vld [vmem:[%s7420_s13 + $0x40] sm:$0xff] }
0x1936   :  { %v3989_v25 = vsel %vm218_vm5, %v3987_v58, 0.0  ;;  %v4099_v41 = vsel %vm218_vm5, %v4097_v37, 0.0  ;;  %4275 = vmatprep.subr.mxu0 %v4597_v9  ;;  %v4611_v61 = vld [vmem:[%s7421_s14 + $0xd8] sm:$0xff] }
0x1937   :  { %v3990_v32 = vadd.f32 %v3989_v25, %v3988_v16  ;;  %v3921_v5 = vrot.slane %v3920_v55, 1  ;;  %v4108_v30 = vsel %vm834_vm8, %v3848_v53, %v3885_v47  ;;  %4276 = vmatpush1.msra.mxu0 %v4596_v46 }
0x1938   :  { %v4058_v24 = vpop.permute.xlu1 %4057 }
0x1939   :  { %v3991_v45 = vrot.slane %v3990_v32, 4  ;;  %v4061_v22 = vmul.f32 %v4058_v24, %v4051_v17  ;;  %v3922_v3 = vadd.f32 %v3921_v5, %v3920_v55  ;;  %v2234_v55 = vsel %vm62_vm0, %v2229_v51, 0.0  ;;  %v4593_v5 = vld [vmem:[%s7420_s13 + $0x58] sm:$0xff] }
0x193b   :  { %v3992_v31 = vadd.f32 %v3991_v45, %v3990_v32  ;;  %v4063_v10 = vsel %vm218_vm5, %v4061_v22, 0.0  ;;  %v4109_v44 = vsel %vm836_vm9, %v4108_v30, %v3922_v3 }
0x193c   :  { %v4064_v49 = vadd.f32 %v4063_v10, %v4062_v2  ;;  %v4110_v7 = vsel %vm838_vm10, %v4109_v44, %v3959_v11  ;;  %v4615_v44 = vld [vmem:[%s7421_s14 + $0xf8] sm:$0xff]  ;;  %v4612_v11 = vld [vmem:[%s7421_s14 + $0xe0] sm:$0xff] }
0x193d   :  { %v3993_v62 = vrot.slane %v3992_v31, 2  ;;  %v4095_v63 = vpop.permute.xlu1 %4094 }
0x193e   :  { %v4065_v1 = vrot.slane %v4064_v49, 4  ;;  %v4098_v52 = vmul.f32 %v4095_v63, %v4088_v19  ;;  %v4594_v63 = vld [vmem:[%s7420_s13 + $0x60] sm:$0xff] }
0x193f   :  { %v3994_v29 = vadd.f32 %v3993_v62, %v3992_v31  ;;  %v4595_v62 = vld [vmem:[%s7420_s13 + $0x68] sm:$0xff] }
0x1940   :  { %v4066_v20 = vadd.f32 %v4065_v1, %v4064_v49  ;;  %v4100_v27 = vsel %vm218_vm5, %v4098_v52, 0.0  ;;  %4277 = vmatprep.subr.mxu0 %v4595_v62  ;;  %v4592_v1 = vld [vmem:[%s7420_s13 + $0x50] sm:$0xff]  ;;  %v4591_v52 = vld [vmem:[%s7420_s13 + $0x48] sm:$0xff] }
0x1941   :  { %v4101_v36 = vadd.f32 %v4100_v27, %v4099_v41  ;;  %v3995_v35 = vrot.slane %v3994_v29, 1  ;;  %v4131_v23 = vpop.permute.xlu1 %4130  ;;  %4278 = vmatpush1.msra.mxu0 %v4594_v63 }
0x1942   :  { %v4067_v33 = vrot.slane %v4066_v20, 2  ;;  %4279 = vmatprep.subr.mxu0 %v4593_v5 }
0x1943   :  { %v4102_v0 = vrot.slane %v4101_v36, 4  ;;  %v3996_v58 = vadd.f32 %v3995_v35, %v3994_v29  ;;  %4280 = vmatpush1.msra.mxu0 %v4592_v1  ;;  %v4589_v35 = vld [vmem:[%s7419_s12 + $0x1] ss:$0 sm:$0xff] }
0x1944   :  { %v4068_v13 = vadd.f32 %v4067_v33, %v4066_v20  ;;  %4281 = vmatprep.subr.mxu0 %v4591_v52 }
0x1945   :  { %v4103_v12 = vadd.f32 %v4102_v0, %v4101_v36  ;;  %v4111_v25 = vsel %vm840_vm11, %v4110_v7, %v3996_v58  ;;  %4282 = vmatpush1.msra.mxu0 %v4590_v43  ;;  %v4588_v36 = vld [vmem:[%s7418_s11 + $0x1] ss:$0 sm:$0xff]  ;;  %v4614_v58 = vld [vmem:[%s7421_s14 + $0xf0] sm:$0xff] }
0x1946   :  { %v4069_v16 = vrot.slane %v4068_v13, 1  ;;  %v4112_v32 = vsel %vm842_vm12, %v4111_v25, %v4033_v48  ;;  %5079 = vmatprep.subr.mxu0 %v5507_v8  ;;  %v4608_v7 = vld [vmem:[%s7421_s14 + $0xc0] sm:$0xff]  ;;  %v4606_v25 = vld [vmem:[%s7421_s14 + $0xb0] sm:$0xff]  ;;  %v4603_v48 = vld [vmem:[%s7421_s14 + $0x98] sm:$0xff] }
0x1947   :  { %v4104_v50 = vrot.slane %v4103_v12, 2 }
0x1948   :  { %v4070_v28 = vadd.f32 %v4069_v16, %v4068_v13  ;;  %v7327_v13 = vld [vmem:[%s7423_s16] ss:$0 sm:$0xff]  ;;  %v4613_v16 = vld [vmem:[%s7421_s14 + $0xe8] sm:$0xff] }
0x1949   :  { %v4105_v59 = vadd.f32 %v4104_v50, %v4103_v12  ;;  %v4610_v50 = vld [vmem:[%s7421_s14 + $0xd0] sm:$0xff] }
0x194a   :  { %v4113_v54 = vsel %vm844_vm13, %v4112_v32, %v4070_v28  ;;  %v4607_v28 = vld [vmem:[%s7421_s14 + $0xb8] sm:$0xff]  ;;  %v4601_v32 = vld [vmem:[%s7421_s14 + $0x88] sm:$0xff] }
0x194b   :  { %v4106_v17 = vrot.slane %v4105_v59, 1 }
0x194d   :  { %v4107_v39 = vadd.f32 %v4106_v17, %v4105_v59  ;;  %v4609_v59 = vld [vmem:[%s7421_s14 + $0xc8] sm:$0xff] }
0x194e   :  { %v4605_v17 = vld [vmem:[%s7421_s14 + $0xa8] sm:$0xff] }
0x194f   :  { %v4114_v24 = vsel %vm846_vm14, %v4113_v54, %v4107_v39  ;;  %v4602_v39 = vld [vmem:[%s7421_s14 + $0x90] sm:$0xff] }
0x1950   :  { %v4121_v18 = vadd.f32 %v4120_v6, %v4114_v24  ;;  %v4600_v6 = vld [vmem:[%s7421_s14 + $0x80] sm:$0xff]  ;;  %s5520_s14 = smov [#allocation2]  }
0x1951   :  { %s4452_s16 = sshll.u32 %s5520_s14, 4  ;;  %s4453_s16 = int_to_ptr.vmem [resolvable:$true] %s4452_s16 }
0x1952   :  { %v4133_v4 = vmul.f32 %v4131_v23, %v4121_v18  ;;  %s5485_s10 = scalar_lea.vmem %s4453_s16, 256  ;;  %p5490_p1 = scmp.lt.s32.totalorder %s4453_s16, %s4453_s16 }
0x1953   :  { %p5486_p0 = scmp.ne.s32.totalorder %s4453_s16, %s5485_s10  ;;  %p5491_p2 = scmp.lt.s32.totalorder %s5485_s10, %s5485_s10 }
0x1954   :  { %5077 = vmatmul.mubr.msk.f32.vlgmr.msra.gmra.mxu1 %vm218_vm5, %v4133_v4 }
0x1955   :  { %p5492_p3 = por %p5491_p2, %p5490_p1 }
0x1957   :  { %p5493_p4 = pnand %p5492_p3, %p5486_p0 }
0x1a14   :  { %v4211_v45 = vpop.f32.mrf.mxu1 }
0x1a15   :  { %v7278_v22 = vadd.f32 %v4211_v45, %v6959_v40 }
0x1a16   :  { %v5078_v2 = vpop.f32.mrf.mxu1 }
0x1a17   :  { %v4217_v42 = vsel %vm62_vm0, %v7278_v22, 0.0 }
0x1a18   :  { %4218 = vadd.xlane.f32.xlu0 %v4217_v42 }
0x1a1c   :  { %2235 = vadd.xlane.f32.xlu0 %v2234_v55 }
0x1aa1   :  { %v4219_v34 = vpop.xlane.xlu0 %4218 }
0x1aa2   :  { %v4220_v26 = vmul.f32 0.03125, %v4219_v34 }
0x1aa4   :  { %v4221_v60 = vsub.f32 %v7278_v22, %v4220_v26 }
0x1aa5   :  { %v2236_v31 = vpop.xlane.xlu0 %2235 }
0x1aa6   :  { %v2237_v10 = vmul.f32 0.03125, %v2236_v31  ;;  %v4222_v37 = vmul.f32 %v4221_v60, %v4221_v60 }
0x1aa8   :  { %v2238_v40 = vsub.f32 %v2229_v51, %v2237_v10  ;;  %v4223_v49 = vsel %vm62_vm0, %v4222_v37, 0.0 }
0x1aa9   :  { %4224 = vadd.xlane.f32.xlu1 %v4223_v49 }
0x1aaa   :  { %v2239_v19 = vmul.f32 %v2238_v40, %v2238_v40 }
0x1aac   :  { %v2240_v15 = vsel %vm62_vm0, %v2239_v19, 0.0 }
0x1aad   :  { %2241 = vadd.xlane.f32.xlu1 %v2240_v15 }
0x1b32   :  { %v4225_v57 = vpop.xlane.xlu1 %4224 }
0x1b33   :  { %v4226_v56 = vmul.f32 0.03125, %v4225_v57 }
0x1b35   :  { %v4227_v29 = vadd.f32 1e-05, %v4226_v56 }
0x1b36   :  { %v2242_v41 = vpop.xlane.xlu1 %2241 }
0x1b37   :  { %5473 = vrsqrt.f32 %v4227_v29  ;;  %v2243_v20 = vmul.f32 0.03125, %v2242_v41 }
0x1b39   :  { %v2244_v27 = vadd.f32 1e-05, %v2243_v20 }
0x1b3b   :  { %5475 = vrsqrt.f32 %v2244_v27 }
0x1b44   :  { %v5474_v47 = vpop.eup %5473 }
0x1b45   :  { %v4229_v3 = vmul.f32 %v5474_v47, %v4221_v60 }
0x1b47   :  { %v4234_v33 = vmul.f32 %v4588_v36, %v4229_v3 }
0x1b48   :  { %v5476_v53 = vpop.eup %5475 }
0x1b49   :  { %v4239_v38 = vadd.f32 %v4589_v35, %v4234_v33  ;;  %v2246_v0 = vmul.f32 %v5476_v53, %v2238_v40 }
0x1b4b   :  { %4598 = vmatmul.mubr.msk.f32.vlgmr.msra.gmra.mxu0 %vm62_vm0, %v4239_v38  ;;  %v2253_v30 = vmul.f32 %v7322_v14, %v2246_v0 }
0x1b4c   :  { %5111 = vmatprep.mubr.msk.f32.mxu0 %vm5508_vm1, %v5507_v8  ;;  %5080 = vmatpush3.msra.mxu0 %v4615_v44 }
0x1b4d   :  { %v2260_v12 = vadd.f32 %v7327_v13, %v2253_v30  ;;  %5081 = vmatprep.subr.mxu0 %v5507_v8 }
0x1b4e   :  { %5082 = vmatpush3.msra.mxu0 %v4614_v58 }
0x1b4f   :  { %2261 = vst.msk [vmem:[#allocation2] sm:$0xff] %vm62_vm0, %v2260_v12  ;;  %5083 = vmatprep.subr.mxu0 %v5507_v8 }
0x1b50   :  { %5084 = vmatpush3.msra.mxu0 %v4613_v16 }
0x1b51   :  { %5085 = vmatprep.subr.mxu0 %v5507_v8 }
0x1b52   :  { %5086 = vmatpush3.msra.mxu0 %v4612_v11 }
0x1b53   :  { %5087 = vmatprep.subr.mxu0 %v5507_v8 }
0x1b54   :  { %5088 = vmatpush3.msra.mxu0 %v4611_v61 }
0x1b55   :  { %5089 = vmatprep.subr.mxu0 %v5507_v8 }
0x1b56   :  { %5090 = vmatpush3.msra.mxu0 %v4610_v50 }
0x1b57   :  { %5091 = vmatprep.subr.mxu0 %v5507_v8 }
0x1b58   :  { %5092 = vmatpush3.msra.mxu0 %v4609_v59 }
0x1b59   :  { %5093 = vmatprep.subr.mxu0 %v5507_v8 }
0x1b5a   :  { %5094 = vmatpush3.msra.mxu0 %v4608_v7 }
0x1b5b   :  { %5095 = vmatprep.subr.mxu0 %v5507_v8 }
0x1b5c   :  { %5096 = vmatpush3.msra.mxu0 %v4607_v28 }
0x1b5d   :  { %5097 = vmatprep.subr.mxu0 %v5507_v8 }
0x1b5e   :  { %5098 = vmatpush3.msra.mxu0 %v4606_v25 }
0x1b5f   :  { %5099 = vmatprep.subr.mxu0 %v5507_v8 }
0x1b60   :  { %5100 = vmatpush3.msra.mxu0 %v4605_v17 }
0x1b61   :  { %5101 = vmatprep.subr.mxu0 %v5507_v8 }
0x1b62   :  { %5102 = vmatpush3.msra.mxu0 %v4604_v21 }
0x1b63   :  { %5103 = vmatprep.subr.mxu0 %v5507_v8 }
0x1b64   :  { %5104 = vmatpush3.msra.mxu0 %v4603_v48 }
0x1b65   :  { %5105 = vmatprep.subr.mxu0 %v5507_v8 }
0x1b66   :  { %5106 = vmatpush3.msra.mxu0 %v4602_v39 }
0x1b67   :  { %5107 = vmatprep.subr.mxu0 %v5507_v8 }
0x1b68   :  { %5108 = vmatpush3.msra.mxu0 %v4601_v32 }
0x1b69   :  { %5109 = vmatprep.subr.mxu0 %v5507_v8 }
0x1b6a   :  { %5110 = vmatpush3.msra.mxu0 %v4600_v6 }
0x1c0b   :  { %v4317_v54 = vpop.f32.mrf.mxu0 }
0x1c0d   :  { %v4319_v24 = vpop.f32.mrf.mxu0 }
0x1c0e   :  { %v4599_v18 = vmul.f32 -1.442695, %v4319_v24 }
0x1c10   :  { %5477 = vpow2.f32 %v4599_v18 }
0x1c1d   :  { %v5478_v23 = vpop.eup %5477 }
0x1c1e   :  { %v4325_v4 = vadd.f32 1.0, %v5478_v23 }
0x1c20   :  { %5479 = vrcp.f32 %v4325_v4 }
0x1c2d   :  { %v5480_v45 = vpop.eup %5479 }
0x1c2e   :  { %v4328_v2 = vmul.f32 %v5480_v45, %v4319_v24 }
0x1c30   :  { %v4329_v51 = vmul.f32 %v4328_v2, %v4317_v54 }
0x1c32   :  { %5112 = vmatmul.mubr.f32.vlgmr.msra.gmra.mxu0 %v4329_v51 }
0x1cf2   :  { %v4412_v42 = vpop.f32.mrf.mxu0 }
0x1cf3   :  { %v4413_v55 = vadd.f32 %v4412_v42, %v7278_v22 }
0x1cf4   :  { %v5113_v34 = vpop.f32.mrf.mxu0 }
0x1cf5   :  { %v4418_v26 = vsel %vm62_vm0, %v4413_v55, 0.0 }
0x1cf6   :  { %4419 = vadd.xlane.f32.xlu0 %v4418_v26 }
0x1d7f   :  { %v4420_v8 = vpop.xlane.xlu0 %4419 }
0x1d80   :  { %v4421_v60 = vmul.f32 0.03125, %v4420_v8 }
0x1d82   :  { %v4422_v31 = vsub.f32 %v4413_v55, %v4421_v60 }
0x1d84   :  { %v4423_v10 = vmul.f32 %v4422_v31, %v4422_v31 }
0x1d86   :  { %v4424_v37 = vsel %vm62_vm0, %v4423_v10, 0.0 }
0x1d87   :  { %4425 = vadd.xlane.f32.xlu0 %v4424_v37 }
0x1e10   :  { %v4426_v40 = vpop.xlane.xlu0 %4425 }
0x1e11   :  { %v4427_v49 = vmul.f32 0.03125, %v4426_v40 }
0x1e13   :  { %v4428_v19 = vadd.f32 1e-05, %v4427_v49 }
0x1e15   :  { %5481 = vrsqrt.f32 %v4428_v19 }
0x1e22   :  { %v5482_v15 = vpop.eup %5481 }
0x1e23   :  { %v4430_v9 = vmul.f32 %v5482_v15, %v4422_v31 }
0x1e25   :  { %v4437_v22 = vmul.f32 %v7322_v14, %v4430_v9 }
0x1e27   :  { %v4444_v46 = vadd.f32 %v7327_v13, %v4437_v22 }
0x1e29   :  { %4446 = vst.msk [vmem:[#allocation2 + $0x8] sm:$0xff] %vm62_vm0, %v4444_v46 }
0x1e2a   :  { %5496 = shalt.err (!%p5493_p4)
}
0x1e2b   :  { %s5521_s9 = smov 128   ;;  %s5522_s1 = smov 8  }
0x1e2c   :  { %4458 = dma.vmem_to_hbm [thread:$0]  %s4453_s16, 256, %s7424_s17, [#allocation3], %s5521_s9, %s5521_s9, %s5522_s1  }
0x1e2d   :  { %5505 = dma.done.wait [#allocation3], 256  }
0x1e2e   :  { %5506 = vsyncadd [#allocation3], 4294967040 }
0x1e2f   :  { %4462 = vsyncpa [#allocation3], 1 }

</bundles_post_ra>
